<compile_context>
chip_gen: v5e
topology: v5e:2x2
jax: 0.10.0
libtpu: 0.0.40
codegen_flags: <defaults>
</compile_context>

<pallas_src>
import numpy as np
import jax
import jax.numpy as jnp
from jax import lax
from jax.experimental import pallas as pl
from jax.experimental.pallas import tpu as pltpu

# ----------------------------- configuration -------------------------------
PATCH = 8
IMG = 32                       # target_img_size (small, != 384 branch)
B = 2
C = 3
CPP = C * PATCH * PATCH        # 192
W_FEAT = IMG // PATCH          # 4
NPATCH = W_FEAT * W_FEAT       # 16
S = NPATCH + 1                 # 17 tokens (cls + patches)
BS = B * S                     # 34 flat token rows
D = 32                         # embed dim
NH = 4                         # attention heads
DH = D // NH                   # 8
SCALE = DH ** -0.5
MLP = 4 * D
LN_EPS = 1e-6
NEG_INF = -1e30

# target_img_size != 384 -> (0.2, 0, 0)
ATT_THRESHOLD = 0.2
ATT_HEAD_THRESHOLD = 0
MIN_SIZE_PERCENTAGE = 0
MIN_OBJ_SIZE = int((IMG // PATCH) ** 2 * MIN_SIZE_PERCENTAGE)   # 0

_NT = (((1,), (1,)), ((), ()))   # contract last dims: A @ B.T without materializing B.T


# ------------------------ parameter-slab layout ------------------------------
def _build_offsets(entries):
    offs, row = {}, 0
    for name, rows in entries:
        offs[name] = row
        row += -(-rows // 8) * 8           # 8-align every entry (aligned slices)
    return offs, row


_D_ENTRIES = (                               # lane width D = 32
    ("w_patch", CPP), ("tokbase", BS), ("g1", 1), ("b1", 1),
    ("wq0", D), ("wk0", D), ("bq0", 1), ("bk0", 1),
    ("hrow", NH * BS), ("battn", 1),
    ("g2", 1), ("b2", 1), ("w2", MLP), ("bm2", 1),
    ("lng", 1), ("lnb", 1), ("wqL", D), ("bqL", 1), ("wkL", D), ("bkL", 1),
    ("hcls", B * NH), ("adj16", NPATCH),
)
_M_ENTRIES = (                               # lane width MLP = 128
    ("w1", D), ("bm1", 1), ("wvp", D),
)
_S_ENTRIES = (                               # lane width BS = 34
    ("amask0", NH * BS), ("selcls", B * NH), ("etile", NH * BS),
)
_OFF_D, _ROWS_D = _build_offsets(_D_ENTRIES)
_OFF_M, _ROWS_M = _build_offsets(_M_ENTRIES)
_OFF_S, _ROWS_S = _build_offsets(_S_ENTRIES)


# --------------------------- in-kernel helpers ------------------------------
def _ln(x, g, b):
    mu = jnp.mean(x, axis=-1, keepdims=True)
    var = jnp.mean((x - mu) ** 2, axis=-1, keepdims=True)
    return (x - mu) * lax.rsqrt(var + LN_EPS) * g + b


def _erf(z):
    # float32-accurate rational approximation (Abramowitz & Stegun 7.1.26,
    # |err| < 1.5e-7); the reciprocal goes to the EUP slot.
    az = jnp.abs(z)
    t = pl.reciprocal(1.0 + 0.3275911 * az, approx=True)
    poly = ((((1.061405429 * t - 1.453152027) * t + 1.421413741) * t
             - 0.284496736) * t + 0.254829592) * t
    y = 1.0 - poly * jnp.exp(-az * az)
    return jnp.where(z < 0.0, -y, y)


def _gelu(x):
    return 0.5 * x * (1.0 + _erf(x * 0.7071067811865476))


# --------------------------- fused Pallas kernel ----------------------------
def _dino_fused_kernel(xp_ref, sd_ref, sm_ref, ss_ref, out_ref):
    f32 = jnp.float32

    def sd(name, rows, cols=D):
        o = _OFF_D[name]
        return sd_ref[o:o + rows, 0:cols]

    def sm(name, rows, cols=MLP):
        o = _OFF_M[name]
        return sm_ref[o:o + rows, 0:cols]

    def ss(name, rows, cols=BS):
        o = _OFF_S[name]
        return ss_ref[o:o + rows, 0:cols]

    # ---- patch embedding (cls / pos / conv-bias pre-folded into tokbase) ----
    tok = (jnp.dot(xp_ref[...], sd("w_patch", CPP), preferred_element_type=f32)
           + sd("tokbase", BS))                                      # (BS, D)

    # ---- ViT block 0: attention (all heads & both images, one score matmul) ----
    xn = _ln(tok, sd("g1", 1), sd("b1", 1))
    qf = jnp.dot(xn, sd("wq0", D), preferred_element_type=f32) + sd("bq0", 1)
    kf = jnp.dot(xn, sd("wk0", D), preferred_element_type=f32) + sd("bk0", 1)
    vp = jnp.dot(xn, sm("wvp", D), preferred_element_type=f32)       # (BS, NH*D), Wv@Wproj composed
    qm = jnp.dot(ss("etile", NH * BS), qf,
                 preferred_element_type=f32) * sd("hrow", NH * BS)   # (NH*BS, D) per-head masked q
    sc = (lax.dot_general(qm, kf, _NT, preferred_element_type=f32) * SCALE
          + ss("amask0", NH * BS))                                   # (NH*BS, BS)
    sc = sc - jnp.max(sc, axis=-1, keepdims=True)
    e = jnp.exp(sc)
    p = e * pl.reciprocal(jnp.sum(e, axis=-1, keepdims=True), approx=True)
    attn = jnp.zeros((BS, D), f32)
    for h in range(NH):                                              # NH=4, unrolled
        attn = attn + jnp.dot(p[h * BS:(h + 1) * BS, :], vp[:, h * D:(h + 1) * D],
                              preferred_element_type=f32)
    x1 = tok + attn + sd("battn", 1)

    # ---- ViT block 0: MLP ----
    xn2 = _ln(x1, sd("g2", 1), sd("b2", 1))
    hid = _gelu(jnp.dot(xn2, sm("w1", D), preferred_element_type=f32) + sm("bm1", 1))
    x2 = x1 + jnp.dot(hid, sd("w2", MLP), preferred_element_type=f32) + sd("bm2", 1)

    # ---- last block: CLS-row attention scores (normalisation-free) ----
    xnl = _ln(x2, sd("lng", 1), sd("lnb", 1))
    kl = jnp.dot(xnl, sd("wkL", D), preferred_element_type=f32) + sd("bkL", 1)    # (BS, D)
    xcls = jnp.dot(ss("selcls", B * NH), xnl, preferred_element_type=f32)         # (B*NH, D)
    qc = ((jnp.dot(xcls, sd("wqL", D), preferred_element_type=f32) + sd("bqL", 1))
          * sd("hcls", B * NH))                                                   # per-head masked

    adj = sd("adj16", NPATCH, NPATCH)        # (16,16) 8-connectivity (+ self loops)
    iota_l = lax.broadcasted_iota(jnp.int32, (NPATCH, NPATCH), 1).astype(f32)
    iota_s = lax.broadcasted_iota(jnp.int32, (NPATCH, 1), 0).astype(f32)

    for b in range(B):                                               # B=2, unrolled
        kb = kl[b * S + 1:(b + 1) * S, :]                            # (NPATCH, D) patch keys only
        qb = qc[b * NH:(b + 1) * NH, :]                              # (NH, D)
        sb = lax.dot_general(qb, kb, _NT, preferred_element_type=f32) * SCALE
        # softmax numerator only: the cumulative threshold below is invariant
        # to the per-row normaliser, so the division is skipped entirely.
        tp = jnp.exp(sb - jnp.max(sb, axis=-1, keepdims=True))       # (NH, NPATCH)

        # cumulative-attention threshold, sort-free equivalent of
        # sort -> normalize -> cumsum -> (> 1 - att_threshold) -> unsort:
        #   keep patch j  iff  sum_k t_k * [t_k <= t_j] > (1 - thr) * sum_k t_k
        num = jnp.zeros((NH, NPATCH), f32)
        for k in range(NPATCH):                                      # 16, unrolled (VPU only)
            ck = tp[:, k:k + 1]
            num = num + jnp.where(ck <= tp, ck, 0.0)
        tot = jnp.sum(tp, axis=-1, keepdims=True)
        th = (num > (1.0 - ATT_THRESHOLD) * tot).astype(f32)         # (NH, NPATCH)
        mask = (jnp.sum(th, axis=0, keepdims=True)
                > float(ATT_HEAD_THRESHOLD)).astype(f32)             # (1, NPATCH)

        # connected components (8-connectivity, like scipy.ndimage.label with
        # structure=ones((3,3))) via exact boolean adjacency-matrix powering:
        # 4 squarings cover paths of length 16 >= 15 (max needed on a 4x4 grid).
        r_mat = adj * mask                                           # column-masked adjacency
        for _ in range(4):
            r_mat = (jnp.dot(r_mat, r_mat, preferred_element_type=f32) > 0.5).astype(f32)
        minlab = jnp.min(jnp.where(r_mat > 0.5, iota_l, float(NPATCH)),
                         axis=-1, keepdims=True)                     # (NPATCH, 1)
        size = jnp.sum(r_mat, axis=-1, keepdims=True)                # component size per cell
        rep = jnp.logical_and(minlab == iota_s, size > float(MIN_OBJ_SIZE))
        # TODO(synk): the reference drops the first unique-label count even when
        # there is no background (all-foreground mask); that corner-case bug is
        # not reproduced here (measure-zero for real attention maps).
        out_ref[b:b + 1, :] = jnp.sum(jnp.where(rep, 1.0, 0.0), axis=0, keepdims=True)


def dino_object_counts(xp, slabs):
    """Fused patch-embed + block0 + last-block CLS attention + thresholding +
    connected-component count.  Returns per-image counts, shape (B, 1)."""
    return pl.pallas_call(
        _dino_fused_kernel,
        out_shape=jax.ShapeDtypeStruct((B, 1), jnp.float32),
        compiler_params=pltpu.CompilerParams(vmem_limit_bytes=8 * 1024 * 1024),
        cost_estimate=pl.CostEstimate(flops=2_500_000, transcendentals=10_000,
                                      bytes_accessed=220_000),
    )(xp, slabs["slab_d"], slabs["slab_m"], slabs["slab_s"])


# ------------------------------ JAX glue ------------------------------------
def forward(x, slabs):
    # normalise_transform (ImageNet mean/std), elementwise glue
    mean = jnp.array([0.485, 0.456, 0.406], jnp.float32).reshape(1, 3, 1, 1)
    std = jnp.array([0.229, 0.224, 0.225], jnp.float32).reshape(1, 3, 1, 1)
    x = (x - mean) / std

    # patchify NCHW -> (B, NPATCH, C*p*p) in (c, di, dj) order (matches Conv2d weight)
    xp = x.reshape(B, C, W_FEAT, PATCH, W_FEAT, PATCH)
    xp = xp.transpose(0, 2, 4, 1, 3, 5).reshape(B, NPATCH, CPP)
    # flat token layout with ZERO rows at the CLS positions (no scatter matmul)
    xp_full = jnp.zeros((B, S, CPP), jnp.float32).at[:, 1:, :].set(xp).reshape(BS, CPP)

    counts = dino_object_counts(xp_full, slabs)     # (B, 1)
    # TODO(synk): th_sum_attn in the reference _get_pred is dead code (never used
    # by the prediction loop), so it is not reproduced here.
    return counts[:, 0]


# ------------------------------ parameters ----------------------------------
def init_params(key):
    ks = jax.random.split(key, 8)
    s = 0.02
    f32 = jnp.float32
    return {
        "w_patch": s * jax.random.normal(ks[0], (CPP, D), f32),
        "b_patch": jnp.zeros((1, D), f32),
        "cls_token": s * jax.random.normal(ks[1], (1, 1, D), f32),
        "pos_embed": s * jax.random.normal(ks[2], (1, S, D), f32),
        "block0": {
            "g1": jnp.ones((D,), f32), "b1": jnp.zeros((D,), f32),
            "wqkv": s * jax.random.normal(ks[3], (D, 3 * D), f32),
            "bqkv": jnp.zeros((3 * D,), f32),
            "wproj": s * jax.random.normal(ks[4], (D, D), f32),
            "bproj": jnp.zeros((D,), f32),
            "g2": jnp.ones((D,), f32), "b2": jnp.zeros((D,), f32),
            "w1": s * jax.random.normal(ks[5], (D, MLP), f32),
            "bm1": jnp.zeros((MLP,), f32),
            "w2": s * jax.random.normal(ks[6], (MLP, D), f32),
            "bm2": jnp.zeros((D,), f32),
        },
        # last block (attention-only path used by get_last_selfattention)
        "ln_g": jnp.ones((1, D), f32),
        "ln_b": jnp.zeros((1, D), f32),
        "wqkv": s * jax.random.normal(ks[7], (D, 3 * D), f32),
        "bqkv": jnp.zeros((1, 3 * D), f32),
    }


def pack_params(params):
    """One-time repack into three kernel-friendly slabs (runs once, outside jit)."""
    f32 = np.float32

    def npy(v):
        return np.asarray(v, dtype=f32)

    p0 = params["block0"]
    w_patch = npy(params["w_patch"])
    b_patch = npy(params["b_patch"]).reshape(1, D)
    cls_tok = npy(params["cls_token"]).reshape(1, D)
    pos = npy(params["pos_embed"]).reshape(S, D)

    # token base: row b*S+s = pos[s] + (cls token if s==0 else conv bias)
    tokbase = np.tile(pos, (B, 1))
    for b in range(B):
        tokbase[b * S] += cls_tok[0]
        tokbase[b * S + 1:(b + 1) * S] += b_patch

    wqkv0, bqkv0 = npy(p0["wqkv"]), npy(p0["bqkv"])
    wproj, bproj = npy(p0["wproj"]), npy(p0["bproj"]).reshape(1, D)
    wq0, wk0, wv0 = wqkv0[:, :D], wqkv0[:, D:2 * D], wqkv0[:, 2 * D:]
    bq0, bk0, bv0 = (bqkv0[:D].reshape(1, D), bqkv0[D:2 * D].reshape(1, D),
                     bqkv0[2 * D:].reshape(1, D))
    # V and output projection composed per head into one lane-dense (D, NH*D) matrix
    wvp = np.concatenate(
        [wv0[:, h * DH:(h + 1) * DH] @ wproj[h * DH:(h + 1) * DH, :] for h in range(NH)],
        axis=1)
    battn = bv0 @ wproj + bproj                      # folded v-bias + proj bias

    # per-head masks for the masked-query score trick
    hrow = (np.arange(D)[None, :] // DH
            == (np.arange(NH * BS)[:, None] // BS)).astype(f32)          # (NH*BS, D)
    hcls = (np.arange(D)[None, :] // DH
            == (np.arange(B * NH)[:, None] % NH)).astype(f32)            # (B*NH, D)

    # 8-connectivity adjacency (with self loops) on the 4x4 patch grid
    yy, xx = np.divmod(np.arange(NPATCH), W_FEAT)
    adj16 = ((np.abs(yy[:, None] - yy[None, :]) <= 1)
             & (np.abs(xx[:, None] - xx[None, :]) <= 1)).astype(f32)

    r = np.arange(NH * BS)
    i_of_r = r % BS
    # additive same-image mask for the fused block-0 scores (0 / -1e30)
    amask0 = np.where((i_of_r[:, None] // S) == (np.arange(BS)[None, :] // S),
                      0.0, NEG_INF).astype(f32)
    # constant selector: row b*NH+h picks image b's CLS token
    rb = np.arange(B * NH) // NH
    selcls = np.zeros((B * NH, BS), f32)
    selcls[np.arange(B * NH), rb * S] = 1.0
    # constant expansion: stacks NH copies of the (BS, D) query block
    etile = np.zeros((NH * BS, BS), f32)
    etile[np.arange(NH * BS), i_of_r] = 1.0

    wqkvL, bqkvL = npy(params["wqkv"]), npy(params["bqkv"]).reshape(1, 3 * D)

    d_vals = {
        "w_patch": w_patch, "tokbase": tokbase,
        "g1": npy(p0["g1"]).reshape(1, D), "b1": npy(p0["b1"]).reshape(1, D),
        "wq0": wq0, "wk0": wk0, "bq0": bq0, "bk0": bk0,
        "hrow": hrow, "battn": battn,
        "g2": npy(p0["g2"]).reshape(1, D), "b2": npy(p0["b2"]).reshape(1, D),
        "w2": npy(p0["w2"]), "bm2": npy(p0["bm2"]).reshape(1, D),
        "lng": npy(params["ln_g"]), "lnb": npy(params["ln_b"]),
        "wqL": wqkvL[:, :D], "bqL": bqkvL[:, :D],
        "wkL": wqkvL[:, D:2 * D], "bkL": bqkvL[:, D:2 * D],
        "hcls": hcls, "adj16": adj16,
    }
    m_vals = {"w1": npy(p0["w1"]), "bm1": npy(p0["bm1"]).reshape(1, MLP), "wvp": wvp}
    s_vals = {"amask0": amask0, "selcls": selcls, "etile": etile}

    def build(entries, offs, nrows, width, vals):
        slab = np.zeros((nrows, width), f32)
        for name, rows in entries:
            v = vals[name]
            assert v.shape[0] == rows and v.shape[1] <= width, name
            slab[offs[name]:offs[name] + rows, :v.shape[1]] = v
        return jnp.asarray(slab)

    return {
        "slab_d": build(_D_ENTRIES, _OFF_D, _ROWS_D, D, d_vals),
        "slab_m": build(_M_ENTRIES, _OFF_M, _ROWS_M, MLP, m_vals),
        "slab_s": build(_S_ENTRIES, _OFF_S, _ROWS_S, BS, s_vals),
    }


if __name__ == "__main__":
    key = jax.random.PRNGKey(0)
    kx, kp_key = jax.random.split(key)
    x = jax.random.uniform(kx, (B, C, IMG, IMG), jnp.float32)
    params = init_params(kp_key)
    packed = pack_params(params)

    preds = jax.jit(forward)(x, packed)
    preds = jax.block_until_ready(preds)
    assert preds.shape == (B,) and preds.dtype == jnp.float32
    print("KERNEL_OK")
</pallas_src>

<mosaic_0001>
module attributes {stable_mosaic.version = 11 : i64} {
  func.func @_dino_fused_kernel(%arg0: memref<34x192xf32, #tpu.memory_space<vmem>>, %arg1: memref<744x32xf32, #tpu.memory_space<vmem>>, %arg2: memref<72x128xf32, #tpu.memory_space<vmem>>, %arg3: memref<280x34xf32, #tpu.memory_space<vmem>>, %arg4: memref<2x1xf32, #tpu.memory_space<vmem>>) attributes {dimension_semantics = [], scalar_prefetch = 0 : i64, scratch_operands = 0 : i64, tpu.core_type = #tpu.core_type<tc>} {
    %c0 = arith.constant 0 : index
    %c0_0 = arith.constant 0 : index
    %0 = vector.load %arg0[%c0, %c0_0] : memref<34x192xf32, #tpu.memory_space<vmem>>, vector<34x192xf32>
    %c0_1 = arith.constant 0 : index
    %c0_2 = arith.constant 0 : index
    %1 = vector.load %arg1[%c0_1, %c0_2] : memref<744x32xf32, #tpu.memory_space<vmem>>, vector<192x32xf32>
    %cst = arith.constant dense<0.000000e+00> : vector<34x32xf32>
    %2 = tpu.matmul %0, %1, %cst {dimension_numbers = #tpu.dot_dimension_numbers<[1], [0], [0], [1], [0, 0, 1, 1], [], []>} : vector<34x192xf32>, vector<192x32xf32>, vector<34x32xf32> -> vector<34x32xf32>
    %c192 = arith.constant 192 : index
    %c0_3 = arith.constant 0 : index
    %3 = vector.load %arg1[%c192, %c0_3] : memref<744x32xf32, #tpu.memory_space<vmem>>, vector<34x32xf32>
    %4 = arith.addf %2, %3 : vector<34x32xf32>
    %c232 = arith.constant 232 : index
    %c0_4 = arith.constant 0 : index
    %5 = vector.load %arg1[%c232, %c0_4] : memref<744x32xf32, #tpu.memory_space<vmem>>, vector<1x32xf32>
    %c240 = arith.constant 240 : index
    %c0_5 = arith.constant 0 : index
    %6 = vector.load %arg1[%c240, %c0_5] : memref<744x32xf32, #tpu.memory_space<vmem>>, vector<1x32xf32>
    %cst_6 = arith.constant dense<0.000000e+00> : vector<34xf32>
    %7 = vector.multi_reduction <add>, %4, %cst_6 [1] : vector<34x32xf32> to vector<34xf32>
    %8 = vector.shape_cast %7 : vector<34xf32> to vector<34x1xf32>
    %cst_7 = arith.constant 3.200000e+01 : f32
    %9 = vector.broadcast %cst_7 : f32 to vector<34x1xf32>
    %10 = arith.divf %8, %9 : vector<34x1xf32>
    %11 = vector.broadcast %10 : vector<34x1xf32> to vector<34x32xf32>
    %12 = arith.subf %4, %11 : vector<34x32xf32>
    %13 = arith.mulf %12, %12 : vector<34x32xf32>
    %cst_8 = arith.constant dense<0.000000e+00> : vector<34xf32>
    %14 = vector.multi_reduction <add>, %13, %cst_8 [1] : vector<34x32xf32> to vector<34xf32>
    %15 = vector.shape_cast %14 : vector<34xf32> to vector<34x1xf32>
    %cst_9 = arith.constant 3.200000e+01 : f32
    %16 = vector.broadcast %cst_9 : f32 to vector<34x1xf32>
    %17 = arith.divf %15, %16 : vector<34x1xf32>
    %18 = vector.broadcast %10 : vector<34x1xf32> to vector<34x32xf32>
    %19 = arith.subf %4, %18 : vector<34x32xf32>
    %cst_10 = arith.constant 9.99999997E-7 : f32
    %20 = vector.broadcast %cst_10 : f32 to vector<34x1xf32>
    %21 = arith.addf %17, %20 : vector<34x1xf32>
    %22 = math.rsqrt %21 : vector<34x1xf32>
    %23 = vector.broadcast %22 : vector<34x1xf32> to vector<34x32xf32>
    %24 = arith.mulf %19, %23 : vector<34x32xf32>
    %25 = vector.broadcast %5 : vector<1x32xf32> to vector<34x32xf32>
    %26 = arith.mulf %24, %25 : vector<34x32xf32>
    %27 = vector.broadcast %6 : vector<1x32xf32> to vector<34x32xf32>
    %28 = arith.addf %26, %27 : vector<34x32xf32>
    %c248 = arith.constant 248 : index
    %c0_11 = arith.constant 0 : index
    %29 = vector.load %arg1[%c248, %c0_11] : memref<744x32xf32, #tpu.memory_space<vmem>>, vector<32x32xf32>
    %cst_12 = arith.constant dense<0.000000e+00> : vector<34x32xf32>
    %30 = tpu.matmul %28, %29, %cst_12 {dimension_numbers = #tpu.dot_dimension_numbers<[1], [0], [0], [1], [0, 0, 1, 1], [], []>} : vector<34x32xf32>, vector<32x32xf32>, vector<34x32xf32> -> vector<34x32xf32>
    %c312 = arith.constant 312 : index
    %c0_13 = arith.constant 0 : index
    %31 = vector.load %arg1[%c312, %c0_13] : memref<744x32xf32, #tpu.memory_space<vmem>>, vector<1x32xf32>
    %32 = vector.broadcast %31 : vector<1x32xf32> to vector<34x32xf32>
    %33 = arith.addf %30, %32 : vector<34x32xf32>
    %c280 = arith.constant 280 : index
    %c0_14 = arith.constant 0 : index
    %34 = vector.load %arg1[%c280, %c0_14] : memref<744x32xf32, #tpu.memory_space<vmem>>, vector<32x32xf32>
    %cst_15 = arith.constant dense<0.000000e+00> : vector<34x32xf32>
    %35 = tpu.matmul %28, %34, %cst_15 {dimension_numbers = #tpu.dot_dimension_numbers<[1], [0], [0], [1], [0, 0, 1, 1], [], []>} : vector<34x32xf32>, vector<32x32xf32>, vector<34x32xf32> -> vector<34x32xf32>
    %c320 = arith.constant 320 : index
    %c0_16 = arith.constant 0 : index
    %36 = vector.load %arg1[%c320, %c0_16] : memref<744x32xf32, #tpu.memory_space<vmem>>, vector<1x32xf32>
    %37 = vector.broadcast %36 : vector<1x32xf32> to vector<34x32xf32>
    %38 = arith.addf %35, %37 : vector<34x32xf32>
    %c40 = arith.constant 40 : index
    %c0_17 = arith.constant 0 : index
    %39 = vector.load %arg2[%c40, %c0_17] : memref<72x128xf32, #tpu.memory_space<vmem>>, vector<32x128xf32>
    %cst_18 = arith.constant dense<0.000000e+00> : vector<34x128xf32>
    %40 = tpu.matmul %28, %39, %cst_18 {dimension_numbers = #tpu.dot_dimension_numbers<[1], [0], [0], [1], [0, 0, 1, 1], [], []>} : vector<34x32xf32>, vector<32x128xf32>, vector<34x128xf32> -> vector<34x128xf32>
    %c144 = arith.constant 144 : index
    %c0_19 = arith.constant 0 : index
    %41 = vector.load %arg3[%c144, %c0_19] : memref<280x34xf32, #tpu.memory_space<vmem>>, vector<136x34xf32>
    %cst_20 = arith.constant dense<0.000000e+00> : vector<136x32xf32>
    %42 = tpu.matmul %41, %33, %cst_20 {dimension_numbers = #tpu.dot_dimension_numbers<[1], [0], [0], [1], [0, 0, 1, 1], [], []>} : vector<136x34xf32>, vector<34x32xf32>, vector<136x32xf32> -> vector<136x32xf32>
    %c328 = arith.constant 328 : index
    %c0_21 = arith.constant 0 : index
    %43 = vector.load %arg1[%c328, %c0_21] : memref<744x32xf32, #tpu.memory_space<vmem>>, vector<136x32xf32>
    %44 = arith.mulf %42, %43 : vector<136x32xf32>
    %cst_22 = arith.constant dense<0.000000e+00> : vector<136x34xf32>
    %45 = tpu.matmul %44, %38, %cst_22 {dimension_numbers = #tpu.dot_dimension_numbers<[1], [1], [0], [0], [0, 0, 1, 0], [], []>} : vector<136x32xf32>, vector<34x32xf32>, vector<136x34xf32> -> vector<136x34xf32>
    %cst_23 = arith.constant 0.353553385 : f32
    %46 = vector.broadcast %cst_23 : f32 to vector<136x34xf32>
    %47 = arith.mulf %45, %46 : vector<136x34xf32>
    %c0_24 = arith.constant 0 : index
    %c0_25 = arith.constant 0 : index
    %48 = vector.load %arg3[%c0_24, %c0_25] : memref<280x34xf32, #tpu.memory_space<vmem>>, vector<136x34xf32>
    %49 = arith.addf %47, %48 : vector<136x34xf32>
    %cst_26 = arith.constant dense<0xFF800000> : vector<136xf32>
    %50 = vector.multi_reduction <maximumf>, %49, %cst_26 [1] : vector<136x34xf32> to vector<136xf32>
    %51 = vector.shape_cast %50 : vector<136xf32> to vector<136x1xf32>
    %52 = vector.broadcast %51 : vector<136x1xf32> to vector<136x34xf32>
    %53 = arith.subf %49, %52 : vector<136x34xf32>
    %54 = math.exp %53 : vector<136x34xf32>
    %cst_27 = arith.constant dense<0.000000e+00> : vector<136xf32>
    %55 = vector.multi_reduction <add>, %54, %cst_27 [1] : vector<136x34xf32> to vector<136xf32>
    %56 = vector.shape_cast %55 : vector<136xf32> to vector<136x1xf32>
    %57 = tpu.reciprocal %56 {approx = true} : vector<136x1xf32> -> vector<136x1xf32>
    %58 = vector.broadcast %57 : vector<136x1xf32> to vector<136x34xf32>
    %59 = arith.mulf %54, %58 : vector<136x34xf32>
    %cst_28 = arith.constant 0.000000e+00 : f32
    %60 = vector.broadcast %cst_28 : f32 to vector<34x32xf32>
    %61 = vector.extract_strided_slice %59 {offsets = [0, 0], sizes = [34, 34], strides = [1, 1]} : vector<136x34xf32> to vector<34x34xf32>
    %62 = vector.extract_strided_slice %40 {offsets = [0, 0], sizes = [34, 32], strides = [1, 1]} : vector<34x128xf32> to vector<34x32xf32>
    %cst_29 = arith.constant dense<0.000000e+00> : vector<34x32xf32>
    %63 = tpu.matmul %61, %62, %cst_29 {dimension_numbers = #tpu.dot_dimension_numbers<[1], [0], [0], [1], [0, 0, 1, 1], [], []>} : vector<34x34xf32>, vector<34x32xf32>, vector<34x32xf32> -> vector<34x32xf32>
    %64 = arith.addf %60, %63 : vector<34x32xf32>
    %65 = vector.extract_strided_slice %59 {offsets = [34, 0], sizes = [34, 34], strides = [1, 1]} : vector<136x34xf32> to vector<34x34xf32>
    %66 = vector.extract_strided_slice %40 {offsets = [0, 32], sizes = [34, 32], strides = [1, 1]} : vector<34x128xf32> to vector<34x32xf32>
    %cst_30 = arith.constant dense<0.000000e+00> : vector<34x32xf32>
    %67 = tpu.matmul %65, %66, %cst_30 {dimension_numbers = #tpu.dot_dimension_numbers<[1], [0], [0], [1], [0, 0, 1, 1], [], []>} : vector<34x34xf32>, vector<34x32xf32>, vector<34x32xf32> -> vector<34x32xf32>
    %68 = arith.addf %64, %67 : vector<34x32xf32>
    %69 = vector.extract_strided_slice %59 {offsets = [68, 0], sizes = [34, 34], strides = [1, 1]} : vector<136x34xf32> to vector<34x34xf32>
    %70 = vector.extract_strided_slice %40 {offsets = [0, 64], sizes = [34, 32], strides = [1, 1]} : vector<34x128xf32> to vector<34x32xf32>
    %cst_31 = arith.constant dense<0.000000e+00> : vector<34x32xf32>
    %71 = tpu.matmul %69, %70, %cst_31 {dimension_numbers = #tpu.dot_dimension_numbers<[1], [0], [0], [1], [0, 0, 1, 1], [], []>} : vector<34x34xf32>, vector<34x32xf32>, vector<34x32xf32> -> vector<34x32xf32>
    %72 = arith.addf %68, %71 : vector<34x32xf32>
    %73 = vector.extract_strided_slice %59 {offsets = [102, 0], sizes = [34, 34], strides = [1, 1]} : vector<136x34xf32> to vector<34x34xf32>
    %74 = vector.extract_strided_slice %40 {offsets = [0, 96], sizes = [34, 32], strides = [1, 1]} : vector<34x128xf32> to vector<34x32xf32>
    %cst_32 = arith.constant dense<0.000000e+00> : vector<34x32xf32>
    %75 = tpu.matmul %73, %74, %cst_32 {dimension_numbers = #tpu.dot_dimension_numbers<[1], [0], [0], [1], [0, 0, 1, 1], [], []>} : vector<34x34xf32>, vector<34x32xf32>, vector<34x32xf32> -> vector<34x32xf32>
    %76 = arith.addf %72, %75 : vector<34x32xf32>
    %77 = arith.addf %4, %76 : vector<34x32xf32>
    %c464 = arith.constant 464 : index
    %c0_33 = arith.constant 0 : index
    %78 = vector.load %arg1[%c464, %c0_33] : memref<744x32xf32, #tpu.memory_space<vmem>>, vector<1x32xf32>
    %79 = vector.broadcast %78 : vector<1x32xf32> to vector<34x32xf32>
    %80 = arith.addf %77, %79 : vector<34x32xf32>
    %c472 = arith.constant 472 : index
    %c0_34 = arith.constant 0 : index
    %81 = vector.load %arg1[%c472, %c0_34] : memref<744x32xf32, #tpu.memory_space<vmem>>, vector<1x32xf32>
    %c480 = arith.constant 480 : index
    %c0_35 = arith.constant 0 : index
    %82 = vector.load %arg1[%c480, %c0_35] : memref<744x32xf32, #tpu.memory_space<vmem>>, vector<1x32xf32>
    %cst_36 = arith.constant dense<0.000000e+00> : vector<34xf32>
    %83 = vector.multi_reduction <add>, %80, %cst_36 [1] : vector<34x32xf32> to vector<34xf32>
    %84 = vector.shape_cast %83 : vector<34xf32> to vector<34x1xf32>
    %cst_37 = arith.constant 3.200000e+01 : f32
    %85 = vector.broadcast %cst_37 : f32 to vector<34x1xf32>
    %86 = arith.divf %84, %85 : vector<34x1xf32>
    %87 = vector.broadcast %86 : vector<34x1xf32> to vector<34x32xf32>
    %88 = arith.subf %80, %87 : vector<34x32xf32>
    %89 = arith.mulf %88, %88 : vector<34x32xf32>
    %cst_38 = arith.constant dense<0.000000e+00> : vector<34xf32>
    %90 = vector.multi_reduction <add>, %89, %cst_38 [1] : vector<34x32xf32> to vector<34xf32>
    %91 = vector.shape_cast %90 : vector<34xf32> to vector<34x1xf32>
    %cst_39 = arith.constant 3.200000e+01 : f32
    %92 = vector.broadcast %cst_39 : f32 to vector<34x1xf32>
    %93 = arith.divf %91, %92 : vector<34x1xf32>
    %94 = vector.broadcast %86 : vector<34x1xf32> to vector<34x32xf32>
    %95 = arith.subf %80, %94 : vector<34x32xf32>
    %cst_40 = arith.constant 9.99999997E-7 : f32
    %96 = vector.broadcast %cst_40 : f32 to vector<34x1xf32>
    %97 = arith.addf %93, %96 : vector<34x1xf32>
    %98 = math.rsqrt %97 : vector<34x1xf32>
    %99 = vector.broadcast %98 : vector<34x1xf32> to vector<34x32xf32>
    %100 = arith.mulf %95, %99 : vector<34x32xf32>
    %101 = vector.broadcast %81 : vector<1x32xf32> to vector<34x32xf32>
    %102 = arith.mulf %100, %101 : vector<34x32xf32>
    %103 = vector.broadcast %82 : vector<1x32xf32> to vector<34x32xf32>
    %104 = arith.addf %102, %103 : vector<34x32xf32>
    %c0_41 = arith.constant 0 : index
    %c0_42 = arith.constant 0 : index
    %105 = vector.load %arg2[%c0_41, %c0_42] : memref<72x128xf32, #tpu.memory_space<vmem>>, vector<32x128xf32>
    %cst_43 = arith.constant dense<0.000000e+00> : vector<34x128xf32>
    %106 = tpu.matmul %104, %105, %cst_43 {dimension_numbers = #tpu.dot_dimension_numbers<[1], [0], [0], [1], [0, 0, 1, 1], [], []>} : vector<34x32xf32>, vector<32x128xf32>, vector<34x128xf32> -> vector<34x128xf32>
    %c32 = arith.constant 32 : index
    %c0_44 = arith.constant 0 : index
    %107 = vector.load %arg2[%c32, %c0_44] : memref<72x128xf32, #tpu.memory_space<vmem>>, vector<1x128xf32>
    %108 = vector.broadcast %107 : vector<1x128xf32> to vector<34x128xf32>
    %109 = arith.addf %106, %108 : vector<34x128xf32>
    %cst_45 = arith.constant 5.000000e-01 : f32
    %110 = vector.broadcast %cst_45 : f32 to vector<34x128xf32>
    %111 = arith.mulf %110, %109 : vector<34x128xf32>
    %cst_46 = arith.constant 0.707106769 : f32
    %112 = vector.broadcast %cst_46 : f32 to vector<34x128xf32>
    %113 = arith.mulf %109, %112 : vector<34x128xf32>
    %114 = math.absf %113 : vector<34x128xf32>
    %cst_47 = arith.constant 0.327591091 : f32
    %115 = vector.broadcast %cst_47 : f32 to vector<34x128xf32>
    %116 = arith.mulf %115, %114 : vector<34x128xf32>
    %cst_48 = arith.constant 1.000000e+00 : f32
    %117 = vector.broadcast %cst_48 : f32 to vector<34x128xf32>
    %118 = arith.addf %117, %116 : vector<34x128xf32>
    %119 = tpu.reciprocal %118 {approx = true} : vector<34x128xf32> -> vector<34x128xf32>
    %cst_49 = arith.constant 1.06140542 : f32
    %120 = vector.broadcast %cst_49 : f32 to vector<34x128xf32>
    %121 = arith.mulf %120, %119 : vector<34x128xf32>
    %cst_50 = arith.constant 1.45315206 : f32
    %122 = vector.broadcast %cst_50 : f32 to vector<34x128xf32>
    %123 = arith.subf %121, %122 : vector<34x128xf32>
    %124 = arith.mulf %123, %119 : vector<34x128xf32>
    %cst_51 = arith.constant 1.42141378 : f32
    %125 = vector.broadcast %cst_51 : f32 to vector<34x128xf32>
    %126 = arith.addf %124, %125 : vector<34x128xf32>
    %127 = arith.mulf %126, %119 : vector<34x128xf32>
    %cst_52 = arith.constant 0.284496725 : f32
    %128 = vector.broadcast %cst_52 : f32 to vector<34x128xf32>
    %129 = arith.subf %127, %128 : vector<34x128xf32>
    %130 = arith.mulf %129, %119 : vector<34x128xf32>
    %cst_53 = arith.constant 0.254829586 : f32
    %131 = vector.broadcast %cst_53 : f32 to vector<34x128xf32>
    %132 = arith.addf %130, %131 : vector<34x128xf32>
    %133 = arith.mulf %132, %119 : vector<34x128xf32>
    %cst_54 = arith.constant 0.000000e+00 : f32
    %134 = vector.broadcast %cst_54 : f32 to vector<34x128xf32>
    %135 = arith.subf %134, %114 : vector<34x128xf32>
    %136 = arith.mulf %135, %114 : vector<34x128xf32>
    %137 = math.exp %136 : vector<34x128xf32>
    %138 = arith.mulf %133, %137 : vector<34x128xf32>
    %cst_55 = arith.constant 1.000000e+00 : f32
    %139 = vector.broadcast %cst_55 : f32 to vector<34x128xf32>
    %140 = arith.subf %139, %138 : vector<34x128xf32>
    %cst_56 = arith.constant 0.000000e+00 : f32
    %141 = vector.broadcast %cst_56 : f32 to vector<34x128xf32>
    %142 = arith.cmpf olt, %113, %141 : vector<34x128xf32>
    %cst_57 = arith.constant 0.000000e+00 : f32
    %143 = vector.broadcast %cst_57 : f32 to vector<34x128xf32>
    %144 = arith.subf %143, %140 : vector<34x128xf32>
    %145 = arith.select %142, %144, %140 : vector<34x128xi1>, vector<34x128xf32>
    %cst_58 = arith.constant 1.000000e+00 : f32
    %146 = vector.broadcast %cst_58 : f32 to vector<34x128xf32>
    %147 = arith.addf %146, %145 : vector<34x128xf32>
    %148 = arith.mulf %111, %147 : vector<34x128xf32>
    %c488 = arith.constant 488 : index
    %c0_59 = arith.constant 0 : index
    %149 = vector.load %arg1[%c488, %c0_59] : memref<744x32xf32, #tpu.memory_space<vmem>>, vector<128x32xf32>
    %cst_60 = arith.constant dense<0.000000e+00> : vector<34x32xf32>
    %150 = tpu.matmul %148, %149, %cst_60 {dimension_numbers = #tpu.dot_dimension_numbers<[1], [0], [0], [1], [0, 0, 1, 1], [], []>} : vector<34x128xf32>, vector<128x32xf32>, vector<34x32xf32> -> vector<34x32xf32>
    %151 = arith.addf %80, %150 : vector<34x32xf32>
    %c616 = arith.constant 616 : index
    %c0_61 = arith.constant 0 : index
    %152 = vector.load %arg1[%c616, %c0_61] : memref<744x32xf32, #tpu.memory_space<vmem>>, vector<1x32xf32>
    %153 = vector.broadcast %152 : vector<1x32xf32> to vector<34x32xf32>
    %154 = arith.addf %151, %153 : vector<34x32xf32>
    %c624 = arith.constant 624 : index
    %c0_62 = arith.constant 0 : index
    %155 = vector.load %arg1[%c624, %c0_62] : memref<744x32xf32, #tpu.memory_space<vmem>>, vector<1x32xf32>
    %c632 = arith.constant 632 : index
    %c0_63 = arith.constant 0 : index
    %156 = vector.load %arg1[%c632, %c0_63] : memref<744x32xf32, #tpu.memory_space<vmem>>, vector<1x32xf32>
    %cst_64 = arith.constant dense<0.000000e+00> : vector<34xf32>
    %157 = vector.multi_reduction <add>, %154, %cst_64 [1] : vector<34x32xf32> to vector<34xf32>
    %158 = vector.shape_cast %157 : vector<34xf32> to vector<34x1xf32>
    %cst_65 = arith.constant 3.200000e+01 : f32
    %159 = vector.broadcast %cst_65 : f32 to vector<34x1xf32>
    %160 = arith.divf %158, %159 : vector<34x1xf32>
    %161 = vector.broadcast %160 : vector<34x1xf32> to vector<34x32xf32>
    %162 = arith.subf %154, %161 : vector<34x32xf32>
    %163 = arith.mulf %162, %162 : vector<34x32xf32>
    %cst_66 = arith.constant dense<0.000000e+00> : vector<34xf32>
    %164 = vector.multi_reduction <add>, %163, %cst_66 [1] : vector<34x32xf32> to vector<34xf32>
    %165 = vector.shape_cast %164 : vector<34xf32> to vector<34x1xf32>
    %cst_67 = arith.constant 3.200000e+01 : f32
    %166 = vector.broadcast %cst_67 : f32 to vector<34x1xf32>
    %167 = arith.divf %165, %166 : vector<34x1xf32>
    %168 = vector.broadcast %160 : vector<34x1xf32> to vector<34x32xf32>
    %169 = arith.subf %154, %168 : vector<34x32xf32>
    %cst_68 = arith.constant 9.99999997E-7 : f32
    %170 = vector.broadcast %cst_68 : f32 to vector<34x1xf32>
    %171 = arith.addf %167, %170 : vector<34x1xf32>
    %172 = math.rsqrt %171 : vector<34x1xf32>
    %173 = vector.broadcast %172 : vector<34x1xf32> to vector<34x32xf32>
    %174 = arith.mulf %169, %173 : vector<34x32xf32>
    %175 = vector.broadcast %155 : vector<1x32xf32> to vector<34x32xf32>
    %176 = arith.mulf %174, %175 : vector<34x32xf32>
    %177 = vector.broadcast %156 : vector<1x32xf32> to vector<34x32xf32>
    %178 = arith.addf %176, %177 : vector<34x32xf32>
    %c680 = arith.constant 680 : index
    %c0_69 = arith.constant 0 : index
    %179 = vector.load %arg1[%c680, %c0_69] : memref<744x32xf32, #tpu.memory_space<vmem>>, vector<32x32xf32>
    %cst_70 = arith.constant dense<0.000000e+00> : vector<34x32xf32>
    %180 = tpu.matmul %178, %179, %cst_70 {dimension_numbers = #tpu.dot_dimension_numbers<[1], [0], [0], [1], [0, 0, 1, 1], [], []>} : vector<34x32xf32>, vector<32x32xf32>, vector<34x32xf32> -> vector<34x32xf32>
    %c712 = arith.constant 712 : index
    %c0_71 = arith.constant 0 : index
    %181 = vector.load %arg1[%c712, %c0_71] : memref<744x32xf32, #tpu.memory_space<vmem>>, vector<1x32xf32>
    %182 = vector.broadcast %181 : vector<1x32xf32> to vector<34x32xf32>
    %183 = arith.addf %180, %182 : vector<34x32xf32>
    %c136 = arith.constant 136 : index
    %c0_72 = arith.constant 0 : index
    %184 = vector.load %arg3[%c136, %c0_72] : memref<280x34xf32, #tpu.memory_space<vmem>>, vector<8x34xf32>
    %cst_73 = arith.constant dense<0.000000e+00> : vector<8x32xf32>
    %185 = tpu.matmul %184, %178, %cst_73 {dimension_numbers = #tpu.dot_dimension_numbers<[1], [0], [0], [1], [0, 0, 1, 1], [], []>} : vector<8x34xf32>, vector<34x32xf32>, vector<8x32xf32> -> vector<8x32xf32>
    %c640 = arith.constant 640 : index
    %c0_74 = arith.constant 0 : index
    %186 = vector.load %arg1[%c640, %c0_74] : memref<744x32xf32, #tpu.memory_space<vmem>>, vector<32x32xf32>
    %cst_75 = arith.constant dense<0.000000e+00> : vector<8x32xf32>
    %187 = tpu.matmul %185, %186, %cst_75 {dimension_numbers = #tpu.dot_dimension_numbers<[1], [0], [0], [1], [0, 0, 1, 1], [], []>} : vector<8x32xf32>, vector<32x32xf32>, vector<8x32xf32> -> vector<8x32xf32>
    %c672 = arith.constant 672 : index
    %c0_76 = arith.constant 0 : index
    %188 = vector.load %arg1[%c672, %c0_76] : memref<744x32xf32, #tpu.memory_space<vmem>>, vector<1x32xf32>
    %189 = vector.broadcast %188 : vector<1x32xf32> to vector<8x32xf32>
    %190 = arith.addf %187, %189 : vector<8x32xf32>
    %c720 = arith.constant 720 : index
    %c0_77 = arith.constant 0 : index
    %191 = vector.load %arg1[%c720, %c0_77] : memref<744x32xf32, #tpu.memory_space<vmem>>, vector<8x32xf32>
    %192 = arith.mulf %190, %191 : vector<8x32xf32>
    %c728 = arith.constant 728 : index
    %c0_78 = arith.constant 0 : index
    %193 = vector.load %arg1[%c728, %c0_78] : memref<744x32xf32, #tpu.memory_space<vmem>>, vector<16x16xf32>
    %194 = tpu.iota {dimensions = array<i32: 1>} : vector<16x16xi32>
    %195 = arith.sitofp %194 : vector<16x16xi32> to vector<16x16xf32>
    %196 = tpu.iota {dimensions = array<i32: 0>} : vector<16x1xi32>
    %197 = arith.sitofp %196 : vector<16x1xi32> to vector<16x1xf32>
    %198 = vector.extract_strided_slice %183 {offsets = [1, 0], sizes = [16, 32], strides = [1, 1]} : vector<34x32xf32> to vector<16x32xf32>
    %199 = vector.extract_strided_slice %192 {offsets = [0, 0], sizes = [4, 32], strides = [1, 1]} : vector<8x32xf32> to vector<4x32xf32>
    %cst_79 = arith.constant dense<0.000000e+00> : vector<4x16xf32>
    %200 = tpu.matmul %199, %198, %cst_79 {dimension_numbers = #tpu.dot_dimension_numbers<[1], [1], [0], [0], [0, 0, 1, 0], [], []>} : vector<4x32xf32>, vector<16x32xf32>, vector<4x16xf32> -> vector<4x16xf32>
    %cst_80 = arith.constant 0.353553385 : f32
    %201 = vector.broadcast %cst_80 : f32 to vector<4x16xf32>
    %202 = arith.mulf %200, %201 : vector<4x16xf32>
    %cst_81 = arith.constant dense<0xFF800000> : vector<4xf32>
    %203 = vector.multi_reduction <maximumf>, %202, %cst_81 [1] : vector<4x16xf32> to vector<4xf32>
    %204 = vector.shape_cast %203 : vector<4xf32> to vector<4x1xf32>
    %205 = vector.broadcast %204 : vector<4x1xf32> to vector<4x16xf32>
    %206 = arith.subf %202, %205 : vector<4x16xf32>
    %207 = math.exp %206 : vector<4x16xf32>
    %cst_82 = arith.constant 0.000000e+00 : f32
    %208 = vector.broadcast %cst_82 : f32 to vector<4x16xf32>
    %209 = vector.extract_strided_slice %207 {offsets = [0, 0], sizes = [4, 1], strides = [1, 1]} : vector<4x16xf32> to vector<4x1xf32>
    %210 = vector.broadcast %209 : vector<4x1xf32> to vector<4x16xf32>
    %211 = arith.cmpf ole, %210, %207 : vector<4x16xf32>
    %cst_83 = arith.constant 0.000000e+00 : f32
    %212 = vector.shape_cast %209 : vector<4x1xf32> to vector<4x1xf32>
    %213 = vector.broadcast %212 : vector<4x1xf32> to vector<4x16xf32>
    %214 = vector.broadcast %cst_83 : f32 to vector<4x16xf32>
    %215 = arith.select %211, %213, %214 : vector<4x16xi1>, vector<4x16xf32>
    %216 = arith.addf %208, %215 : vector<4x16xf32>
    %217 = vector.extract_strided_slice %207 {offsets = [0, 1], sizes = [4, 1], strides = [1, 1]} : vector<4x16xf32> to vector<4x1xf32>
    %218 = vector.broadcast %217 : vector<4x1xf32> to vector<4x16xf32>
    %219 = arith.cmpf ole, %218, %207 : vector<4x16xf32>
    %cst_84 = arith.constant 0.000000e+00 : f32
    %220 = vector.shape_cast %217 : vector<4x1xf32> to vector<4x1xf32>
    %221 = vector.broadcast %220 : vector<4x1xf32> to vector<4x16xf32>
    %222 = vector.broadcast %cst_84 : f32 to vector<4x16xf32>
    %223 = arith.select %219, %221, %222 : vector<4x16xi1>, vector<4x16xf32>
    %224 = arith.addf %216, %223 : vector<4x16xf32>
    %225 = vector.extract_strided_slice %207 {offsets = [0, 2], sizes = [4, 1], strides = [1, 1]} : vector<4x16xf32> to vector<4x1xf32>
    %226 = vector.broadcast %225 : vector<4x1xf32> to vector<4x16xf32>
    %227 = arith.cmpf ole, %226, %207 : vector<4x16xf32>
    %cst_85 = arith.constant 0.000000e+00 : f32
    %228 = vector.shape_cast %225 : vector<4x1xf32> to vector<4x1xf32>
    %229 = vector.broadcast %228 : vector<4x1xf32> to vector<4x16xf32>
    %230 = vector.broadcast %cst_85 : f32 to vector<4x16xf32>
    %231 = arith.select %227, %229, %230 : vector<4x16xi1>, vector<4x16xf32>
    %232 = arith.addf %224, %231 : vector<4x16xf32>
    %233 = vector.extract_strided_slice %207 {offsets = [0, 3], sizes = [4, 1], strides = [1, 1]} : vector<4x16xf32> to vector<4x1xf32>
    %234 = vector.broadcast %233 : vector<4x1xf32> to vector<4x16xf32>
    %235 = arith.cmpf ole, %234, %207 : vector<4x16xf32>
    %cst_86 = arith.constant 0.000000e+00 : f32
    %236 = vector.shape_cast %233 : vector<4x1xf32> to vector<4x1xf32>
    %237 = vector.broadcast %236 : vector<4x1xf32> to vector<4x16xf32>
    %238 = vector.broadcast %cst_86 : f32 to vector<4x16xf32>
    %239 = arith.select %235, %237, %238 : vector<4x16xi1>, vector<4x16xf32>
    %240 = arith.addf %232, %239 : vector<4x16xf32>
    %241 = vector.extract_strided_slice %207 {offsets = [0, 4], sizes = [4, 1], strides = [1, 1]} : vector<4x16xf32> to vector<4x1xf32>
    %242 = vector.broadcast %241 : vector<4x1xf32> to vector<4x16xf32>
    %243 = arith.cmpf ole, %242, %207 : vector<4x16xf32>
    %cst_87 = arith.constant 0.000000e+00 : f32
    %244 = vector.shape_cast %241 : vector<4x1xf32> to vector<4x1xf32>
    %245 = vector.broadcast %244 : vector<4x1xf32> to vector<4x16xf32>
    %246 = vector.broadcast %cst_87 : f32 to vector<4x16xf32>
    %247 = arith.select %243, %245, %246 : vector<4x16xi1>, vector<4x16xf32>
    %248 = arith.addf %240, %247 : vector<4x16xf32>
    %249 = vector.extract_strided_slice %207 {offsets = [0, 5], sizes = [4, 1], strides = [1, 1]} : vector<4x16xf32> to vector<4x1xf32>
    %250 = vector.broadcast %249 : vector<4x1xf32> to vector<4x16xf32>
    %251 = arith.cmpf ole, %250, %207 : vector<4x16xf32>
    %cst_88 = arith.constant 0.000000e+00 : f32
    %252 = vector.shape_cast %249 : vector<4x1xf32> to vector<4x1xf32>
    %253 = vector.broadcast %252 : vector<4x1xf32> to vector<4x16xf32>
    %254 = vector.broadcast %cst_88 : f32 to vector<4x16xf32>
    %255 = arith.select %251, %253, %254 : vector<4x16xi1>, vector<4x16xf32>
    %256 = arith.addf %248, %255 : vector<4x16xf32>
    %257 = vector.extract_strided_slice %207 {offsets = [0, 6], sizes = [4, 1], strides = [1, 1]} : vector<4x16xf32> to vector<4x1xf32>
    %258 = vector.broadcast %257 : vector<4x1xf32> to vector<4x16xf32>
    %259 = arith.cmpf ole, %258, %207 : vector<4x16xf32>
    %cst_89 = arith.constant 0.000000e+00 : f32
    %260 = vector.shape_cast %257 : vector<4x1xf32> to vector<4x1xf32>
    %261 = vector.broadcast %260 : vector<4x1xf32> to vector<4x16xf32>
    %262 = vector.broadcast %cst_89 : f32 to vector<4x16xf32>
    %263 = arith.select %259, %261, %262 : vector<4x16xi1>, vector<4x16xf32>
    %264 = arith.addf %256, %263 : vector<4x16xf32>
    %265 = vector.extract_strided_slice %207 {offsets = [0, 7], sizes = [4, 1], strides = [1, 1]} : vector<4x16xf32> to vector<4x1xf32>
    %266 = vector.broadcast %265 : vector<4x1xf32> to vector<4x16xf32>
    %267 = arith.cmpf ole, %266, %207 : vector<4x16xf32>
    %cst_90 = arith.constant 0.000000e+00 : f32
    %268 = vector.shape_cast %265 : vector<4x1xf32> to vector<4x1xf32>
    %269 = vector.broadcast %268 : vector<4x1xf32> to vector<4x16xf32>
    %270 = vector.broadcast %cst_90 : f32 to vector<4x16xf32>
    %271 = arith.select %267, %269, %270 : vector<4x16xi1>, vector<4x16xf32>
    %272 = arith.addf %264, %271 : vector<4x16xf32>
    %273 = vector.extract_strided_slice %207 {offsets = [0, 8], sizes = [4, 1], strides = [1, 1]} : vector<4x16xf32> to vector<4x1xf32>
    %274 = vector.broadcast %273 : vector<4x1xf32> to vector<4x16xf32>
    %275 = arith.cmpf ole, %274, %207 : vector<4x16xf32>
    %cst_91 = arith.constant 0.000000e+00 : f32
    %276 = vector.shape_cast %273 : vector<4x1xf32> to vector<4x1xf32>
    %277 = vector.broadcast %276 : vector<4x1xf32> to vector<4x16xf32>
    %278 = vector.broadcast %cst_91 : f32 to vector<4x16xf32>
    %279 = arith.select %275, %277, %278 : vector<4x16xi1>, vector<4x16xf32>
    %280 = arith.addf %272, %279 : vector<4x16xf32>
    %281 = vector.extract_strided_slice %207 {offsets = [0, 9], sizes = [4, 1], strides = [1, 1]} : vector<4x16xf32> to vector<4x1xf32>
    %282 = vector.broadcast %281 : vector<4x1xf32> to vector<4x16xf32>
    %283 = arith.cmpf ole, %282, %207 : vector<4x16xf32>
    %cst_92 = arith.constant 0.000000e+00 : f32
    %284 = vector.shape_cast %281 : vector<4x1xf32> to vector<4x1xf32>
    %285 = vector.broadcast %284 : vector<4x1xf32> to vector<4x16xf32>
    %286 = vector.broadcast %cst_92 : f32 to vector<4x16xf32>
    %287 = arith.select %283, %285, %286 : vector<4x16xi1>, vector<4x16xf32>
    %288 = arith.addf %280, %287 : vector<4x16xf32>
    %289 = vector.extract_strided_slice %207 {offsets = [0, 10], sizes = [4, 1], strides = [1, 1]} : vector<4x16xf32> to vector<4x1xf32>
    %290 = vector.broadcast %289 : vector<4x1xf32> to vector<4x16xf32>
    %291 = arith.cmpf ole, %290, %207 : vector<4x16xf32>
    %cst_93 = arith.constant 0.000000e+00 : f32
    %292 = vector.shape_cast %289 : vector<4x1xf32> to vector<4x1xf32>
    %293 = vector.broadcast %292 : vector<4x1xf32> to vector<4x16xf32>
    %294 = vector.broadcast %cst_93 : f32 to vector<4x16xf32>
    %295 = arith.select %291, %293, %294 : vector<4x16xi1>, vector<4x16xf32>
    %296 = arith.addf %288, %295 : vector<4x16xf32>
    %297 = vector.extract_strided_slice %207 {offsets = [0, 11], sizes = [4, 1], strides = [1, 1]} : vector<4x16xf32> to vector<4x1xf32>
    %298 = vector.broadcast %297 : vector<4x1xf32> to vector<4x16xf32>
    %299 = arith.cmpf ole, %298, %207 : vector<4x16xf32>
    %cst_94 = arith.constant 0.000000e+00 : f32
    %300 = vector.shape_cast %297 : vector<4x1xf32> to vector<4x1xf32>
    %301 = vector.broadcast %300 : vector<4x1xf32> to vector<4x16xf32>
    %302 = vector.broadcast %cst_94 : f32 to vector<4x16xf32>
    %303 = arith.select %299, %301, %302 : vector<4x16xi1>, vector<4x16xf32>
    %304 = arith.addf %296, %303 : vector<4x16xf32>
    %305 = vector.extract_strided_slice %207 {offsets = [0, 12], sizes = [4, 1], strides = [1, 1]} : vector<4x16xf32> to vector<4x1xf32>
    %306 = vector.broadcast %305 : vector<4x1xf32> to vector<4x16xf32>
    %307 = arith.cmpf ole, %306, %207 : vector<4x16xf32>
    %cst_95 = arith.constant 0.000000e+00 : f32
    %308 = vector.shape_cast %305 : vector<4x1xf32> to vector<4x1xf32>
    %309 = vector.broadcast %308 : vector<4x1xf32> to vector<4x16xf32>
    %310 = vector.broadcast %cst_95 : f32 to vector<4x16xf32>
    %311 = arith.select %307, %309, %310 : vector<4x16xi1>, vector<4x16xf32>
    %312 = arith.addf %304, %311 : vector<4x16xf32>
    %313 = vector.extract_strided_slice %207 {offsets = [0, 13], sizes = [4, 1], strides = [1, 1]} : vector<4x16xf32> to vector<4x1xf32>
    %314 = vector.broadcast %313 : vector<4x1xf32> to vector<4x16xf32>
    %315 = arith.cmpf ole, %314, %207 : vector<4x16xf32>
    %cst_96 = arith.constant 0.000000e+00 : f32
    %316 = vector.shape_cast %313 : vector<4x1xf32> to vector<4x1xf32>
    %317 = vector.broadcast %316 : vector<4x1xf32> to vector<4x16xf32>
    %318 = vector.broadcast %cst_96 : f32 to vector<4x16xf32>
    %319 = arith.select %315, %317, %318 : vector<4x16xi1>, vector<4x16xf32>
    %320 = arith.addf %312, %319 : vector<4x16xf32>
    %321 = vector.extract_strided_slice %207 {offsets = [0, 14], sizes = [4, 1], strides = [1, 1]} : vector<4x16xf32> to vector<4x1xf32>
    %322 = vector.broadcast %321 : vector<4x1xf32> to vector<4x16xf32>
    %323 = arith.cmpf ole, %322, %207 : vector<4x16xf32>
    %cst_97 = arith.constant 0.000000e+00 : f32
    %324 = vector.shape_cast %321 : vector<4x1xf32> to vector<4x1xf32>
    %325 = vector.broadcast %324 : vector<4x1xf32> to vector<4x16xf32>
    %326 = vector.broadcast %cst_97 : f32 to vector<4x16xf32>
    %327 = arith.select %323, %325, %326 : vector<4x16xi1>, vector<4x16xf32>
    %328 = arith.addf %320, %327 : vector<4x16xf32>
    %329 = vector.extract_strided_slice %207 {offsets = [0, 15], sizes = [4, 1], strides = [1, 1]} : vector<4x16xf32> to vector<4x1xf32>
    %330 = vector.broadcast %329 : vector<4x1xf32> to vector<4x16xf32>
    %331 = arith.cmpf ole, %330, %207 : vector<4x16xf32>
    %cst_98 = arith.constant 0.000000e+00 : f32
    %332 = vector.shape_cast %329 : vector<4x1xf32> to vector<4x1xf32>
    %333 = vector.broadcast %332 : vector<4x1xf32> to vector<4x16xf32>
    %334 = vector.broadcast %cst_98 : f32 to vector<4x16xf32>
    %335 = arith.select %331, %333, %334 : vector<4x16xi1>, vector<4x16xf32>
    %336 = arith.addf %328, %335 : vector<4x16xf32>
    %cst_99 = arith.constant dense<0.000000e+00> : vector<4xf32>
    %337 = vector.multi_reduction <add>, %207, %cst_99 [1] : vector<4x16xf32> to vector<4xf32>
    %338 = vector.shape_cast %337 : vector<4xf32> to vector<4x1xf32>
    %cst_100 = arith.constant 8.000000e-01 : f32
    %339 = vector.broadcast %cst_100 : f32 to vector<4x1xf32>
    %340 = arith.mulf %339, %338 : vector<4x1xf32>
    %341 = vector.broadcast %340 : vector<4x1xf32> to vector<4x16xf32>
    %342 = arith.cmpf ogt, %336, %341 : vector<4x16xf32>
    %343 = arith.extui %342 : vector<4x16xi1> to vector<4x16xi32>
    %344 = arith.sitofp %343 : vector<4x16xi32> to vector<4x16xf32>
    %cst_101 = arith.constant dense<0.000000e+00> : vector<16xf32>
    %345 = vector.multi_reduction <add>, %344, %cst_101 [0] : vector<4x16xf32> to vector<16xf32>
    %346 = vector.shape_cast %345 : vector<16xf32> to vector<1x16xf32>
    %cst_102 = arith.constant 0.000000e+00 : f32
    %347 = vector.broadcast %cst_102 : f32 to vector<1x16xf32>
    %348 = arith.cmpf ogt, %346, %347 : vector<1x16xf32>
    %349 = arith.extui %348 : vector<1x16xi1> to vector<1x16xi32>
    %350 = arith.sitofp %349 : vector<1x16xi32> to vector<1x16xf32>
    %351 = vector.broadcast %350 : vector<1x16xf32> to vector<16x16xf32>
    %352 = arith.mulf %193, %351 : vector<16x16xf32>
    %cst_103 = arith.constant dense<0.000000e+00> : vector<16x16xf32>
    %353 = tpu.matmul %352, %352, %cst_103 {dimension_numbers = #tpu.dot_dimension_numbers<[1], [0], [0], [1], [0, 0, 1, 1], [], []>} : vector<16x16xf32>, vector<16x16xf32>, vector<16x16xf32> -> vector<16x16xf32>
    %cst_104 = arith.constant 5.000000e-01 : f32
    %354 = vector.broadcast %cst_104 : f32 to vector<16x16xf32>
    %355 = arith.cmpf ogt, %353, %354 : vector<16x16xf32>
    %356 = arith.extui %355 : vector<16x16xi1> to vector<16x16xi32>
    %357 = arith.sitofp %356 : vector<16x16xi32> to vector<16x16xf32>
    %cst_105 = arith.constant dense<0.000000e+00> : vector<16x16xf32>
    %358 = tpu.matmul %357, %357, %cst_105 {dimension_numbers = #tpu.dot_dimension_numbers<[1], [0], [0], [1], [0, 0, 1, 1], [], []>} : vector<16x16xf32>, vector<16x16xf32>, vector<16x16xf32> -> vector<16x16xf32>
    %cst_106 = arith.constant 5.000000e-01 : f32
    %359 = vector.broadcast %cst_106 : f32 to vector<16x16xf32>
    %360 = arith.cmpf ogt, %358, %359 : vector<16x16xf32>
    %361 = arith.extui %360 : vector<16x16xi1> to vector<16x16xi32>
    %362 = arith.sitofp %361 : vector<16x16xi32> to vector<16x16xf32>
    %cst_107 = arith.constant dense<0.000000e+00> : vector<16x16xf32>
    %363 = tpu.matmul %362, %362, %cst_107 {dimension_numbers = #tpu.dot_dimension_numbers<[1], [0], [0], [1], [0, 0, 1, 1], [], []>} : vector<16x16xf32>, vector<16x16xf32>, vector<16x16xf32> -> vector<16x16xf32>
    %cst_108 = arith.constant 5.000000e-01 : f32
    %364 = vector.broadcast %cst_108 : f32 to vector<16x16xf32>
    %365 = arith.cmpf ogt, %363, %364 : vector<16x16xf32>
    %366 = arith.extui %365 : vector<16x16xi1> to vector<16x16xi32>
    %367 = arith.sitofp %366 : vector<16x16xi32> to vector<16x16xf32>
    %cst_109 = arith.constant dense<0.000000e+00> : vector<16x16xf32>
    %368 = tpu.matmul %367, %367, %cst_109 {dimension_numbers = #tpu.dot_dimension_numbers<[1], [0], [0], [1], [0, 0, 1, 1], [], []>} : vector<16x16xf32>, vector<16x16xf32>, vector<16x16xf32> -> vector<16x16xf32>
    %cst_110 = arith.constant 5.000000e-01 : f32
    %369 = vector.broadcast %cst_110 : f32 to vector<16x16xf32>
    %370 = arith.cmpf ogt, %368, %369 : vector<16x16xf32>
    %371 = arith.extui %370 : vector<16x16xi1> to vector<16x16xi32>
    %372 = arith.sitofp %371 : vector<16x16xi32> to vector<16x16xf32>
    %cst_111 = arith.constant 5.000000e-01 : f32
    %373 = vector.broadcast %cst_111 : f32 to vector<16x16xf32>
    %374 = arith.cmpf ogt, %372, %373 : vector<16x16xf32>
    %cst_112 = arith.constant 1.600000e+01 : f32
    %375 = vector.broadcast %cst_112 : f32 to vector<16x16xf32>
    %376 = arith.select %374, %195, %375 : vector<16x16xi1>, vector<16x16xf32>
    %cst_113 = arith.constant dense<0x7F800000> : vector<16xf32>
    %377 = vector.multi_reduction <minimumf>, %376, %cst_113 [1] : vector<16x16xf32> to vector<16xf32>
    %378 = vector.shape_cast %377 : vector<16xf32> to vector<16x1xf32>
    %cst_114 = arith.constant dense<0.000000e+00> : vector<16xf32>
    %379 = vector.multi_reduction <add>, %372, %cst_114 [1] : vector<16x16xf32> to vector<16xf32>
    %380 = vector.shape_cast %379 : vector<16xf32> to vector<16x1xf32>
    %381 = arith.cmpf oeq, %378, %197 : vector<16x1xf32>
    %cst_115 = arith.constant 0.000000e+00 : f32
    %382 = vector.broadcast %cst_115 : f32 to vector<16x1xf32>
    %383 = arith.cmpf ogt, %380, %382 : vector<16x1xf32>
    %384 = arith.andi %381, %383 : vector<16x1xi1>
    %cst_116 = arith.constant 1.000000e+00 : f32
    %cst_117 = arith.constant 0.000000e+00 : f32
    %385 = vector.broadcast %cst_116 : f32 to vector<16x1xf32>
    %386 = vector.broadcast %cst_117 : f32 to vector<16x1xf32>
    %387 = arith.select %384, %385, %386 : vector<16x1xi1>, vector<16x1xf32>
    %cst_118 = arith.constant dense<0.000000e+00> : vector<1xf32>
    %388 = vector.multi_reduction <add>, %387, %cst_118 [0] : vector<16x1xf32> to vector<1xf32>
    %389 = vector.shape_cast %388 : vector<1xf32> to vector<1x1xf32>
    %c0_119 = arith.constant 0 : index
    %c0_120 = arith.constant 0 : index
    %390 = vector.load %arg4[%c0_119, %c0_120] : memref<2x1xf32, #tpu.memory_space<vmem>>, vector<1x1xf32>
    tpu.vector_store %arg4[%c0_119, %c0_120], %389 {strides = array<i32>} : memref<2x1xf32, #tpu.memory_space<vmem>>, vector<1x1xf32>,
    %391 = vector.extract_strided_slice %183 {offsets = [18, 0], sizes = [16, 32], strides = [1, 1]} : vector<34x32xf32> to vector<16x32xf32>
    %392 = vector.extract_strided_slice %192 {offsets = [4, 0], sizes = [4, 32], strides = [1, 1]} : vector<8x32xf32> to vector<4x32xf32>
    %cst_121 = arith.constant dense<0.000000e+00> : vector<4x16xf32>
    %393 = tpu.matmul %392, %391, %cst_121 {dimension_numbers = #tpu.dot_dimension_numbers<[1], [1], [0], [0], [0, 0, 1, 0], [], []>} : vector<4x32xf32>, vector<16x32xf32>, vector<4x16xf32> -> vector<4x16xf32>
    %cst_122 = arith.constant 0.353553385 : f32
    %394 = vector.broadcast %cst_122 : f32 to vector<4x16xf32>
    %395 = arith.mulf %393, %394 : vector<4x16xf32>
    %cst_123 = arith.constant dense<0xFF800000> : vector<4xf32>
    %396 = vector.multi_reduction <maximumf>, %395, %cst_123 [1] : vector<4x16xf32> to vector<4xf32>
    %397 = vector.shape_cast %396 : vector<4xf32> to vector<4x1xf32>
    %398 = vector.broadcast %397 : vector<4x1xf32> to vector<4x16xf32>
    %399 = arith.subf %395, %398 : vector<4x16xf32>
    %400 = math.exp %399 : vector<4x16xf32>
    %cst_124 = arith.constant 0.000000e+00 : f32
    %401 = vector.broadcast %cst_124 : f32 to vector<4x16xf32>
    %402 = vector.extract_strided_slice %400 {offsets = [0, 0], sizes = [4, 1], strides = [1, 1]} : vector<4x16xf32> to vector<4x1xf32>
    %403 = vector.broadcast %402 : vector<4x1xf32> to vector<4x16xf32>
    %404 = arith.cmpf ole, %403, %400 : vector<4x16xf32>
    %cst_125 = arith.constant 0.000000e+00 : f32
    %405 = vector.shape_cast %402 : vector<4x1xf32> to vector<4x1xf32>
    %406 = vector.broadcast %405 : vector<4x1xf32> to vector<4x16xf32>
    %407 = vector.broadcast %cst_125 : f32 to vector<4x16xf32>
    %408 = arith.select %404, %406, %407 : vector<4x16xi1>, vector<4x16xf32>
    %409 = arith.addf %401, %408 : vector<4x16xf32>
    %410 = vector.extract_strided_slice %400 {offsets = [0, 1], sizes = [4, 1], strides = [1, 1]} : vector<4x16xf32> to vector<4x1xf32>
    %411 = vector.broadcast %410 : vector<4x1xf32> to vector<4x16xf32>
    %412 = arith.cmpf ole, %411, %400 : vector<4x16xf32>
    %cst_126 = arith.constant 0.000000e+00 : f32
    %413 = vector.shape_cast %410 : vector<4x1xf32> to vector<4x1xf32>
    %414 = vector.broadcast %413 : vector<4x1xf32> to vector<4x16xf32>
    %415 = vector.broadcast %cst_126 : f32 to vector<4x16xf32>
    %416 = arith.select %412, %414, %415 : vector<4x16xi1>, vector<4x16xf32>
    %417 = arith.addf %409, %416 : vector<4x16xf32>
    %418 = vector.extract_strided_slice %400 {offsets = [0, 2], sizes = [4, 1], strides = [1, 1]} : vector<4x16xf32> to vector<4x1xf32>
    %419 = vector.broadcast %418 : vector<4x1xf32> to vector<4x16xf32>
    %420 = arith.cmpf ole, %419, %400 : vector<4x16xf32>
    %cst_127 = arith.constant 0.000000e+00 : f32
    %421 = vector.shape_cast %418 : vector<4x1xf32> to vector<4x1xf32>
    %422 = vector.broadcast %421 : vector<4x1xf32> to vector<4x16xf32>
    %423 = vector.broadcast %cst_127 : f32 to vector<4x16xf32>
    %424 = arith.select %420, %422, %423 : vector<4x16xi1>, vector<4x16xf32>
    %425 = arith.addf %417, %424 : vector<4x16xf32>
    %426 = vector.extract_strided_slice %400 {offsets = [0, 3], sizes = [4, 1], strides = [1, 1]} : vector<4x16xf32> to vector<4x1xf32>
    %427 = vector.broadcast %426 : vector<4x1xf32> to vector<4x16xf32>
    %428 = arith.cmpf ole, %427, %400 : vector<4x16xf32>
    %cst_128 = arith.constant 0.000000e+00 : f32
    %429 = vector.shape_cast %426 : vector<4x1xf32> to vector<4x1xf32>
    %430 = vector.broadcast %429 : vector<4x1xf32> to vector<4x16xf32>
    %431 = vector.broadcast %cst_128 : f32 to vector<4x16xf32>
    %432 = arith.select %428, %430, %431 : vector<4x16xi1>, vector<4x16xf32>
    %433 = arith.addf %425, %432 : vector<4x16xf32>
    %434 = vector.extract_strided_slice %400 {offsets = [0, 4], sizes = [4, 1], strides = [1, 1]} : vector<4x16xf32> to vector<4x1xf32>
    %435 = vector.broadcast %434 : vector<4x1xf32> to vector<4x16xf32>
    %436 = arith.cmpf ole, %435, %400 : vector<4x16xf32>
    %cst_129 = arith.constant 0.000000e+00 : f32
    %437 = vector.shape_cast %434 : vector<4x1xf32> to vector<4x1xf32>
    %438 = vector.broadcast %437 : vector<4x1xf32> to vector<4x16xf32>
    %439 = vector.broadcast %cst_129 : f32 to vector<4x16xf32>
    %440 = arith.select %436, %438, %439 : vector<4x16xi1>, vector<4x16xf32>
    %441 = arith.addf %433, %440 : vector<4x16xf32>
    %442 = vector.extract_strided_slice %400 {offsets = [0, 5], sizes = [4, 1], strides = [1, 1]} : vector<4x16xf32> to vector<4x1xf32>
    %443 = vector.broadcast %442 : vector<4x1xf32> to vector<4x16xf32>
    %444 = arith.cmpf ole, %443, %400 : vector<4x16xf32>
    %cst_130 = arith.constant 0.000000e+00 : f32
    %445 = vector.shape_cast %442 : vector<4x1xf32> to vector<4x1xf32>
    %446 = vector.broadcast %445 : vector<4x1xf32> to vector<4x16xf32>
    %447 = vector.broadcast %cst_130 : f32 to vector<4x16xf32>
    %448 = arith.select %444, %446, %447 : vector<4x16xi1>, vector<4x16xf32>
    %449 = arith.addf %441, %448 : vector<4x16xf32>
    %450 = vector.extract_strided_slice %400 {offsets = [0, 6], sizes = [4, 1], strides = [1, 1]} : vector<4x16xf32> to vector<4x1xf32>
    %451 = vector.broadcast %450 : vector<4x1xf32> to vector<4x16xf32>
    %452 = arith.cmpf ole, %451, %400 : vector<4x16xf32>
    %cst_131 = arith.constant 0.000000e+00 : f32
    %453 = vector.shape_cast %450 : vector<4x1xf32> to vector<4x1xf32>
    %454 = vector.broadcast %453 : vector<4x1xf32> to vector<4x16xf32>
    %455 = vector.broadcast %cst_131 : f32 to vector<4x16xf32>
    %456 = arith.select %452, %454, %455 : vector<4x16xi1>, vector<4x16xf32>
    %457 = arith.addf %449, %456 : vector<4x16xf32>
    %458 = vector.extract_strided_slice %400 {offsets = [0, 7], sizes = [4, 1], strides = [1, 1]} : vector<4x16xf32> to vector<4x1xf32>
    %459 = vector.broadcast %458 : vector<4x1xf32> to vector<4x16xf32>
    %460 = arith.cmpf ole, %459, %400 : vector<4x16xf32>
    %cst_132 = arith.constant 0.000000e+00 : f32
    %461 = vector.shape_cast %458 : vector<4x1xf32> to vector<4x1xf32>
    %462 = vector.broadcast %461 : vector<4x1xf32> to vector<4x16xf32>
    %463 = vector.broadcast %cst_132 : f32 to vector<4x16xf32>
    %464 = arith.select %460, %462, %463 : vector<4x16xi1>, vector<4x16xf32>
    %465 = arith.addf %457, %464 : vector<4x16xf32>
    %466 = vector.extract_strided_slice %400 {offsets = [0, 8], sizes = [4, 1], strides = [1, 1]} : vector<4x16xf32> to vector<4x1xf32>
    %467 = vector.broadcast %466 : vector<4x1xf32> to vector<4x16xf32>
    %468 = arith.cmpf ole, %467, %400 : vector<4x16xf32>
    %cst_133 = arith.constant 0.000000e+00 : f32
    %469 = vector.shape_cast %466 : vector<4x1xf32> to vector<4x1xf32>
    %470 = vector.broadcast %469 : vector<4x1xf32> to vector<4x16xf32>
    %471 = vector.broadcast %cst_133 : f32 to vector<4x16xf32>
    %472 = arith.select %468, %470, %471 : vector<4x16xi1>, vector<4x16xf32>
    %473 = arith.addf %465, %472 : vector<4x16xf32>
    %474 = vector.extract_strided_slice %400 {offsets = [0, 9], sizes = [4, 1], strides = [1, 1]} : vector<4x16xf32> to vector<4x1xf32>
    %475 = vector.broadcast %474 : vector<4x1xf32> to vector<4x16xf32>
    %476 = arith.cmpf ole, %475, %400 : vector<4x16xf32>
    %cst_134 = arith.constant 0.000000e+00 : f32
    %477 = vector.shape_cast %474 : vector<4x1xf32> to vector<4x1xf32>
    %478 = vector.broadcast %477 : vector<4x1xf32> to vector<4x16xf32>
    %479 = vector.broadcast %cst_134 : f32 to vector<4x16xf32>
    %480 = arith.select %476, %478, %479 : vector<4x16xi1>, vector<4x16xf32>
    %481 = arith.addf %473, %480 : vector<4x16xf32>
    %482 = vector.extract_strided_slice %400 {offsets = [0, 10], sizes = [4, 1], strides = [1, 1]} : vector<4x16xf32> to vector<4x1xf32>
    %483 = vector.broadcast %482 : vector<4x1xf32> to vector<4x16xf32>
    %484 = arith.cmpf ole, %483, %400 : vector<4x16xf32>
    %cst_135 = arith.constant 0.000000e+00 : f32
    %485 = vector.shape_cast %482 : vector<4x1xf32> to vector<4x1xf32>
    %486 = vector.broadcast %485 : vector<4x1xf32> to vector<4x16xf32>
    %487 = vector.broadcast %cst_135 : f32 to vector<4x16xf32>
    %488 = arith.select %484, %486, %487 : vector<4x16xi1>, vector<4x16xf32>
    %489 = arith.addf %481, %488 : vector<4x16xf32>
    %490 = vector.extract_strided_slice %400 {offsets = [0, 11], sizes = [4, 1], strides = [1, 1]} : vector<4x16xf32> to vector<4x1xf32>
    %491 = vector.broadcast %490 : vector<4x1xf32> to vector<4x16xf32>
    %492 = arith.cmpf ole, %491, %400 : vector<4x16xf32>
    %cst_136 = arith.constant 0.000000e+00 : f32
    %493 = vector.shape_cast %490 : vector<4x1xf32> to vector<4x1xf32>
    %494 = vector.broadcast %493 : vector<4x1xf32> to vector<4x16xf32>
    %495 = vector.broadcast %cst_136 : f32 to vector<4x16xf32>
    %496 = arith.select %492, %494, %495 : vector<4x16xi1>, vector<4x16xf32>
    %497 = arith.addf %489, %496 : vector<4x16xf32>
    %498 = vector.extract_strided_slice %400 {offsets = [0, 12], sizes = [4, 1], strides = [1, 1]} : vector<4x16xf32> to vector<4x1xf32>
    %499 = vector.broadcast %498 : vector<4x1xf32> to vector<4x16xf32>
    %500 = arith.cmpf ole, %499, %400 : vector<4x16xf32>
    %cst_137 = arith.constant 0.000000e+00 : f32
    %501 = vector.shape_cast %498 : vector<4x1xf32> to vector<4x1xf32>
    %502 = vector.broadcast %501 : vector<4x1xf32> to vector<4x16xf32>
    %503 = vector.broadcast %cst_137 : f32 to vector<4x16xf32>
    %504 = arith.select %500, %502, %503 : vector<4x16xi1>, vector<4x16xf32>
    %505 = arith.addf %497, %504 : vector<4x16xf32>
    %506 = vector.extract_strided_slice %400 {offsets = [0, 13], sizes = [4, 1], strides = [1, 1]} : vector<4x16xf32> to vector<4x1xf32>
    %507 = vector.broadcast %506 : vector<4x1xf32> to vector<4x16xf32>
    %508 = arith.cmpf ole, %507, %400 : vector<4x16xf32>
    %cst_138 = arith.constant 0.000000e+00 : f32
    %509 = vector.shape_cast %506 : vector<4x1xf32> to vector<4x1xf32>
    %510 = vector.broadcast %509 : vector<4x1xf32> to vector<4x16xf32>
    %511 = vector.broadcast %cst_138 : f32 to vector<4x16xf32>
    %512 = arith.select %508, %510, %511 : vector<4x16xi1>, vector<4x16xf32>
    %513 = arith.addf %505, %512 : vector<4x16xf32>
    %514 = vector.extract_strided_slice %400 {offsets = [0, 14], sizes = [4, 1], strides = [1, 1]} : vector<4x16xf32> to vector<4x1xf32>
    %515 = vector.broadcast %514 : vector<4x1xf32> to vector<4x16xf32>
    %516 = arith.cmpf ole, %515, %400 : vector<4x16xf32>
    %cst_139 = arith.constant 0.000000e+00 : f32
    %517 = vector.shape_cast %514 : vector<4x1xf32> to vector<4x1xf32>
    %518 = vector.broadcast %517 : vector<4x1xf32> to vector<4x16xf32>
    %519 = vector.broadcast %cst_139 : f32 to vector<4x16xf32>
    %520 = arith.select %516, %518, %519 : vector<4x16xi1>, vector<4x16xf32>
    %521 = arith.addf %513, %520 : vector<4x16xf32>
    %522 = vector.extract_strided_slice %400 {offsets = [0, 15], sizes = [4, 1], strides = [1, 1]} : vector<4x16xf32> to vector<4x1xf32>
    %523 = vector.broadcast %522 : vector<4x1xf32> to vector<4x16xf32>
    %524 = arith.cmpf ole, %523, %400 : vector<4x16xf32>
    %cst_140 = arith.constant 0.000000e+00 : f32
    %525 = vector.shape_cast %522 : vector<4x1xf32> to vector<4x1xf32>
    %526 = vector.broadcast %525 : vector<4x1xf32> to vector<4x16xf32>
    %527 = vector.broadcast %cst_140 : f32 to vector<4x16xf32>
    %528 = arith.select %524, %526, %527 : vector<4x16xi1>, vector<4x16xf32>
    %529 = arith.addf %521, %528 : vector<4x16xf32>
    %cst_141 = arith.constant dense<0.000000e+00> : vector<4xf32>
    %530 = vector.multi_reduction <add>, %400, %cst_141 [1] : vector<4x16xf32> to vector<4xf32>
    %531 = vector.shape_cast %530 : vector<4xf32> to vector<4x1xf32>
    %cst_142 = arith.constant 8.000000e-01 : f32
    %532 = vector.broadcast %cst_142 : f32 to vector<4x1xf32>
    %533 = arith.mulf %532, %531 : vector<4x1xf32>
    %534 = vector.broadcast %533 : vector<4x1xf32> to vector<4x16xf32>
    %535 = arith.cmpf ogt, %529, %534 : vector<4x16xf32>
    %536 = arith.extui %535 : vector<4x16xi1> to vector<4x16xi32>
    %537 = arith.sitofp %536 : vector<4x16xi32> to vector<4x16xf32>
    %cst_143 = arith.constant dense<0.000000e+00> : vector<16xf32>
    %538 = vector.multi_reduction <add>, %537, %cst_143 [0] : vector<4x16xf32> to vector<16xf32>
    %539 = vector.shape_cast %538 : vector<16xf32> to vector<1x16xf32>
    %cst_144 = arith.constant 0.000000e+00 : f32
    %540 = vector.broadcast %cst_144 : f32 to vector<1x16xf32>
    %541 = arith.cmpf ogt, %539, %540 : vector<1x16xf32>
    %542 = arith.extui %541 : vector<1x16xi1> to vector<1x16xi32>
    %543 = arith.sitofp %542 : vector<1x16xi32> to vector<1x16xf32>
    %544 = vector.broadcast %543 : vector<1x16xf32> to vector<16x16xf32>
    %545 = arith.mulf %193, %544 : vector<16x16xf32>
    %cst_145 = arith.constant dense<0.000000e+00> : vector<16x16xf32>
    %546 = tpu.matmul %545, %545, %cst_145 {dimension_numbers = #tpu.dot_dimension_numbers<[1], [0], [0], [1], [0, 0, 1, 1], [], []>} : vector<16x16xf32>, vector<16x16xf32>, vector<16x16xf32> -> vector<16x16xf32>
    %cst_146 = arith.constant 5.000000e-01 : f32
    %547 = vector.broadcast %cst_146 : f32 to vector<16x16xf32>
    %548 = arith.cmpf ogt, %546, %547 : vector<16x16xf32>
    %549 = arith.extui %548 : vector<16x16xi1> to vector<16x16xi32>
    %550 = arith.sitofp %549 : vector<16x16xi32> to vector<16x16xf32>
    %cst_147 = arith.constant dense<0.000000e+00> : vector<16x16xf32>
    %551 = tpu.matmul %550, %550, %cst_147 {dimension_numbers = #tpu.dot_dimension_numbers<[1], [0], [0], [1], [0, 0, 1, 1], [], []>} : vector<16x16xf32>, vector<16x16xf32>, vector<16x16xf32> -> vector<16x16xf32>
    %cst_148 = arith.constant 5.000000e-01 : f32
    %552 = vector.broadcast %cst_148 : f32 to vector<16x16xf32>
    %553 = arith.cmpf ogt, %551, %552 : vector<16x16xf32>
    %554 = arith.extui %553 : vector<16x16xi1> to vector<16x16xi32>
    %555 = arith.sitofp %554 : vector<16x16xi32> to vector<16x16xf32>
    %cst_149 = arith.constant dense<0.000000e+00> : vector<16x16xf32>
    %556 = tpu.matmul %555, %555, %cst_149 {dimension_numbers = #tpu.dot_dimension_numbers<[1], [0], [0], [1], [0, 0, 1, 1], [], []>} : vector<16x16xf32>, vector<16x16xf32>, vector<16x16xf32> -> vector<16x16xf32>
    %cst_150 = arith.constant 5.000000e-01 : f32
    %557 = vector.broadcast %cst_150 : f32 to vector<16x16xf32>
    %558 = arith.cmpf ogt, %556, %557 : vector<16x16xf32>
    %559 = arith.extui %558 : vector<16x16xi1> to vector<16x16xi32>
    %560 = arith.sitofp %559 : vector<16x16xi32> to vector<16x16xf32>
    %cst_151 = arith.constant dense<0.000000e+00> : vector<16x16xf32>
    %561 = tpu.matmul %560, %560, %cst_151 {dimension_numbers = #tpu.dot_dimension_numbers<[1], [0], [0], [1], [0, 0, 1, 1], [], []>} : vector<16x16xf32>, vector<16x16xf32>, vector<16x16xf32> -> vector<16x16xf32>
    %cst_152 = arith.constant 5.000000e-01 : f32
    %562 = vector.broadcast %cst_152 : f32 to vector<16x16xf32>
    %563 = arith.cmpf ogt, %561, %562 : vector<16x16xf32>
    %564 = arith.extui %563 : vector<16x16xi1> to vector<16x16xi32>
    %565 = arith.sitofp %564 : vector<16x16xi32> to vector<16x16xf32>
    %cst_153 = arith.constant 5.000000e-01 : f32
    %566 = vector.broadcast %cst_153 : f32 to vector<16x16xf32>
    %567 = arith.cmpf ogt, %565, %566 : vector<16x16xf32>
    %cst_154 = arith.constant 1.600000e+01 : f32
    %568 = vector.broadcast %cst_154 : f32 to vector<16x16xf32>
    %569 = arith.select %567, %195, %568 : vector<16x16xi1>, vector<16x16xf32>
    %cst_155 = arith.constant dense<0x7F800000> : vector<16xf32>
    %570 = vector.multi_reduction <minimumf>, %569, %cst_155 [1] : vector<16x16xf32> to vector<16xf32>
    %571 = vector.shape_cast %570 : vector<16xf32> to vector<16x1xf32>
    %cst_156 = arith.constant dense<0.000000e+00> : vector<16xf32>
    %572 = vector.multi_reduction <add>, %565, %cst_156 [1] : vector<16x16xf32> to vector<16xf32>
    %573 = vector.shape_cast %572 : vector<16xf32> to vector<16x1xf32>
    %574 = arith.cmpf oeq, %571, %197 : vector<16x1xf32>
    %cst_157 = arith.constant 0.000000e+00 : f32
    %575 = vector.broadcast %cst_157 : f32 to vector<16x1xf32>
    %576 = arith.cmpf ogt, %573, %575 : vector<16x1xf32>
    %577 = arith.andi %574, %576 : vector<16x1xi1>
    %cst_158 = arith.constant 1.000000e+00 : f32
    %cst_159 = arith.constant 0.000000e+00 : f32
    %578 = vector.broadcast %cst_158 : f32 to vector<16x1xf32>
    %579 = vector.broadcast %cst_159 : f32 to vector<16x1xf32>
    %580 = arith.select %577, %578, %579 : vector<16x1xi1>, vector<16x1xf32>
    %cst_160 = arith.constant dense<0.000000e+00> : vector<1xf32>
    %581 = vector.multi_reduction <add>, %580, %cst_160 [0] : vector<16x1xf32> to vector<1xf32>
    %582 = vector.shape_cast %581 : vector<1xf32> to vector<1x1xf32>
    %c1 = arith.constant 1 : index
    %c0_161 = arith.constant 0 : index
    %583 = vector.load %arg4[%c1, %c0_161] : memref<2x1xf32, #tpu.memory_space<vmem>>, vector<1x1xf32>
    tpu.vector_store %arg4[%c1, %c0_161], %582 {strides = array<i32>} : memref<2x1xf32, #tpu.memory_space<vmem>>, vector<1x1xf32>,
    return
  }
}

</mosaic_0001>

<bundles_post_ra>
// kernel: forward.1
= control target key start
LH: loop header
LB: loop body
LE: loop exit
PB: predicated region body
PF: predicated region fallthrough
CT: control target
= control target key end

     0   :  { %vm56_vm0 = vcmask 523264   ;;  %vm138_vm1 = vcmask 261120   ;;  %vm151_vm2 = vcmask 254976   ;;  %s2928_s23 = smov 96   ;;  %s2929_s28 = smov 32   ;;  %s4208_s1 = inlined_call_operand.vmem [shape: f32[744,32], index: 1, kind: input, shape index: {}]   ;;  %s4209_s0 = inlined_call_operand.vmem [shape: f32[34,192], index: 0, kind: input, shape index: {}]   ;;  %s4210_s2 = inlined_call_operand.vmem [shape: f32[72,128], index: 2, kind: input, shape index: {}]   ;;  %s4211_s3 = inlined_call_operand.vmem [shape: f32[280,34], index: 3, kind: input, shape index: {}]   ;;  %s4212_s4 = inlined_call_operand.vmem [shape: f32[2,1], index: 4, kind: output, shape index: {}]  }
   0x1   :  { %v42_v0 = vld [vmem:[%s4208_s1 + $0x78] sm:$0xff]  ;;  %v41_v1 = vld [vmem:[%s4208_s1 + $0x70] sm:$0xff]  ;;  %v40_v2 = vld [vmem:[%s4208_s1 + $0x68] sm:$0xff]  ;;  %s2930_s18 = smov 64  }
   0x2   :  { %72 = vmatpush.msra.mxu0 %v42_v0  ;;  %v50_v3 = vld [vmem:[%s4208_s1 + $0xb8] sm:$0xff]  ;;  %v39_v4 = vld [vmem:[%s4208_s1 + $0x60] sm:$0xff]  ;;  %v49_v5 = vld [vmem:[%s4208_s1 + $0xb0] sm:$0xff]  ;;  %v2927_v0 = vmov 32.0  }
   0x3   :  { %112 = vmatpush.msra.mxu1 %v50_v3  ;;  %v48_v6 = vld [vmem:[%s4208_s1 + $0xa8] sm:$0xff]  ;;  %v38_v7 = vld [vmem:[%s4208_s1 + $0x58] sm:$0xff]  ;;  %v47_v8 = vld [vmem:[%s4208_s1 + $0xa0] sm:$0xff]  ;;  %2803 = vrcp.f32 %v2927_v0 }
   0x4   :  { %73 = vmatpush.msra.mxu0 %v41_v1  ;;  %v37_v9 = vld [vmem:[%s4208_s1 + $0x50] sm:$0xff]  ;;  %v36_v10 = vld [vmem:[%s4208_s1 + $0x48] sm:$0xff]  ;;  %v46_v11 = vld [vmem:[%s4208_s1 + $0x98] sm:$0xff] }
   0x5   :  { %113 = vmatpush.msra.mxu1 %v49_v5  ;;  %v45_v12 = vld [vmem:[%s4208_s1 + $0x90] sm:$0xff]  ;;  %v35_v13 = vld [vmem:[%s4208_s1 + $0x40] sm:$0xff]  ;;  %v44_v14 = vld [vmem:[%s4208_s1 + $0x88] sm:$0xff] }
   0x6   :  { %74 = vmatpush.msra.mxu0 %v40_v2  ;;  %v34_v15 = vld [vmem:[%s4208_s1 + $0x38] sm:$0xff]  ;;  %v43_v16 = vld [vmem:[%s4208_s1 + $0x80] sm:$0xff]  ;;  %v33_v17 = vld [vmem:[%s4208_s1 + $0x30] sm:$0xff] }
   0x7   :  { %114 = vmatpush.msra.mxu1 %v48_v6  ;;  %v18_v18 = vld [vmem:[%s4209_s0 + $0x8] sm:$0xff]  ;;  %v31_v20 = vld [vmem:[%s4208_s1 + $0x20] sm:$0xff]  ;;  %v30_v21 = vld [vmem:[%s4208_s1 + $0x18] sm:$0xff] }
   0x8   :  { %75 = vmatpush.msra.mxu0 %v39_v4  ;;  %v32_v19 = vld [vmem:[%s4208_s1 + $0x28] sm:$0xff]  ;;  %v29_v22 = vld [vmem:[%s4208_s1 + $0x10] sm:$0xff]  ;;  %v20_v23 = vld [vmem:[%s4209_s0 + $0x18] sm:$0xff] }
   0x9   :  { %115 = vmatpush.msra.mxu1 %v47_v8  ;;  %v28_v24 = vld [vmem:[%s4208_s1 + $0x8] sm:$0xff]  ;;  %v27_v25 = vld [vmem:[%s4208_s1] sm:$0xff]  ;;  %v19_v28 = vld [vmem:[%s4209_s0 + $0x10] sm:$0xff]  ;;  %v2804_v1 = vpop.eup %2803 }
   0xa   :  { %76 = vmatpush.msra.mxu0 %v38_v7  ;;  %v17_v26 = vld [vmem:[%s4209_s0] sm:$0xff]  ;;  %v22_v27 = vld [vmem:[%s4209_s0 + $0x28] sm:$0xff]  ;;  %v24_v29 = vld [vmem:[%s4209_s0 + $0x38] sm:$0xff]  ;;  %v156_v2 = vmul.f32 32.0, %v2804_v1  ;;  %vm160_vm3 = vweird.f32 %v2804_v1 }
   0xb   :  { %116 = vmatpush.msra.mxu1 %v46_v11  ;;  %v21_v30 = vld [vmem:[%s4209_s0 + $0x20] sm:$0xff]  ;;  %v26_v31 = vld [vmem:[%s4209_s0 + $0x48] sm:$0x3]  ;;  %v23_v32 = vld [vmem:[%s4209_s0 + $0x30] sm:$0xff] }
   0xc   :  { %77 = vmatpush.msra.mxu0 %v37_v9  ;;  %v25_v33 = vld [vmem:[%s4209_s0 + $0x40] sm:$0x3]  ;;  %v52_v41 = vld [vmem:[%s4208_s1 + $0xc8] sm:$0xff]  ;;  %v53_v47 = vld [vmem:[%s4208_s1 + $0xd0] sm:$0xff]  ;;  %v157_v3 = vsub.f32 1.0, %v156_v2 }
   0xd   :  { %117 = vmatpush.msra.mxu1 %v45_v12  ;;  %v51_v35 = vld [vmem:[%s4208_s1 + $0xc0] sm:$0xff]  ;;  %v54_v52 = vld [vmem:[%s4208_s1 + $0xd8] sm:$0xff]  ;;  %v3189_v2 = vld [vmem:[%s4208_s1 + $0xf0] ss:$0 sm:$0xff] }
   0xe   :  { %78 = vmatpush.msra.mxu0 %v36_v10  ;;  %v55_v58 = vld [vmem:[%s4208_s1 + $0xe0] sm:$0x3]  ;;  %v158_v4 = vmul.f32 %v2804_v1, %v157_v3 }
   0xf   :  { %118 = vmatpush.msra.mxu1 %v44_v14 }
  0x10   :  { %79 = vmatpush.msra.mxu0 %v35_v13  ;;  %v159_v5 = vadd.f32 %v2804_v1, %v158_v4 }
  0x11   :  { %119 = vmatpush.msra.mxu1 %v43_v16 }
  0x12   :  { %80 = vmatpush.msra.mxu0 %v34_v15  ;;  %2544 = vmatmul.msk.f32.vlgmr.msra.gmra.mxu1 %vm56_vm0, %v18_v18  ;;  %v3116_v6 = vsel %vm160_vm3, %v2804_v1, %v159_v5 }
  0x14   :  { %81 = vmatpush.msra.mxu0 %v33_v17 }
  0x16   :  { %82 = vmatpush.msra.mxu0 %v32_v19 }
  0x18   :  { %83 = vmatpush.msra.mxu0 %v31_v20 }
  0x1a   :  { %84 = vmatpush.msra.mxu0 %v30_v21  ;;  %2545 = vmatmul.msk.f32.gmra.mxu1 %vm56_vm0, %v20_v23 }
  0x1c   :  { %85 = vmatpush.msra.mxu0 %v29_v22 }
  0x1e   :  { %86 = vmatpush.msra.mxu0 %v28_v24 }
  0x20   :  { %87 = vmatpush.msra.mxu0 %v27_v25 }
  0x21   :  { %88 = vmatmul.f32.vlgmr.msra.gmra.mxu0 %v17_v26 }
  0x22   :  { %2546 = vmatmul.msk.f32.gmra.mxu1 %vm56_vm0, %v22_v27 }
  0x29   :  { %91 = vmatmul.f32.gmra.mxu0 %v19_v28 }
  0x2a   :  { %2547 = vmatmul.msk.f32.gmra.mxu1 %vm56_vm0, %v24_v29 }
  0x31   :  { %94 = vmatmul.f32.gmra.mxu0 %v21_v30 }
  0x32   :  { %2548 = vmatmul.msk.f32.gmra.mxu1 %vm56_vm0, %v26_v31 }
  0x39   :  { %97 = vmatmul.f32.gmra.mxu0 %v23_v32  ;;  %v272_v32 = vld [vmem:[%s4208_s1 + $0x110] sm:$0xff] }
  0x3a   :  { %302 = vmatpush.msra.mxu2 %v272_v32 }
  0x41   :  { %100 = vmatmul.f32.gmra.mxu0 %v25_v33  ;;  %v325_v33 = vld [vmem:[%s4208_s1 + $0x130] sm:$0xff] }
  0x42   :  { %340 = vmatpush.msra.mxu3 %v325_v33 }
  0x8f   :  { %v121_v34 = vpop.f32.mrf.mxu1 }
  0x97   :  { %v124_v38 = vpop.f32.mrf.mxu1 }
  0x9e   :  { %v89_v36 = vpop.f32.mrf.mxu0 }
  0x9f   :  { %v90_v37 = vadd.f32 %v89_v36, %v51_v35  ;;  %v127_v45 = vpop.f32.mrf.mxu1  ;;  %v324_v35 = vld [vmem:[%s4208_s1 + $0x128] sm:$0xff]  ;;  %v270_v36 = vld [vmem:[%s4208_s1 + $0x100] sm:$0xff] }
  0xa0   :  { %341 = vmatpush.msra.mxu3 %v324_v35 }
  0xa1   :  { %v3084_v39 = vadd.f32 %v121_v34, %v90_v37  ;;  %v271_v34 = vld [vmem:[%s4208_s1 + $0x108] sm:$0xff]  ;;  %v323_v37 = vld [vmem:[%s4208_s1 + $0x120] sm:$0xff] }
  0xa2   :  { %303 = vmatpush.msra.mxu2 %v271_v34  ;;  %342 = vmatpush.msra.mxu3 %v323_v37 }
  0xa3   :  { %v139_v40 = vsel %vm138_vm1, %v3084_v39, 0.0 }
  0xa4   :  { %140 = vadd.xlane.f32.xlu0 %v139_v40  ;;  %304 = vmatpush.msra.mxu2 %v270_v36  ;;  %v322_v40 = vld [vmem:[%s4208_s1 + $0x118] sm:$0xff] }
  0xa5   :  { %343 = vmatpush.msra.mxu3 %v322_v40 }
  0xa6   :  { %v92_v42 = vpop.f32.mrf.mxu0 }
  0xa7   :  { %v93_v43 = vadd.f32 %v92_v42, %v52_v41  ;;  %v130_v53 = vpop.f32.mrf.mxu1 }
  0xa9   :  { %v3091_v44 = vadd.f32 %v124_v38, %v93_v43  ;;  %v269_v38 = vld [vmem:[%s4208_s1 + $0xf8] sm:$0xff] }
  0xaa   :  { %305 = vmatpush.msra.mxu2 %v269_v38 }
  0xab   :  { %v142_v46 = vsel %vm138_vm1, %v3091_v44, 0.0 }
  0xac   :  { %143 = vadd.xlane.f32.xlu0 %v142_v46 }
  0xae   :  { %v95_v48 = vpop.f32.mrf.mxu0 }
  0xaf   :  { %v96_v49 = vadd.f32 %v95_v48, %v53_v47  ;;  %v133_v60 = vpop.f32.mrf.mxu1 }
  0xb1   :  { %v3098_v50 = vadd.f32 %v127_v45, %v96_v49 }
  0xb3   :  { %v145_v51 = vsel %vm138_vm1, %v3098_v50, 0.0 }
  0xb4   :  { %146 = vadd.xlane.f32.xlu1 %v145_v51 }
  0xb6   :  { %v98_v54 = vpop.f32.mrf.mxu0 }
  0xb7   :  { %v99_v55 = vadd.f32 %v98_v54, %v54_v52 }
  0xb9   :  { %v3105_v56 = vadd.f32 %v130_v53, %v99_v55 }
  0xbb   :  { %v148_v57 = vsel %vm138_vm1, %v3105_v56, 0.0 }
  0xbc   :  { %149 = vadd.xlane.f32.xlu1 %v148_v57 }
  0xbe   :  { %v101_v59 = vpop.f32.mrf.mxu0 }
  0xbf   :  { %v102_v61 = vadd.f32 %v101_v59, %v55_v58 }
  0xc1   :  { %v3112_v62 = vadd.f32 %v133_v60, %v102_v61  ;;  %v3183_v61 = vld [vmem:[%s4208_s1 + $0xe8] ss:$0 sm:$0xff] }
  0xc3   :  { %v152_v63 = vsel %vm151_vm2, %v3112_v62, 0.0 }
  0xc4   :  { %153 = vadd.xlane.f32.xlu2 %v152_v63 }
 0x117   :  { %v141_v7 = vpop.xlane.xlu0 %140 }
 0x118   :  { %v162_v8 = vmul.f32 %v3116_v6, %v141_v7 }
 0x11a   :  { %v3120_v9 = vsub.f32 %v3084_v39, %v162_v8 }
 0x11c   :  { %v172_v10 = vmul.f32 %v3120_v9, %v3120_v9 }
 0x11e   :  { %v177_v11 = vsel %vm138_vm1, %v172_v10, 0.0 }
 0x11f   :  { %178 = vadd.xlane.f32.xlu2 %v177_v11  ;;  %v144_v12 = vpop.xlane.xlu0 %143 }
 0x120   :  { %v163_v13 = vmul.f32 %v3116_v6, %v144_v12 }
 0x122   :  { %v3127_v14 = vsub.f32 %v3091_v44, %v163_v13 }
 0x124   :  { %v173_v15 = vmul.f32 %v3127_v14, %v3127_v14 }
 0x126   :  { %v180_v16 = vsel %vm138_vm1, %v173_v15, 0.0  ;;  %v363_v15 = vld [vmem:[%s4210_s2 + $0x40] sm:$0xff] }
 0x127   :  { %v147_v17 = vpop.xlane.xlu1 %146  ;;  %181 = vadd.xlane.f32.xlu0 %v180_v16  ;;  %v362_v16 = vld [vmem:[%s4210_s2 + $0x38] sm:$0xff]  ;;  %376 = vmatpush.msrb.mxu2 %v363_v15 }
 0x128   :  { %v164_v18 = vmul.f32 %v3116_v6, %v147_v17 }
 0x129   :  { %377 = vmatpush.msrb.mxu2 %v362_v16 }
 0x12a   :  { %v3134_v19 = vsub.f32 %v3098_v50, %v164_v18 }
 0x12c   :  { %v174_v20 = vmul.f32 %v3134_v19, %v3134_v19 }
 0x12e   :  { %v183_v21 = vsel %vm138_vm1, %v174_v20, 0.0 }
 0x12f   :  { %184 = vadd.xlane.f32.xlu1 %v183_v21  ;;  %v150_v22 = vpop.xlane.xlu1 %149  ;;  %v361_v21 = vld [vmem:[%s4210_s2 + $0x30] sm:$0xff] }
 0x130   :  { %v165_v23 = vmul.f32 %v3116_v6, %v150_v22  ;;  %378 = vmatpush.msrb.mxu2 %v361_v21 }
 0x132   :  { %v3141_v24 = vsub.f32 %v3105_v56, %v165_v23 }
 0x134   :  { %v175_v25 = vmul.f32 %v3141_v24, %v3141_v24 }
 0x136   :  { %v186_v26 = vsel %vm138_vm1, %v175_v25, 0.0 }
 0x137   :  { %v154_v27 = vpop.xlane.xlu2 %153  ;;  %187 = vadd.xlane.f32.xlu2 %v186_v26 }
 0x138   :  { %v166_v28 = vmul.f32 %v3116_v6, %v154_v27  ;;  %v360_v27 = vld [vmem:[%s4210_s2 + $0x28] sm:$0xff] }
 0x139   :  { %379 = vmatpush.msrb.mxu2 %v360_v27 }
 0x13a   :  { %v3148_v29 = vsub.f32 %v3112_v62, %v166_v28 }
 0x13c   :  { %v176_v30 = vmul.f32 %v3148_v29, %v3148_v29 }
 0x13e   :  { %v189_v31 = vsel %vm151_vm2, %v176_v30, 0.0 }
 0x13f   :  { %190 = vadd.xlane.f32.xlu0 %v189_v31 }
 0x192   :  { %v179_v41 = vpop.xlane.xlu2 %178 }
 0x193   :  { %v192_v42 = vmul.f32 %v179_v41, %v3116_v6 }
 0x195   :  { %v197_v43 = vadd.f32 1e-06, %v192_v42 }
 0x197   :  { %2805 = vrsqrt.f32 %v197_v43  ;;  %vm208_vm5 = vweird.f32 %v197_v43 }
 0x19a   :  { %v182_v45 = vpop.xlane.xlu0 %181 }
 0x19b   :  { %v193_v46 = vmul.f32 %v182_v45, %v3116_v6 }
 0x19d   :  { %v2806_v47 = vpop.eup %2805  ;;  %v198_v48 = vadd.f32 1e-06, %v193_v46 }
 0x19e   :  { %v203_v49 = vmul.f32 %v2806_v47, %v197_v43  ;;  %vm209_vm4 = vweird.f32 %v2806_v47 }
 0x19f   :  { %2807 = vrsqrt.f32 %v198_v48  ;;  %vm210_vm6 = vmor %vm208_vm5, %vm209_vm4  ;;  %vm218_vm8 = vweird.f32 %v198_v48  ;;  %vm465_vm5 = vcmask 1041408  }
 0x1a0   :  { %v204_v51 = vmul.f32 %v2806_v47, %v203_v49 }
 0x1a2   :  { %v205_v52 = vmul.f32 0.5, %v204_v51  ;;  %v185_v53 = vpop.xlane.xlu1 %184 }
 0x1a3   :  { %v194_v54 = vmul.f32 %v185_v53, %v3116_v6 }
 0x1a4   :  { %v206_v55 = vsub.f32 1.5, %v205_v52 }
 0x1a5   :  { %v2808_v57 = vpop.eup %2807  ;;  %v199_v58 = vadd.f32 1e-06, %v194_v54 }
 0x1a6   :  { %v207_v59 = vmul.f32 %v2806_v47, %v206_v55  ;;  %v213_v60 = vmul.f32 %v2808_v57, %v198_v48  ;;  %vm219_vm7 = vweird.f32 %v2808_v57 }
 0x1a7   :  { %2809 = vrsqrt.f32 %v199_v58  ;;  %vm220_vm9 = vmor %vm218_vm8, %vm219_vm7  ;;  %vm228_vm11 = vweird.f32 %v199_v58  ;;  %vm948_vm7 = vcmask 1045504   ;;  %vm1073_vm8 = vcmask 1043456  }
 0x1a8   :  { %v211_v63 = vsel %vm210_vm6, %v2806_v47, %v207_v59  ;;  %v214_v0 = vmul.f32 %v2808_v57, %v213_v60  ;;  %vm413_vm6 = vcmask 277504  }
 0x1a9   :  { %v252_v1 = vmul.f32 %v211_v63, %v3120_v9 }
 0x1aa   :  { %v215_v3 = vmul.f32 0.5, %v214_v0  ;;  %v188_v4 = vpop.xlane.xlu2 %187 }
 0x1ab   :  { %v195_v5 = vmul.f32 %v188_v4, %v3116_v6  ;;  %v258_v7 = vmul.f32 %v3183_v61, %v252_v1 }
 0x1ac   :  { %v216_v8 = vsub.f32 1.5, %v215_v3  ;;  %v2793_v3 = vld [vmem:[%s4208_s1 + $0x138] ss:$0 sm:$0xff] }
 0x1ad   :  { %v2810_v10 = vpop.eup %2809  ;;  %v200_v11 = vadd.f32 1e-06, %v195_v5  ;;  %v3194_v12 = vadd.f32 %v3189_v2, %v258_v7 }
 0x1ae   :  { %v217_v13 = vmul.f32 %v2808_v57, %v216_v8  ;;  %v223_v9 = vmul.f32 %v2810_v10, %v199_v58  ;;  %vm229_vm10 = vweird.f32 %v2810_v10 }
 0x1af   :  { %2811 = vrsqrt.f32 %v200_v11  ;;  %2549 = vmatmul.msk.f32.vlgmr.msra.gmra.mxu2 %vm138_vm1, %v3194_v12  ;;  %2554 = vmatmul.msk.f32.vlgmr.msra.gmra.mxu3 %vm138_vm1, %v3194_v12  ;;  %vm230_vm12 = vmor %vm228_vm11, %vm229_vm10  ;;  %vm238_vm14 = vweird.f32 %v200_v11 }
 0x1b0   :  { %v221_v17 = vsel %vm220_vm9, %v2808_v57, %v217_v13  ;;  %v224_v18 = vmul.f32 %v2810_v10, %v223_v9 }
 0x1b1   :  { %v253_v20 = vmul.f32 %v221_v17, %v3127_v14  ;;  %v396_v17 = vld [vmem:[%s4211_s3 + $0x90] sm:$0xff] }
 0x1b2   :  { %v225_v22 = vmul.f32 0.5, %v224_v18  ;;  %v191_v23 = vpop.xlane.xlu0 %190 }
 0x1b3   :  { %v196_v25 = vmul.f32 %v191_v23, %v3116_v6  ;;  %v259_v26 = vmul.f32 %v3183_v61, %v253_v20  ;;  %v397_v23 = vld [vmem:[%s4211_s3 + $0x98] sm:$0xff] }
 0x1b4   :  { %v226_v28 = vsub.f32 1.5, %v225_v22 }
 0x1b5   :  { %v2812_v30 = vpop.eup %2811  ;;  %v201_v14 = vadd.f32 1e-06, %v196_v25  ;;  %v265_v31 = vadd.f32 %v3189_v2, %v259_v26  ;;  %v398_v26 = vld [vmem:[%s4211_s3 + $0xa0] sm:$0xff] }
 0x1b6   :  { %v227_v32 = vmul.f32 %v2810_v10, %v226_v28  ;;  %v233_v33 = vmul.f32 %v2812_v30, %v200_v11  ;;  %vm239_vm13 = vweird.f32 %v2812_v30 }
 0x1b7   :  { %2813 = vrsqrt.f32 %v201_v14  ;;  %2550 = vmatmul.msk.f32.gmra.mxu2 %vm138_vm1, %v265_v31  ;;  %2555 = vmatmul.msk.f32.gmra.mxu3 %vm138_vm1, %v265_v31  ;;  %vm240_vm15 = vmor %vm238_vm14, %vm239_vm13  ;;  %vm248_vm3 = vweird.f32 %v201_v14 }
 0x1b8   :  { %v231_v34 = vsel %vm230_vm12, %v2810_v10, %v227_v32  ;;  %v234_v35 = vmul.f32 %v2812_v30, %v233_v33  ;;  %v401_v32 = vld [vmem:[%s4211_s3 + $0xb8] sm:$0xff]  ;;  %v402_v33 = vld [vmem:[%s4211_s3 + $0xc0] sm:$0xff] }
 0x1b9   :  { %v254_v36 = vmul.f32 %v231_v34, %v3134_v19  ;;  %v403_v34 = vld [vmem:[%s4211_s3 + $0xc8] sm:$0xff] }
 0x1ba   :  { %v235_v37 = vmul.f32 0.5, %v234_v35  ;;  %v404_v35 = vld [vmem:[%s4211_s3 + $0xd0] sm:$0xff] }
 0x1bb   :  { %v260_v38 = vmul.f32 %v3183_v61, %v254_v36  ;;  %v405_v36 = vld [vmem:[%s4211_s3 + $0xd8] sm:$0xff] }
 0x1bc   :  { %v236_v40 = vsub.f32 1.5, %v235_v37  ;;  %v406_v37 = vld [vmem:[%s4211_s3 + $0xe0] sm:$0xff] }
 0x1bd   :  { %v2814_v41 = vpop.eup %2813  ;;  %v266_v42 = vadd.f32 %v3189_v2, %v260_v38  ;;  %v407_v38 = vld [vmem:[%s4211_s3 + $0xe8] sm:$0xff] }
 0x1be   :  { %v237_v43 = vmul.f32 %v2812_v30, %v236_v40  ;;  %v243_v45 = vmul.f32 %v2814_v41, %v201_v14  ;;  %vm249_vm0 = vweird.f32 %v2814_v41  ;;  %v408_v40 = vld [vmem:[%s4211_s3 + $0xf0] sm:$0xff] }
 0x1bf   :  { %2551 = vmatmul.msk.f32.gmra.mxu2 %vm138_vm1, %v266_v42  ;;  %2556 = vmatmul.msk.f32.gmra.mxu3 %vm138_vm1, %v266_v42  ;;  %vm250_vm4 = vmor %vm248_vm3, %vm249_vm0 }
 0x1c0   :  { %v241_v46 = vsel %vm240_vm15, %v2812_v30, %v237_v43  ;;  %v244_v47 = vmul.f32 %v2814_v41, %v243_v45  ;;  %v399_v30 = vld [vmem:[%s4211_s3 + $0xa8] sm:$0xff] }
 0x1c1   :  { %v255_v19 = vmul.f32 %v241_v46, %v3141_v24  ;;  %v411_v45 = vld [vmem:[%s4211_s3 + $0x108] sm:$0xff] }
 0x1c2   :  { %v245_v48 = vmul.f32 0.5, %v244_v47  ;;  %v412_v47 = vld [vmem:[%s4211_s3 + $0x110] sm:$0xff] }
 0x1c3   :  { %v261_v49 = vmul.f32 %v3183_v61, %v255_v19  ;;  %v537_v19 = vld [vmem:[%s4208_s1 + $0x148] sm:$0xff] }
 0x1c4   :  { %v246_v51 = vsub.f32 1.5, %v245_v48 }
 0x1c5   :  { %v267_v52 = vadd.f32 %v3189_v2, %v261_v49 }
 0x1c6   :  { %v247_v53 = vmul.f32 %v2814_v41, %v246_v51 }
 0x1c7   :  { %2552 = vmatmul.msk.f32.gmra.mxu2 %vm138_vm1, %v267_v52  ;;  %2557 = vmatmul.msk.f32.gmra.mxu3 %vm138_vm1, %v267_v52 }
 0x1c8   :  { %v251_v54 = vsel %vm250_vm4, %v2814_v41, %v247_v53  ;;  %v409_v41 = vld [vmem:[%s4211_s3 + $0xf8] sm:$0xff] }
 0x1c9   :  { %v256_v55 = vmul.f32 %v251_v54, %v3148_v29 }
 0x1cb   :  { %v262_v57 = vmul.f32 %v3183_v61, %v256_v55 }
 0x1cd   :  { %v268_v24 = vadd.f32 %v3189_v2, %v262_v57  ;;  %v2792_v2 = vld [vmem:[%s4208_s1 + $0x140] ss:$0 sm:$0xff] }
 0x1cf   :  { %2553 = vmatmul.msk.f32.gmra.mxu2 %vm138_vm1, %v268_v24  ;;  %2558 = vmatmul.msk.f32.gmra.mxu3 %vm138_vm1, %v268_v24 }
 0x1d7   :  { %2559 = vmatmul.msk.f32.vlgmr.msrb.gmra.mxu2 %vm138_vm1, %v3194_v12 }
 0x1df   :  { %2560 = vmatmul.msk.f32.gmra.mxu2 %vm138_vm1, %v265_v31  ;;  %v400_v31 = vld [vmem:[%s4211_s3 + $0xb0] sm:$0xff] }
 0x1e7   :  { %2561 = vmatmul.msk.f32.gmra.mxu2 %vm138_vm1, %v266_v42  ;;  %v410_v42 = vld [vmem:[%s4211_s3 + $0x100] sm:$0xff] }
 0x1ef   :  { %2562 = vmatmul.msk.f32.gmra.mxu2 %vm138_vm1, %v267_v52  ;;  %v538_v52 = vld [vmem:[%s4208_s1 + $0x150] sm:$0xff] }
 0x1f7   :  { %2563 = vmatmul.msk.f32.gmra.mxu2 %vm138_vm1, %v268_v24 }
 0x232   :  { %v307_v29 = vpop.f32.mrf.mxu2  ;;  %v345_v58 = vpop.f32.mrf.mxu3 }
 0x233   :  { %v308_v16 = vadd.f32 %v2793_v3, %v307_v29  ;;  %v346_v21 = vadd.f32 %v2792_v2, %v345_v58 }
 0x23a   :  { %v310_v59 = vpop.f32.mrf.mxu2  ;;  %v348_v60 = vpop.f32.mrf.mxu3 }
 0x23b   :  { %v311_v13 = vadd.f32 %v2793_v3, %v310_v59  ;;  %v349_v18 = vadd.f32 %v2792_v2, %v348_v60  ;;  %v539_v60 = vld [vmem:[%s4208_s1 + $0x158] sm:$0xff] }
 0x242   :  { %v313_v61 = vpop.f32.mrf.mxu2  ;;  %v351_v63 = vpop.f32.mrf.mxu3 }
 0x243   :  { %v314_v12 = vadd.f32 %v2793_v3, %v313_v61  ;;  %v352_v15 = vadd.f32 %v2792_v2, %v351_v63 }
 0x24a   :  { %v316_v0 = vpop.f32.mrf.mxu2  ;;  %v354_v1 = vpop.f32.mrf.mxu3 }
 0x24b   :  { %v317_v10 = vadd.f32 %v2793_v3, %v316_v0  ;;  %v355_v11 = vadd.f32 %v2792_v2, %v354_v1 }
 0x252   :  { %v319_v4 = vpop.f32.mrf.mxu2  ;;  %v357_v5 = vpop.f32.mrf.mxu3 }
 0x253   :  { %v320_v7 = vadd.f32 %v2793_v3, %v319_v4  ;;  %v358_v8 = vadd.f32 %v2792_v2, %v357_v5  ;;  %v540_v2 = vld [vmem:[%s4208_s1 + $0x160] sm:$0xff]  ;;  %v541_v5 = vld [vmem:[%s4208_s1 + $0x168] sm:$0xff] }
 0x255   :  { %2564 = vmatpush.msk.msrb.mxu3 %vm465_vm5, %v320_v7  ;;  %2582 = vmatpush.xpose.msk.msrb.mxu1 %vm138_vm1, %v358_v8 }
 0x257   :  { %481 = vmatpush.msrb.mxu3 %v317_v10  ;;  %v542_v10 = vld [vmem:[%s4208_s1 + $0x170] sm:$0xff] }
 0x259   :  { %482 = vmatpush.msrb.mxu3 %v314_v12  ;;  %2583 = vmatpush.xpose.msk.msrb.mxu1 %vm138_vm1, %v355_v11 }
 0x25a   :  { %v381_v9 = vpop.f32.mrf.mxu2 }
 0x25b   :  { %483 = vmatpush.msrb.mxu3 %v311_v13  ;;  %v543_v13 = vld [vmem:[%s4208_s1 + $0x178] sm:$0xff] }
 0x25d   :  { %484 = vmatpush.msrb.mxu3 %v308_v16  ;;  %2584 = vmatpush.xpose.msk.msrb.mxu1 %vm138_vm1, %v352_v15  ;;  %v544_v16 = vld [vmem:[%s4208_s1 + $0x180] sm:$0xff] }
 0x25e   :  { %2565 = vmatmul.msk.f32.vlgmr.msrb.gmra.mxu3 %vm413_vm6, %v396_v17 }
 0x261   :  { %2585 = vmatpush.xpose.msk.msrb.mxu1 %vm138_vm1, %v349_v18 }
 0x262   :  { %v384_v20 = vpop.f32.mrf.mxu2 }
 0x263   :  { %v3254_v22 = vpack.i.bf16 %v381_v9, %v384_v20 }
 0x265   :  { %2586 = vmatpush.xpose.msk.msrb.mxu1 %vm138_vm1, %v346_v21  ;;  %2728 = vrot.lane.b32.xlu2 %v3254_v22, %s2928_s23 }
 0x266   :  { %2566 = vmatmul.msk.f32.gmra.mxu3 %vm413_vm6, %v397_v23 }
 0x26a   :  { %v387_v25 = vpop.f32.mrf.mxu2 }
 0x26e   :  { %2567 = vmatmul.msk.f32.gmra.mxu3 %vm413_vm6, %v398_v26 }
 0x272   :  { %v390_v27 = vpop.f32.mrf.mxu2 }
 0x273   :  { %v3266_v28 = vpack.i.bf16 %v387_v25, %v390_v27 }
 0x275   :  { %2738 = vrot.lane.b32.xlu1 %v3266_v28, %s2929_s28  ;;  %2733 = vrot.lane.b32.xlu0 %v3266_v28, %s2928_s23 }
 0x276   :  { %2568 = vmatmul.msk.f32.gmra.mxu3 %vm413_vm6, %v399_v30  ;;  %v547_v30 = vld [vmem:[%s4208_s1 + $0x198] sm:$0xff] }
 0x27a   :  { %v3275_v14 = vpop.f32.mrf.mxu2 }
 0x27b   :  { %971 = vrot.lane.b32.xlu2 %v3275_v14, %s2928_s23  ;;  %2610 = vmatpush.msk.msra.mxu2 %vm465_vm5, %v3275_v14 }
 0x27d   :  { %1167 = vrot.lane.b32.xlu0 %v3275_v14, %s2929_s28  ;;  %1049 = vmatpush.msra.mxu2 %v390_v27 }
 0x27e   :  { %2569 = vmatmul.msk.f32.gmra.mxu3 %vm413_vm6, %v400_v31 }
 0x27f   :  { %1050 = vmatpush.msra.mxu2 %v387_v25  ;;  %v546_v25 = vld [vmem:[%s4208_s1 + $0x190] sm:$0xff] }
 0x281   :  { %1051 = vmatpush.msra.mxu2 %v384_v20  ;;  %v545_v20 = vld [vmem:[%s4208_s1 + $0x188] sm:$0xff] }
 0x283   :  { %1052 = vmatpush.msra.mxu2 %v381_v9 }
 0x286   :  { %2570 = vmatmul.msk.f32.gmra.mxu3 %vm413_vm6, %v401_v32 }
 0x28e   :  { %2571 = vmatmul.msk.f32.gmra.mxu3 %vm413_vm6, %v402_v33  ;;  %v548_v33 = vld [vmem:[%s4208_s1 + $0x1a0] sm:$0xff] }
 0x296   :  { %2572 = vmatmul.msk.f32.gmra.mxu3 %vm413_vm6, %v403_v34 }
 0x29e   :  { %2573 = vmatmul.msk.f32.gmra.mxu3 %vm413_vm6, %v404_v35 }
 0x2a6   :  { %2574 = vmatmul.msk.f32.gmra.mxu3 %vm413_vm6, %v405_v36  ;;  %v549_v36 = vld [vmem:[%s4208_s1 + $0x1a8] sm:$0xff] }
 0x2ae   :  { %2575 = vmatmul.msk.f32.gmra.mxu3 %vm413_vm6, %v406_v37 }
 0x2b6   :  { %2576 = vmatmul.msk.f32.gmra.mxu3 %vm413_vm6, %v407_v38 }
 0x2be   :  { %2577 = vmatmul.msk.f32.gmra.mxu3 %vm413_vm6, %v408_v40  ;;  %v550_v40 = vld [vmem:[%s4208_s1 + $0x1b0] sm:$0xff] }
 0x2bf   :  { %v2729_v43 = vpop.permute.xlu2 %2728 }
 0x2c0   :  { %v2730_v24 = vunpack.i.l.bf16 %v2729_v43  ;;  %v2731_v58 = vunpack.i.h.bf16 %v2729_v43  ;;  %v551_v43 = vld [vmem:[%s4208_s1 + $0x1b8] sm:$0xff] }
 0x2c6   :  { %2578 = vmatmul.msk.f32.gmra.mxu3 %vm413_vm6, %v409_v41 }
 0x2ce   :  { %2579 = vmatmul.msk.f32.gmra.mxu3 %vm413_vm6, %v410_v42 }
 0x2d5   :  { %v972_v46 = vpop.permute.xlu2 %971 }
 0x2d6   :  { %2580 = vmatmul.msk.f32.gmra.mxu3 %vm413_vm6, %v411_v45  ;;  %2604 = vmatpush.msk.msrb.mxu0 %vm465_vm5, %v972_v46 }
 0x2de   :  { %2581 = vmatmul.msk.f32.gmra.mxu3 %vm413_vm6, %v412_v47  ;;  %v552_v47 = vld [vmem:[%s4208_s1 + $0x1c0] sm:$0xff] }
 0x2e1   :  { %v486_v48 = vpop.f32.mrf.mxu3 }
 0x2e2   :  { %v554_v49 = vmul.f32 %v537_v19, %v486_v48 }
 0x2e4   :  { %2587 = vmatmul.msk.f32.vlgmr.msrb.gmra.mxu1 %vm138_vm1, %v554_v49  ;;  %v553_v49 = vld [vmem:[%s4208_s1 + $0x1c8] sm:$0xff] }
 0x2e7   :  { %v2734_v51 = vpop.permute.xlu0 %2733  ;;  %v2739_v29 = vpop.permute.xlu1 %2738 }
 0x2e8   :  { %v2735_v53 = vunpack.i.l.bf16 %v2734_v51  ;;  %v2736_v57 = vunpack.i.h.bf16 %v2734_v51  ;;  %v2740_v61 = vunpack.i.l.bf16 %v2739_v29  ;;  %v2741_v0 = vunpack.i.h.bf16 %v2739_v29 }
 0x2e9   :  { %v489_v54 = vpop.f32.mrf.mxu3 }
 0x2ea   :  { %v555_v55 = vmul.f32 %v538_v52, %v489_v54  ;;  %1001 = vmatpush.msrb.mxu0 %v2735_v53  ;;  %v722_v53 = vld [vmem:[%s4211_s3] sm:$0xff] }
 0x2ec   :  { %2588 = vmatmul.msk.f32.gmra.mxu1 %vm138_vm1, %v555_v55  ;;  %1002 = vmatpush.msrb.mxu0 %v2736_v57 }
 0x2ee   :  { %1003 = vmatpush.msrb.mxu0 %v2730_v24 }
 0x2ef   :  { %v1168_v59 = vpop.permute.xlu0 %1167 }
 0x2f0   :  { %1004 = vmatpush.msrb.mxu0 %v2731_v58  ;;  %2622 = vmatpush.msk.msrb.mxu2 %vm465_vm5, %v1168_v59  ;;  %v723_v58 = vld [vmem:[%s4211_s3 + $0x8] sm:$0xff] }
 0x2f1   :  { %v492_v63 = vpop.f32.mrf.mxu3 }
 0x2f2   :  { %v556_v1 = vmul.f32 %v539_v60, %v492_v63  ;;  %1197 = vmatpush.msrb.mxu2 %v2740_v61 }
 0x2f4   :  { %2589 = vmatmul.msk.f32.gmra.mxu1 %vm138_vm1, %v556_v1  ;;  %1198 = vmatpush.msrb.mxu2 %v2741_v0  ;;  %v724_v0 = vld [vmem:[%s4211_s3 + $0x10] sm:$0xff] }
 0x2f9   :  { %v495_v3 = vpop.f32.mrf.mxu3 }
 0x2fa   :  { %v557_v4 = vmul.f32 %v540_v2, %v495_v3 }
 0x2fc   :  { %2590 = vmatmul.msk.f32.gmra.mxu1 %vm138_vm1, %v557_v4 }
 0x301   :  { %v498_v7 = vpop.f32.mrf.mxu3 }
 0x302   :  { %v558_v8 = vmul.f32 %v541_v5, %v498_v7  ;;  %v725_v5 = vld [vmem:[%s4211_s3 + $0x18] sm:$0xff] }
 0x304   :  { %2591 = vmatmul.msk.f32.gmra.mxu1 %vm138_vm1, %v558_v8 }
 0x309   :  { %v501_v11 = vpop.f32.mrf.mxu3 }
 0x30a   :  { %v559_v12 = vmul.f32 %v542_v10, %v501_v11 }
 0x30c   :  { %2592 = vmatmul.msk.f32.gmra.mxu1 %vm138_vm1, %v559_v12  ;;  %v726_v12 = vld [vmem:[%s4211_s3 + $0x20] sm:$0xff] }
 0x311   :  { %v504_v9 = vpop.f32.mrf.mxu3 }
 0x312   :  { %v560_v15 = vmul.f32 %v543_v13, %v504_v9 }
 0x314   :  { %2593 = vmatmul.msk.f32.gmra.mxu1 %vm138_vm1, %v560_v15 }
 0x319   :  { %v507_v17 = vpop.f32.mrf.mxu3 }
 0x31a   :  { %v561_v18 = vmul.f32 %v544_v16, %v507_v17  ;;  %v727_v17 = vld [vmem:[%s4211_s3 + $0x28] sm:$0xff] }
 0x31c   :  { %2594 = vmatmul.msk.f32.gmra.mxu1 %vm138_vm1, %v561_v18 }
 0x321   :  { %v510_v21 = vpop.f32.mrf.mxu3 }
 0x322   :  { %v562_v23 = vmul.f32 %v545_v20, %v510_v21 }
 0x324   :  { %2595 = vmatmul.msk.f32.gmra.mxu1 %vm138_vm1, %v562_v23 }
 0x329   :  { %v513_v26 = vpop.f32.mrf.mxu3 }
 0x32a   :  { %v563_v27 = vmul.f32 %v546_v25, %v513_v26  ;;  %v728_v25 = vld [vmem:[%s4211_s3 + $0x30] sm:$0xff] }
 0x32c   :  { %2596 = vmatmul.msk.f32.gmra.mxu1 %vm138_vm1, %v563_v27 }
 0x331   :  { %v516_v31 = vpop.f32.mrf.mxu3 }
 0x332   :  { %v564_v32 = vmul.f32 %v547_v30, %v516_v31 }
 0x334   :  { %2597 = vmatmul.msk.f32.gmra.mxu1 %vm138_vm1, %v564_v32  ;;  %v729_v32 = vld [vmem:[%s4211_s3 + $0x38] sm:$0xff] }
 0x339   :  { %v519_v34 = vpop.f32.mrf.mxu3 }
 0x33a   :  { %v565_v35 = vmul.f32 %v548_v33, %v519_v34 }
 0x33c   :  { %2598 = vmatmul.msk.f32.gmra.mxu1 %vm138_vm1, %v565_v35 }
 0x341   :  { %v522_v37 = vpop.f32.mrf.mxu3 }
 0x342   :  { %v566_v38 = vmul.f32 %v549_v36, %v522_v37  ;;  %v730_v37 = vld [vmem:[%s4211_s3 + $0x40] sm:$0xff] }
 0x344   :  { %2599 = vmatmul.msk.f32.gmra.mxu1 %vm138_vm1, %v566_v38 }
 0x349   :  { %v525_v41 = vpop.f32.mrf.mxu3 }
 0x34a   :  { %v567_v42 = vmul.f32 %v550_v40, %v525_v41 }
 0x34c   :  { %2600 = vmatmul.msk.f32.gmra.mxu1 %vm138_vm1, %v567_v42 }
 0x351   :  { %v528_v45 = vpop.f32.mrf.mxu3 }
 0x352   :  { %v568_v46 = vmul.f32 %v551_v43, %v528_v45  ;;  %v731_v43 = vld [vmem:[%s4211_s3 + $0x48] sm:$0xff] }
 0x354   :  { %2601 = vmatmul.msk.f32.gmra.mxu1 %vm138_vm1, %v568_v46 }
 0x359   :  { %v531_v19 = vpop.f32.mrf.mxu3 }
 0x35a   :  { %v569_v48 = vmul.f32 %v552_v47, %v531_v19 }
 0x35c   :  { %2602 = vmatmul.msk.f32.gmra.mxu1 %vm138_vm1, %v569_v48  ;;  %v732_v48 = vld [vmem:[%s4211_s3 + $0x50] sm:$0xff] }
 0x361   :  { %v534_v51 = vpop.f32.mrf.mxu3  ;;  %v654_v52 = vpop.f32.mrf.mxu1 }
 0x362   :  { %v570_v54 = vmul.f32 %v553_v49, %v534_v51  ;;  %v705_v55 = vmul.f32 0.35355338, %v654_v52 }
 0x364   :  { %2603 = vmatmul.msk.f32.gmra.mxu1 %vm138_vm1, %v570_v54  ;;  %v3407_v57 = vadd.f32 %v722_v53, %v705_v55  ;;  %v733_v54 = vld [vmem:[%s4211_s3 + $0x58] sm:$0xff] }
 0x366   :  { %v756_v24 = vsel %vm413_vm6, %v3407_v57, -inf }
 0x367   :  { %757 = vmax.xlane.f32.xlu1 %v756_v24 }
 0x369   :  { %v657_v29 = vpop.f32.mrf.mxu1 }
 0x36a   :  { %v706_v59 = vmul.f32 0.35355338, %v657_v29 }
 0x36c   :  { %v3414_v60 = vadd.f32 %v723_v58, %v706_v59  ;;  %v734_v59 = vld [vmem:[%s4211_s3 + $0x60] sm:$0xff] }
 0x36e   :  { %v759_v61 = vsel %vm413_vm6, %v3414_v60, -inf }
 0x36f   :  { %760 = vmax.xlane.f32.xlu1 %v759_v61 }
 0x371   :  { %v660_v63 = vpop.f32.mrf.mxu1 }
 0x372   :  { %v707_v1 = vmul.f32 0.35355338, %v660_v63 }
 0x374   :  { %v3421_v2 = vadd.f32 %v724_v0, %v707_v1 }
 0x376   :  { %v762_v3 = vsel %vm413_vm6, %v3421_v2, -inf }
 0x377   :  { %763 = vmax.xlane.f32.xlu0 %v762_v3  ;;  %v735_v3 = vld [vmem:[%s4211_s3 + $0x68] sm:$0xff] }
 0x379   :  { %v663_v4 = vpop.f32.mrf.mxu1 }
 0x37a   :  { %v708_v7 = vmul.f32 0.35355338, %v663_v4 }
 0x37c   :  { %v3428_v8 = vadd.f32 %v725_v5, %v708_v7 }
 0x37e   :  { %v765_v10 = vsel %vm413_vm6, %v3428_v8, -inf }
 0x37f   :  { %766 = vmax.xlane.f32.xlu2 %v765_v10 }
 0x381   :  { %v666_v11 = vpop.f32.mrf.mxu1 }
 0x382   :  { %v709_v13 = vmul.f32 0.35355338, %v666_v11  ;;  %v736_v11 = vld [vmem:[%s4211_s3 + $0x70] sm:$0xff] }
 0x384   :  { %v3435_v9 = vadd.f32 %v726_v12, %v709_v13 }
 0x386   :  { %v768_v15 = vsel %vm413_vm6, %v3435_v9, -inf }
 0x387   :  { %769 = vmax.xlane.f32.xlu2 %v768_v15 }
 0x389   :  { %v669_v16 = vpop.f32.mrf.mxu1 }
 0x38a   :  { %v710_v18 = vmul.f32 0.35355338, %v669_v16 }
 0x38c   :  { %v3442_v20 = vadd.f32 %v727_v17, %v710_v18  ;;  %v737_v17 = vld [vmem:[%s4211_s3 + $0x78] sm:$0xff] }
 0x38e   :  { %v771_v21 = vsel %vm413_vm6, %v3442_v20, -inf }
 0x38f   :  { %772 = vmax.xlane.f32.xlu0 %v771_v21 }
 0x391   :  { %v672_v23 = vpop.f32.mrf.mxu1 }
 0x392   :  { %v711_v26 = vmul.f32 0.35355338, %v672_v23 }
 0x394   :  { %v3449_v27 = vadd.f32 %v728_v25, %v711_v26 }
 0x396   :  { %v774_v30 = vsel %vm413_vm6, %v3449_v27, -inf }
 0x397   :  { %775 = vmax.xlane.f32.xlu2 %v774_v30 }
 0x399   :  { %v675_v31 = vpop.f32.mrf.mxu1 }
 0x39a   :  { %v712_v33 = vmul.f32 0.35355338, %v675_v31 }
 0x39c   :  { %v3456_v34 = vadd.f32 %v729_v32, %v712_v33  ;;  %v738_v32 = vld [vmem:[%s4211_s3 + $0x80] sm:$0xff] }
 0x39e   :  { %v777_v35 = vsel %vm413_vm6, %v3456_v34, -inf }
 0x39f   :  { %778 = vmax.xlane.f32.xlu1 %v777_v35 }
 0x3a1   :  { %v678_v36 = vpop.f32.mrf.mxu1 }
 0x3a2   :  { %v713_v38 = vmul.f32 0.35355338, %v678_v36 }
 0x3a4   :  { %v3463_v40 = vadd.f32 %v730_v37, %v713_v38 }
 0x3a6   :  { %v780_v41 = vsel %vm413_vm6, %v3463_v40, -inf }
 0x3a7   :  { %781 = vmax.xlane.f32.xlu0 %v780_v41 }
 0x3a9   :  { %v681_v42 = vpop.f32.mrf.mxu1 }
 0x3aa   :  { %v714_v45 = vmul.f32 0.35355338, %v681_v42 }
 0x3ac   :  { %v3470_v46 = vadd.f32 %v731_v43, %v714_v45 }
 0x3ae   :  { %v783_v47 = vsel %vm413_vm6, %v3470_v46, -inf }
 0x3af   :  { %784 = vmax.xlane.f32.xlu0 %v783_v47 }
 0x3b1   :  { %v684_v19 = vpop.f32.mrf.mxu1 }
 0x3b2   :  { %v715_v49 = vmul.f32 0.35355338, %v684_v19 }
 0x3b4   :  { %v3477_v51 = vadd.f32 %v732_v48, %v715_v49 }
 0x3b6   :  { %v786_v52 = vsel %vm413_vm6, %v3477_v51, -inf }
 0x3b7   :  { %787 = vmax.xlane.f32.xlu2 %v786_v52 }
 0x3b9   :  { %v687_v53 = vpop.f32.mrf.mxu1 }
 0x3ba   :  { %v716_v55 = vmul.f32 0.35355338, %v687_v53 }
 0x3bc   :  { %v3484_v24 = vadd.f32 %v733_v54, %v716_v55 }
 0x3be   :  { %v789_v29 = vsel %vm413_vm6, %v3484_v24, -inf }
 0x3bf   :  { %790 = vmax.xlane.f32.xlu1 %v789_v29 }
 0x3c1   :  { %v690_v58 = vpop.f32.mrf.mxu1 }
 0x3c2   :  { %v717_v61 = vmul.f32 0.35355338, %v690_v58 }
 0x3c4   :  { %v3491_v63 = vadd.f32 %v734_v59, %v717_v61 }
 0x3c6   :  { %v792_v0 = vsel %vm413_vm6, %v3491_v63, -inf }
 0x3c7   :  { %793 = vmax.xlane.f32.xlu1 %v792_v0 }
 0x3c9   :  { %v693_v1 = vpop.f32.mrf.mxu1 }
 0x3ca   :  { %v718_v4 = vmul.f32 0.35355338, %v693_v1 }
 0x3cc   :  { %v3498_v5 = vadd.f32 %v735_v3, %v718_v4 }
 0x3ce   :  { %v795_v7 = vsel %vm413_vm6, %v3498_v5, -inf }
 0x3cf   :  { %796 = vmax.xlane.f32.xlu2 %v795_v7 }
 0x3d1   :  { %v696_v10 = vpop.f32.mrf.mxu1 }
 0x3d2   :  { %v719_v12 = vmul.f32 0.35355338, %v696_v10 }
 0x3d4   :  { %v3505_v13 = vadd.f32 %v736_v11, %v719_v12 }
 0x3d6   :  { %v798_v15 = vsel %vm413_vm6, %v3505_v13, -inf }
 0x3d7   :  { %799 = vmax.xlane.f32.xlu1 %v798_v15 }
 0x3d9   :  { %v699_v16 = vpop.f32.mrf.mxu1 }
 0x3da   :  { %v720_v18 = vmul.f32 0.35355338, %v699_v16  ;;  %v758_v21 = vpop.xlane.xlu1 %757 }
 0x3db   :  { %v807_v23 = vsub.f32 %v3407_v57, %v758_v21 }
 0x3dc   :  { %v3513_v25 = vadd.f32 %v737_v17, %v720_v18 }
 0x3dd   :  { %v824_v26 = vmul.f32 1.442695, %v807_v23 }
 0x3de   :  { %v801_v30 = vsel %vm413_vm6, %v3513_v25, -inf }
 0x3df   :  { %2815 = vpow2.f32 %v824_v26  ;;  %802 = vmax.xlane.f32.xlu1 %v801_v30 }
 0x3e1   :  { %v702_v31 = vpop.f32.mrf.mxu1 }
 0x3e2   :  { %v721_v33 = vmul.f32 0.35355338, %v702_v31  ;;  %v761_v35 = vpop.xlane.xlu1 %760 }
 0x3e3   :  { %v808_v36 = vsub.f32 %v3414_v60, %v761_v35 }
 0x3e4   :  { %v3521_v37 = vadd.f32 %v738_v32, %v721_v33 }
 0x3e5   :  { %v3523_v57 = vpop.eup %2815  ;;  %v826_v38 = vmul.f32 1.442695, %v808_v36 }
 0x3e6   :  { %v858_v41 = vsel %vm413_vm6, %v3523_v57, 0.0  ;;  %v804_v42 = vsel %vm413_vm6, %v3521_v37, -inf }
 0x3e7   :  { %2817 = vpow2.f32 %v826_v38  ;;  %859 = vadd.xlane.f32.xlu0 %v858_v41  ;;  %805 = vmax.xlane.f32.xlu1 %v804_v42 }
 0x3ea   :  { %v764_v43 = vpop.xlane.xlu0 %763 }
 0x3eb   :  { %v809_v45 = vsub.f32 %v3421_v2, %v764_v43 }
 0x3ed   :  { %v3530_v47 = vpop.eup %2817  ;;  %v828_v60 = vmul.f32 1.442695, %v809_v45 }
 0x3ee   :  { %v861_v19 = vsel %vm413_vm6, %v3530_v47, 0.0 }
 0x3ef   :  { %2819 = vpow2.f32 %v828_v60  ;;  %862 = vadd.xlane.f32.xlu1 %v861_v19 }
 0x3f2   :  { %v767_v48 = vpop.xlane.xlu2 %766 }
 0x3f3   :  { %v810_v49 = vsub.f32 %v3428_v8, %v767_v48 }
 0x3f5   :  { %v3535_v52 = vpop.eup %2819  ;;  %v830_v53 = vmul.f32 1.442695, %v810_v49 }
 0x3f6   :  { %v864_v54 = vsel %vm413_vm6, %v3535_v52, 0.0 }
 0x3f7   :  { %2821 = vpow2.f32 %v830_v53  ;;  %865 = vadd.xlane.f32.xlu0 %v864_v54 }
 0x3fa   :  { %v770_v2 = vpop.xlane.xlu2 %769 }
 0x3fb   :  { %v811_v55 = vsub.f32 %v3435_v9, %v770_v2 }
 0x3fd   :  { %v3540_v29 = vpop.eup %2821  ;;  %v832_v58 = vmul.f32 1.442695, %v811_v55 }
 0x3fe   :  { %v867_v59 = vsel %vm413_vm6, %v3540_v29, 0.0 }
 0x3ff   :  { %2823 = vpow2.f32 %v832_v58  ;;  %868 = vadd.xlane.f32.xlu2 %v867_v59 }
 0x402   :  { %v773_v8 = vpop.xlane.xlu0 %772 }
 0x403   :  { %v812_v61 = vsub.f32 %v3442_v20, %v773_v8 }
 0x405   :  { %v3545_v0 = vpop.eup %2823  ;;  %v834_v1 = vmul.f32 1.442695, %v812_v61 }
 0x406   :  { %v870_v3 = vsel %vm413_vm6, %v3545_v0, 0.0 }
 0x407   :  { %2825 = vpow2.f32 %v834_v1  ;;  %871 = vadd.xlane.f32.xlu2 %v870_v3 }
 0x408   :  { %2748 = vrot.lane.b32.xlu1 %v3254_v22, %s2929_s28 }
 0x40a   :  { %v776_v7 = vpop.xlane.xlu2 %775 }
 0x40b   :  { %v813_v20 = vsub.f32 %v3449_v27, %v776_v7 }
 0x40d   :  { %v3551_v9 = vpop.eup %2825  ;;  %v836_v10 = vmul.f32 1.442695, %v813_v20 }
 0x40e   :  { %v873_v4 = vsel %vm413_vm6, %v3551_v9, 0.0 }
 0x40f   :  { %874 = vadd.xlane.f32.xlu0 %v873_v4  ;;  %2827 = vpow2.f32 %v836_v10 }
 0x412   :  { %v779_v11 = vpop.xlane.xlu1 %778 }
 0x413   :  { %v814_v12 = vsub.f32 %v3456_v34, %v779_v11 }
 0x415   :  { %v838_v16 = vmul.f32 1.442695, %v814_v12  ;;  %v3561_v17 = vpop.eup %2827 }
 0x417   :  { %2829 = vpow2.f32 %v838_v16 }
 0x41a   :  { %v782_v15 = vpop.xlane.xlu0 %781 }
 0x41b   :  { %v815_v18 = vsub.f32 %v3463_v40, %v782_v15 }
 0x41d   :  { %v840_v21 = vmul.f32 1.442695, %v815_v18  ;;  %v3568_v23 = vpop.eup %2829 }
 0x41e   :  { %v879_v30 = vsel %vm413_vm6, %v3568_v23, 0.0 }
 0x41f   :  { %1091 = vrot.lane.b32.xlu2 %v3275_v14, %s2930_s18  ;;  %v876_v14 = vsel %vm413_vm6, %v3561_v17, 0.0  ;;  %2831 = vpow2.f32 %v840_v21 }
 0x423   :  { %2743 = vrot.lane.b32.xlu0 %v3266_v28, %s2930_s18  ;;  %v785_v28 = vpop.xlane.xlu0 %784 }
 0x424   :  { %v816_v34 = vsub.f32 %v3470_v46, %v785_v28 }
 0x425   :  { %v3574_v33 = vpop.eup %2831 }
 0x426   :  { %v842_v31 = vmul.f32 1.442695, %v816_v34  ;;  %v882_v38 = vsel %vm413_vm6, %v3574_v33, 0.0 }
 0x428   :  { %2833 = vpow2.f32 %v842_v31 }
 0x42a   :  { %v788_v26 = vpop.xlane.xlu2 %787 }
 0x42b   :  { %v817_v40 = vsub.f32 %v3477_v51, %v788_v26 }
 0x42d   :  { %v844_v35 = vmul.f32 1.442695, %v817_v40 }
 0x42e   :  { %v3579_v42 = vpop.eup %2833 }
 0x42f   :  { %2835 = vpow2.f32 %v844_v35  ;;  %v885_v45 = vsel %vm413_vm6, %v3579_v42, 0.0 }
 0x432   :  { %877 = vadd.xlane.f32.xlu1 %v876_v14  ;;  %v3566_v27 = vpop.xlane.xlu1 %790 }
 0x435   :  { %v3582_v43 = vpop.eup %2835 }
 0x436   :  { %v888_v48 = vsel %vm413_vm6, %v3582_v43, 0.0 }
 0x43a   :  { %880 = vadd.xlane.f32.xlu1 %v879_v30  ;;  %v794_v32 = vpop.xlane.xlu1 %793 }
 0x43b   :  { %v819_v36 = vsub.f32 %v3491_v63, %v794_v32 }
 0x43d   :  { %v848_v46 = vmul.f32 1.442695, %v819_v36  ;;  %v818_v36 = vsub.f32 %v3484_v24, %v3566_v27 }
 0x43f   :  { %2837 = vpow2.f32 %v848_v46 }
 0x442   :  { %883 = vadd.xlane.f32.xlu1 %v882_v38  ;;  %v797_v41 = vpop.xlane.xlu2 %796 }
 0x443   :  { %v820_v51 = vsub.f32 %v3498_v5, %v797_v41 }
 0x445   :  { %v850_v19 = vmul.f32 1.442695, %v820_v51  ;;  %v3589_v53 = vpop.eup %2837  ;;  %v846_v51 = vmul.f32 1.442695, %v818_v36 }
 0x446   :  { %v894_v5 = vsel %vm413_vm6, %v3589_v53, 0.0 }
 0x44a   :  { %v800_v60 = vpop.xlane.xlu1 %799  ;;  %886 = vadd.xlane.f32.xlu1 %v885_v45 }
 0x44b   :  { %v821_v63 = vsub.f32 %v3505_v13, %v800_v60 }
 0x44d   :  { %v852_v49 = vmul.f32 1.442695, %v821_v63  ;;  %889 = vadd.xlane.f32.xlu0 %v888_v48 }
 0x44f   :  { %2839 = vpow2.f32 %v852_v49 }
 0x450   :  { %2841 = vpow2.f32 %v850_v19 }
 0x452   :  { %v803_v54 = vpop.xlane.xlu1 %802  ;;  %895 = vadd.xlane.f32.xlu1 %v894_v5 }
 0x453   :  { %v822_v2 = vsub.f32 %v3513_v25, %v803_v54 }
 0x455   :  { %v3594_v55 = vpop.eup %2839  ;;  %v854_v13 = vmul.f32 1.442695, %v822_v2 }
 0x456   :  { %v3596_v58 = vpop.eup %2841  ;;  %v900_v59 = vsel %vm413_vm6, %v3594_v55, 0.0 }
 0x457   :  { %2843 = vpow2.f32 %v854_v13  ;;  %901 = vadd.xlane.f32.xlu2 %v900_v59  ;;  %v897_v8 = vsel %vm413_vm6, %v3596_v58, 0.0 }
 0x45a   :  { %v860_v61 = vpop.xlane.xlu0 %859  ;;  %898 = vadd.xlane.f32.xlu1 %v897_v8  ;;  %v806_v1 = vpop.xlane.xlu1 %805 }
 0x45b   :  { %2845 = vrcp.f32 %v860_v61  ;;  %v823_v3 = vsub.f32 %v3521_v37, %v806_v1 }
 0x45d   :  { %v3603_v25 = vpop.eup %2843  ;;  %v856_v4 = vmul.f32 1.442695, %v823_v3 }
 0x45e   :  { %v903_v7 = vsel %vm413_vm6, %v3603_v25, 0.0 }
 0x45f   :  { %2847 = vpow2.f32 %v856_v4  ;;  %904 = vadd.xlane.f32.xlu2 %v903_v7 }
 0x461   :  { %v2846_v20 = vpop.eup %2845 }
 0x462   :  { %v926_v10 = vmul.f32 %v2846_v20, %v3523_v57  ;;  %v863_v11 = vpop.xlane.xlu1 %862 }
 0x463   :  { %2849 = vrcp.f32 %v863_v11 }
 0x464   :  { %2611 = vmatmul.msk.f32.vlgmr.msra.gmra.mxu2 %vm413_vm6, %v926_v10 }
 0x465   :  { %v3609_v12 = vpop.eup %2847 }
 0x466   :  { %v906_v37 = vsel %vm413_vm6, %v3609_v12, 0.0 }
 0x467   :  { %907 = vadd.xlane.f32.xlu0 %v906_v37 }
 0x469   :  { %v2850_v15 = vpop.eup %2849 }
 0x46a   :  { %v866_v16 = vpop.xlane.xlu0 %865  ;;  %v927_v18 = vmul.f32 %v2850_v15, %v3530_v47 }
 0x46b   :  { %2851 = vrcp.f32 %v866_v16 }
 0x46c   :  { %2612 = vmatmul.msk.f32.gmra.mxu2 %vm413_vm6, %v927_v18 }
 0x471   :  { %v2852_v14 = vpop.eup %2851 }
 0x472   :  { %v869_v21 = vpop.xlane.xlu2 %868  ;;  %v928_v57 = vmul.f32 %v2852_v14, %v3535_v52 }
 0x473   :  { %2853 = vrcp.f32 %v869_v21  ;;  %2753 = vrot.lane.b32.xlu1 %v3254_v22, %s2930_s18 }
 0x474   :  { %2613 = vmatmul.msk.f32.gmra.mxu2 %vm413_vm6, %v928_v57 }
 0x479   :  { %v2854_v28 = vpop.eup %2853 }
 0x47a   :  { %v872_v34 = vpop.xlane.xlu2 %871  ;;  %v2749_v26 = vpop.permute.xlu1 %2748  ;;  %v929_v30 = vmul.f32 %v2854_v28, %v3540_v29 }
 0x47b   :  { %2855 = vrcp.f32 %v872_v34  ;;  %v2750_v47 = vunpack.i.l.bf16 %v2749_v26  ;;  %v2751_v40 = vunpack.i.h.bf16 %v2749_v26 }
 0x47c   :  { %2614 = vmatmul.msk.f32.gmra.mxu2 %vm413_vm6, %v929_v30 }
 0x47d   :  { %1199 = vmatpush.msrb.mxu2 %v2750_v47 }
 0x47f   :  { %1200 = vmatpush.msrb.mxu2 %v2751_v40 }
 0x481   :  { %v2856_v31 = vpop.eup %2855 }
 0x482   :  { %v875_v52 = vpop.xlane.xlu0 %874  ;;  %v1092_v32 = vpop.permute.xlu2 %1091  ;;  %v930_v35 = vmul.f32 %v2856_v31, %v3545_v0 }
 0x483   :  { %2857 = vrcp.f32 %v875_v52  ;;  %2616 = vmatpush.msk.msra.mxu0 %vm465_vm5, %v1092_v32 }
 0x484   :  { %2615 = vmatmul.msk.f32.gmra.mxu2 %vm413_vm6, %v930_v35  ;;  %v949_v38 = vrot.slane %v930_v35, 2  ;;  %2859 = vpow2.f32 %v846_v51 }
 0x489   :  { %v2858_v22 = vpop.eup %2857 }
 0x48a   :  { %v931_v29 = vmul.f32 %v2858_v22, %v3551_v9  ;;  %v3629_v63 = vpop.eup %2859 }
 0x48b   :  { %v891_v9 = vsel %vm413_vm6, %v3629_v63, 0.0 }
 0x48c   :  { %v950_v46 = vrot.slane %v931_v29, 2 }
 0x48e   :  { %v951_v41 = vsel %vm948_vm7, %v949_v38, %v950_v46 }
 0x48f   :  { %2605 = vmatmul.msk.f32.vlgmr.msrb.gmra.mxu0 %vm413_vm6, %v951_v41 }
 0x495   :  { %v2744_v0 = vpop.permute.xlu0 %2743 }
 0x496   :  { %v2745_v45 = vunpack.i.l.bf16 %v2744_v0  ;;  %v2746_v60 = vunpack.i.h.bf16 %v2744_v0 }
 0x498   :  { %1121 = vmatpush.msra.mxu0 %v2745_v45 }
 0x49a   :  { %1122 = vmatpush.msra.mxu0 %v2746_v60 }
 0x49d   :  { %892 = vadd.xlane.f32.xlu1 %v891_v9 }
 0x4a5   :  { %v878_v24 = vpop.xlane.xlu1 %877 }
 0x4a6   :  { %2861 = vrcp.f32 %v878_v24 }
 0x4ac   :  { %v2862_v27 = vpop.eup %2861 }
 0x4ad   :  { %v881_v19 = vpop.xlane.xlu1 %880  ;;  %v932_v48 = vmul.f32 %v2862_v27, %v3561_v17 }
 0x4ae   :  { %2863 = vrcp.f32 %v881_v19 }
 0x4af   :  { %v952_v49 = vrot.slane %v932_v48, 2 }
 0x4b1   :  { %v953_v5 = vsel %vm948_vm7, %v950_v46, %v952_v49 }
 0x4b2   :  { %2606 = vmatmul.msk.f32.gmra.mxu0 %vm413_vm6, %v953_v5 }
 0x4b4   :  { %v2864_v54 = vpop.eup %2863 }
 0x4b5   :  { %v884_v2 = vpop.xlane.xlu1 %883  ;;  %v933_v13 = vmul.f32 %v2864_v54, %v3568_v23 }
 0x4b6   :  { %2865 = vrcp.f32 %v884_v2 }
 0x4b7   :  { %v954_v59 = vrot.slane %v933_v13, 2 }
 0x4b9   :  { %v955_v8 = vsel %vm948_vm7, %v952_v49, %v954_v59 }
 0x4ba   :  { %2607 = vmatmul.msk.f32.gmra.mxu0 %vm413_vm6, %v955_v8 }
 0x4bc   :  { %v2866_v61 = vpop.eup %2865 }
 0x4bd   :  { %v934_v1 = vmul.f32 %v2866_v61, %v3574_v33  ;;  %v887_v17 = vpop.xlane.xlu1 %886 }
 0x4bf   :  { %v956_v3 = vrot.slane %v934_v1, 2  ;;  %v1074_v29 = vrot.slane %v934_v1, 4 }
 0x4c0   :  { %v890_v15 = vpop.xlane.xlu0 %889 }
 0x4c1   :  { %v957_v4 = vsel %vm948_vm7, %v954_v59, %v956_v3 }
 0x4c2   :  { %2608 = vmatmul.msk.f32.gmra.mxu0 %vm413_vm6, %v957_v4 }
 0x4c5   :  { %v896_v7 = vpop.xlane.xlu1 %895 }
 0x4c6   :  { %2867 = vrcp.f32 %v896_v7 }
 0x4ca   :  { %2609 = vmatmul.msk.f32.gmra.mxu0 %vm413_vm6, %v956_v3  ;;  %v902_v23 = vpop.xlane.xlu2 %901 }
 0x4cc   :  { %v2868_v10 = vpop.eup %2867 }
 0x4cd   :  { %v899_v20 = vpop.xlane.xlu1 %898  ;;  %v938_v11 = vmul.f32 %v2868_v10, %v3589_v53 }
 0x4ce   :  { %2869 = vrcp.f32 %v899_v20 }
 0x4cf   :  { %2871 = vrcp.f32 %v902_v23  ;;  %v1150_v18 = vrot.slane %v938_v11, 6  ;;  %v1081_v19 = vrot.slane %v938_v11, 4  ;;  %v2794_v11 = vld [vmem:[%s4208_s1 + $0x1d0] ss:$0 sm:$0xff] }
 0x4d2   :  { %v905_v16 = vpop.xlane.xlu2 %904 }
 0x4d3   :  { %2873 = vrcp.f32 %v905_v16 }
 0x4d4   :  { %v2870_v37 = vpop.eup %2869  ;;  %2875 = vrcp.f32 %v887_v17 }
 0x4d5   :  { %v939_v33 = vmul.f32 %v2870_v37, %v3596_v58  ;;  %v2872_v21 = vpop.eup %2871 }
 0x4d6   :  { %v940_v28 = vmul.f32 %v2872_v21, %v3594_v55 }
 0x4d7   :  { %v1151_v14 = vrot.slane %v939_v33, 6 }
 0x4d8   :  { %v1153_v53 = vrot.slane %v940_v28, 6 }
 0x4d9   :  { %v1152_v57 = vsel %vm465_vm5, %v1150_v18, %v1151_v14  ;;  %v2874_v26 = vpop.eup %2873 }
 0x4da   :  { %2623 = vmatmul.msk.f32.vlgmr.msrb.gmra.mxu2 %vm413_vm6, %v1152_v57  ;;  %v908_v34 = vpop.xlane.xlu0 %907  ;;  %v2876_v30 = vpop.eup %2875  ;;  %v1154_v58 = vsel %vm465_vm5, %v1151_v14, %v1153_v53  ;;  %v941_v47 = vmul.f32 %v2874_v26, %v3603_v25 }
 0x4db   :  { %2877 = vrcp.f32 %v908_v34  ;;  %v935_v40 = vmul.f32 %v2876_v30, %v3579_v42 }
 0x4dc   :  { %2879 = vrcp.f32 %v890_v15  ;;  %v1155_v52 = vrot.slane %v941_v47, 6 }
 0x4dd   :  { %v1075_v35 = vrot.slane %v935_v40, 4 }
 0x4de   :  { %v1156_v38 = vsel %vm465_vm5, %v1153_v53, %v1155_v52 }
 0x4df   :  { %v1076_v42 = vsel %vm1073_vm8, %v1074_v29, %v1075_v35 }
 0x4e1   :  { %v2878_v32 = vpop.eup %2877 }
 0x4e2   :  { %2624 = vmatmul.msk.f32.gmra.mxu2 %vm413_vm6, %v1154_v58  ;;  %v2880_v55 = vpop.eup %2879  ;;  %v942_v46 = vmul.f32 %v2878_v32, %v3609_v12 }
 0x4e3   :  { %v936_v25 = vmul.f32 %v2880_v55, %v3582_v43 }
 0x4e4   :  { %v1157_v41 = vrot.slane %v942_v46, 6 }
 0x4e5   :  { %v2754_v31 = vpop.permute.xlu1 %2753  ;;  %v1077_v51 = vrot.slane %v936_v25, 4 }
 0x4e6   :  { %v2755_v22 = vunpack.i.l.bf16 %v2754_v31  ;;  %v2756_v36 = vunpack.i.h.bf16 %v2754_v31  ;;  %v1158_v0 = vsel %vm465_vm5, %v1155_v52, %v1157_v41 }
 0x4e7   :  { %v1078_v45 = vsel %vm1073_vm8, %v1075_v35, %v1077_v51  ;;  %v1054_v27 = vpop.f32.mrf.mxu2 }
 0x4e8   :  { %1123 = vmatpush.msra.mxu0 %v2755_v22 }
 0x4ea   :  { %1124 = vmatpush.msra.mxu0 %v2756_v36  ;;  %2625 = vmatmul.msk.f32.gmra.mxu2 %vm413_vm6, %v1156_v38 }
 0x4eb   :  { %2617 = vmatmul.msk.f32.vlgmr.msra.gmra.mxu0 %vm413_vm6, %v1076_v42 }
 0x4ef   :  { %v1057_v5 = vpop.f32.mrf.mxu2 }
 0x4f2   :  { %2626 = vmatmul.msk.f32.gmra.mxu2 %vm413_vm6, %v1158_v0 }
 0x4f3   :  { %2618 = vmatmul.msk.f32.gmra.mxu0 %vm413_vm6, %v1078_v45 }
 0x4f7   :  { %v1060_v2 = vpop.f32.mrf.mxu2 }
 0x4fa   :  { %2627 = vmatmul.msk.f32.gmra.mxu2 %vm413_vm6, %v1157_v41 }
 0x50c   :  { %v1006_v49 = vpop.f32.mrf.mxu0 }
 0x50d   :  { %v1055_v4 = vadd.f32 %v1054_v27, %v1006_v49 }
 0x510   :  { %v893_v12 = vpop.xlane.xlu1 %892 }
 0x511   :  { %2881 = vrcp.f32 %v893_v12 }
 0x517   :  { %v2882_v60 = vpop.eup %2881 }
 0x518   :  { %v937_v9 = vmul.f32 %v2882_v60, %v3629_v63  ;;  %v1063_v63 = vpop.f32.mrf.mxu2 }
 0x51a   :  { %v1079_v43 = vrot.slane %v937_v9, 4 }
 0x51c   :  { %v1080_v24 = vsel %vm1073_vm8, %v1077_v51, %v1079_v43  ;;  %v1082_v48 = vsel %vm1073_vm8, %v1079_v43, %v1081_v19 }
 0x51d   :  { %2619 = vmatmul.msk.f32.gmra.mxu0 %vm413_vm6, %v1080_v24 }
 0x520   :  { %v1066_v1 = vpop.f32.mrf.mxu2 }
 0x525   :  { %2620 = vmatmul.msk.f32.gmra.mxu0 %vm413_vm6, %v1082_v48 }
 0x52d   :  { %2621 = vmatmul.msk.f32.gmra.mxu0 %vm413_vm6, %v1081_v19 }
 0x52f   :  { %v1009_v54 = vpop.f32.mrf.mxu0 }
 0x530   :  { %v1058_v15 = vadd.f32 %v1057_v5, %v1009_v54 }
 0x537   :  { %v1012_v13 = vpop.f32.mrf.mxu0 }
 0x538   :  { %v1061_v59 = vadd.f32 %v1060_v2, %v1012_v13 }
 0x53f   :  { %v1015_v8 = vpop.f32.mrf.mxu0 }
 0x540   :  { %v1064_v61 = vadd.f32 %v1063_v63, %v1015_v8 }
 0x547   :  { %v1018_v17 = vpop.f32.mrf.mxu0 }
 0x548   :  { %v1067_v3 = vadd.f32 %v1066_v1, %v1018_v17 }
 0x55d   :  { %v1202_v7 = vpop.f32.mrf.mxu2 }
 0x565   :  { %v1205_v21 = vpop.f32.mrf.mxu2 }
 0x568   :  { %v1126_v23 = vpop.f32.mrf.mxu0 }
 0x569   :  { %v1141_v20 = vadd.f32 %v1126_v23, %v1055_v4  ;;  %v1361_v4 = vld [vmem:[%s4210_s2 + $0x18] sm:$0xff]  ;;  %v1359_v23 = vld [vmem:[%s4210_s2 + $0x8] sm:$0xff] }
 0x56a   :  { %1391 = vmatpush.msrb.mxu0 %v1361_v4 }
 0x56b   :  { %v1217_v10 = vadd.f32 %v1202_v7, %v1141_v20  ;;  %v1360_v7 = vld [vmem:[%s4210_s2 + $0x10] sm:$0xff]  ;;  %v1358_v20 = vld [vmem:[%s4210_s2] sm:$0xff] }
 0x56c   :  { %1392 = vmatpush.msrb.mxu0 %v1360_v7 }
 0x56d   :  { %v1222_v37 = vadd.f32 %v1217_v10, %v3084_v39  ;;  %v1208_v39 = vpop.f32.mrf.mxu2 }
 0x56e   :  { %1393 = vmatpush.msrb.mxu0 %v1359_v23 }
 0x56f   :  { %v3673_v33 = vadd.f32 %v2794_v11, %v1222_v37 }
 0x570   :  { %v1129_v16 = vpop.f32.mrf.mxu0  ;;  %1394 = vmatpush.msrb.mxu0 %v1358_v20 }
 0x571   :  { %v1142_v18 = vadd.f32 %v1129_v16, %v1058_v15  ;;  %v1236_v14 = vsel %vm138_vm1, %v3673_v33, 0.0 }
 0x572   :  { %1237 = vadd.xlane.f32.xlu2 %v1236_v14 }
 0x573   :  { %v1218_v57 = vadd.f32 %v1205_v21, %v1142_v18 }
 0x575   :  { %v1223_v28 = vadd.f32 %v1218_v57, %v3091_v44  ;;  %v1211_v31 = vpop.f32.mrf.mxu2 }
 0x577   :  { %v3678_v34 = vadd.f32 %v2794_v11, %v1223_v28 }
 0x579   :  { %v1239_v26 = vsel %vm138_vm1, %v3678_v34, 0.0 }
 0x57a   :  { %1240 = vadd.xlane.f32.xlu0 %v1239_v26 }
 0x59a   :  { %v1132_v30 = vpop.f32.mrf.mxu0 }
 0x59b   :  { %v1143_v53 = vadd.f32 %v1132_v30, %v1061_v59 }
 0x59d   :  { %v1219_v58 = vadd.f32 %v1208_v39, %v1143_v53 }
 0x59f   :  { %v1224_v47 = vadd.f32 %v1219_v58, %v3098_v50  ;;  %v1214_v50 = vpop.f32.mrf.mxu2  ;;  %v3745_v58 = vld [vmem:[%s4208_s1 + $0x1d8] ss:$0 sm:$0xff] }
 0x5a1   :  { %v3683_v40 = vadd.f32 %v2794_v11, %v1224_v47 }
 0x5a2   :  { %v1135_v52 = vpop.f32.mrf.mxu0 }
 0x5a3   :  { %v1144_v32 = vadd.f32 %v1135_v52, %v1064_v61  ;;  %v1242_v44 = vsel %vm138_vm1, %v3683_v40, 0.0 }
 0x5a4   :  { %1243 = vadd.xlane.f32.xlu2 %v1242_v44 }
 0x5a5   :  { %v1220_v35 = vadd.f32 %v1211_v31, %v1144_v32  ;;  %v3750_v32 = vld [vmem:[%s4208_s1 + $0x1e0] ss:$0 sm:$0xff] }
 0x5a7   :  { %v1225_v22 = vadd.f32 %v1220_v35, %v3105_v56 }
 0x5a9   :  { %v3688_v55 = vadd.f32 %v2794_v11, %v1225_v22 }
 0x5aa   :  { %v1138_v29 = vpop.f32.mrf.mxu0 }
 0x5ab   :  { %v1145_v36 = vadd.f32 %v1138_v29, %v1067_v3  ;;  %v1245_v38 = vsel %vm138_vm1, %v3688_v55, 0.0 }
 0x5ac   :  { %1246 = vadd.xlane.f32.xlu1 %v1245_v38 }
 0x5ad   :  { %v1221_v46 = vadd.f32 %v1214_v50, %v1145_v36 }
 0x5af   :  { %v1226_v42 = vadd.f32 %v1221_v46, %v3112_v62 }
 0x5b1   :  { %v3693_v25 = vadd.f32 %v2794_v11, %v1226_v42 }
 0x5b3   :  { %v1248_v41 = vsel %vm151_vm2, %v3693_v25, 0.0 }
 0x5b4   :  { %1249 = vadd.xlane.f32.xlu0 %v1248_v41 }
 0x5e5   :  { %v1238_v51 = vpop.xlane.xlu2 %1237 }
 0x5e6   :  { %v1251_v56 = vmul.f32 %v1238_v51, %v3116_v6 }
 0x5e8   :  { %v1256_v0 = vsub.f32 %v3673_v33, %v1251_v56 }
 0x5ea   :  { %v1261_v45 = vmul.f32 %v1256_v0, %v1256_v0 }
 0x5ec   :  { %v1266_v12 = vsel %vm138_vm1, %v1261_v45, 0.0 }
 0x5ed   :  { %v1241_v60 = vpop.xlane.xlu0 %1240  ;;  %1267 = vadd.xlane.f32.xlu2 %v1266_v12 }
 0x5ee   :  { %v1252_v9 = vmul.f32 %v1241_v60, %v3116_v6 }
 0x5f0   :  { %v3702_v62 = vsub.f32 %v3678_v34, %v1252_v9 }
 0x5f2   :  { %v1262_v43 = vmul.f32 %v3702_v62, %v3702_v62 }
 0x5f4   :  { %v1269_v24 = vsel %vm138_vm1, %v1262_v43, 0.0 }
 0x5f5   :  { %1270 = vadd.xlane.f32.xlu1 %v1269_v24 }
 0x617   :  { %v1244_v27 = vpop.xlane.xlu2 %1243 }
 0x618   :  { %v1253_v19 = vmul.f32 %v1244_v27, %v3116_v6 }
 0x61a   :  { %v3709_v48 = vsub.f32 %v3683_v40, %v1253_v19 }
 0x61c   :  { %v1263_v49 = vmul.f32 %v3709_v48, %v3709_v48 }
 0x61e   :  { %v1272_v5 = vsel %vm138_vm1, %v1263_v49, 0.0 }
 0x61f   :  { %v1247_v54 = vpop.xlane.xlu1 %1246  ;;  %1273 = vadd.xlane.f32.xlu0 %v1272_v5 }
 0x620   :  { %v1254_v2 = vmul.f32 %v1247_v54, %v3116_v6 }
 0x622   :  { %v3716_v13 = vsub.f32 %v3688_v55, %v1254_v2 }
 0x624   :  { %v1264_v59 = vmul.f32 %v3716_v13, %v3716_v13 }
 0x626   :  { %v1275_v63 = vsel %vm138_vm1, %v1264_v59, 0.0 }
 0x627   :  { %1276 = vadd.xlane.f32.xlu2 %v1275_v63  ;;  %v1250_v8 = vpop.xlane.xlu0 %1249 }
 0x628   :  { %v1255_v61 = vmul.f32 %v1250_v8, %v3116_v6 }
 0x62a   :  { %v3723_v1 = vsub.f32 %v3693_v25, %v1255_v61 }
 0x62c   :  { %v1265_v17 = vmul.f32 %v3723_v1, %v3723_v1 }
 0x62e   :  { %v1278_v3 = vsel %vm151_vm2, %v1265_v17, 0.0 }
 0x62f   :  { %1279 = vadd.xlane.f32.xlu1 %v1278_v3 }
 0x660   :  { %v1268_v10 = vpop.xlane.xlu2 %1267 }
 0x661   :  { %v1281_v11 = vmul.f32 %v1268_v10, %v3116_v6 }
 0x663   :  { %v1286_v37 = vadd.f32 1e-06, %v1281_v11 }
 0x665   :  { %2883 = vrsqrt.f32 %v1286_v37  ;;  %vm1297_vm10 = vweird.f32 %v1286_v37 }
 0x668   :  { %v1271_v15 = vpop.xlane.xlu1 %1270 }
 0x669   :  { %v1282_v16 = vmul.f32 %v1271_v15, %v3116_v6 }
 0x66b   :  { %v2884_v18 = vpop.eup %2883  ;;  %v1287_v14 = vadd.f32 1e-06, %v1282_v16 }
 0x66c   :  { %v1292_v21 = vmul.f32 %v2884_v18, %v1286_v37  ;;  %vm1298_vm9 = vweird.f32 %v2884_v18 }
 0x66d   :  { %2885 = vrsqrt.f32 %v1287_v14  ;;  %vm1299_vm11 = vmor %vm1297_vm10, %vm1298_vm9  ;;  %vm1307_vm13 = vweird.f32 %v1287_v14 }
 0x66e   :  { %v1293_v57 = vmul.f32 %v2884_v18, %v1292_v21 }
 0x670   :  { %v1294_v28 = vmul.f32 0.5, %v1293_v57 }
 0x672   :  { %v1295_v26 = vsub.f32 1.5, %v1294_v28 }
 0x673   :  { %v2886_v39 = vpop.eup %2885 }
 0x674   :  { %v1296_v30 = vmul.f32 %v2884_v18, %v1295_v26  ;;  %v1302_v53 = vmul.f32 %v2886_v39, %v1287_v14  ;;  %vm1308_vm12 = vweird.f32 %v2886_v39 }
 0x675   :  { %vm1309_vm14 = vmor %vm1307_vm13, %vm1308_vm12 }
 0x676   :  { %v1300_v47 = vsel %vm1299_vm11, %v2884_v18, %v1296_v30  ;;  %v1303_v31 = vmul.f32 %v2886_v39, %v1302_v53  ;;  %v1553_v30 = vld [vmem:[%s4208_s1 + $0x248] sm:$0xff]  ;;  %v1552_v53 = vld [vmem:[%s4208_s1 + $0x240] sm:$0xff] }
 0x677   :  { %v1341_v52 = vmul.f32 %v1300_v47, %v1256_v0  ;;  %v1550_v47 = vld [vmem:[%s4208_s1 + $0x230] sm:$0xff] }
 0x678   :  { %v1304_v44 = vmul.f32 0.5, %v1303_v31  ;;  %v3798_v31 = vld [vmem:[%s4210_s2 + $0x20] ss:$0 sm:$0xff] }
 0x679   :  { %v1347_v35 = vmul.f32 %v3745_v58, %v1341_v52  ;;  %v1549_v52 = vld [vmem:[%s4208_s1 + $0x228] sm:$0xff] }
 0x67a   :  { %v1305_v22 = vsub.f32 1.5, %v1304_v44 }
 0x67b   :  { %v1353_v29 = vadd.f32 %v3750_v32, %v1347_v35 }
 0x67c   :  { %v1306_v36 = vmul.f32 %v2886_v39, %v1305_v22  ;;  %v1547_v22 = vld [vmem:[%s4208_s1 + $0x218] sm:$0xff] }
 0x67d   :  { %2628 = vmatmul.msk.f32.vlgmr.msrb.gmra.mxu0 %vm138_vm1, %v1353_v29 }
 0x67e   :  { %v1310_v38 = vsel %vm1309_vm14, %v2886_v39, %v1306_v36  ;;  %v1555_v39 = vld [vmem:[%s4208_s1 + $0x258] sm:$0xff]  ;;  %v1546_v36 = vld [vmem:[%s4208_s1 + $0x210] sm:$0xff] }
 0x67f   :  { %v1342_v50 = vmul.f32 %v1310_v38, %v3702_v62 }
 0x681   :  { %v1348_v46 = vmul.f32 %v3745_v58, %v1342_v50  ;;  %v1545_v50 = vld [vmem:[%s4208_s1 + $0x208] sm:$0xff] }
 0x683   :  { %v1354_v42 = vadd.f32 %v3750_v32, %v1348_v46 }
 0x685   :  { %2629 = vmatmul.msk.f32.gmra.mxu0 %vm138_vm1, %v1354_v42  ;;  %v1544_v42 = vld [vmem:[%s4208_s1 + $0x200] sm:$0xff] }
 0x692   :  { %v1274_v41 = vpop.xlane.xlu0 %1273 }
 0x693   :  { %v1283_v51 = vmul.f32 %v1274_v41, %v3116_v6 }
 0x695   :  { %v1288_v56 = vadd.f32 1e-06, %v1283_v51 }
 0x697   :  { %2887 = vrsqrt.f32 %v1288_v56  ;;  %vm1317_vm0 = vweird.f32 %v1288_v56 }
 0x69a   :  { %v1277_v0 = vpop.xlane.xlu2 %1276 }
 0x69b   :  { %v1284_v45 = vmul.f32 %v1277_v0, %v3116_v6  ;;  %v1543_v0 = vld [vmem:[%s4208_s1 + $0x1f8] sm:$0xff] }
 0x69d   :  { %v2888_v12 = vpop.eup %2887  ;;  %v1289_v60 = vadd.f32 1e-06, %v1284_v45 }
 0x69e   :  { %v1312_v9 = vmul.f32 %v2888_v12, %v1288_v56  ;;  %vm1318_vm15 = vweird.f32 %v2888_v12 }
 0x69f   :  { %2889 = vrsqrt.f32 %v1289_v60  ;;  %vm1319_vm3 = vmor %vm1317_vm0, %vm1318_vm15  ;;  %vm1327_vm8 = vweird.f32 %v1289_v60 }
 0x6a0   :  { %v1313_v43 = vmul.f32 %v2888_v12, %v1312_v9  ;;  %v1541_v9 = vld [vmem:[%s4208_s1 + $0x1e8] sm:$0xff] }
 0x6a2   :  { %v1314_v62 = vmul.f32 0.5, %v1313_v43  ;;  %v1280_v24 = vpop.xlane.xlu1 %1279 }
 0x6a3   :  { %v1285_v27 = vmul.f32 %v1280_v24, %v3116_v6 }
 0x6a4   :  { %v1315_v19 = vsub.f32 1.5, %v1314_v62 }
 0x6a5   :  { %v2890_v49 = vpop.eup %2889  ;;  %v1290_v5 = vadd.f32 1e-06, %v1285_v27 }
 0x6a6   :  { %v1316_v54 = vmul.f32 %v2888_v12, %v1315_v19  ;;  %v1322_v2 = vmul.f32 %v2890_v49, %v1289_v60  ;;  %vm1328_vm4 = vweird.f32 %v2890_v49 }
 0x6a7   :  { %2891 = vrsqrt.f32 %v1290_v5  ;;  %vm1329_vm9 = vmor %vm1327_vm8, %vm1328_vm4  ;;  %vm1337_vm11 = vweird.f32 %v1290_v5 }
 0x6a8   :  { %v1320_v59 = vsel %vm1319_vm3, %v2888_v12, %v1316_v54  ;;  %v1323_v63 = vmul.f32 %v2890_v49, %v1322_v2  ;;  %v1542_v12 = vld [vmem:[%s4208_s1 + $0x1f0] sm:$0xff] }
 0x6a9   :  { %v1343_v8 = vmul.f32 %v1320_v59, %v3709_v48 }
 0x6aa   :  { %v1324_v61 = vmul.f32 0.5, %v1323_v63 }
 0x6ab   :  { %v1349_v17 = vmul.f32 %v3745_v58, %v1343_v8 }
 0x6ac   :  { %v1325_v3 = vsub.f32 1.5, %v1324_v61 }
 0x6ad   :  { %v2892_v4 = vpop.eup %2891  ;;  %v1355_v7 = vadd.f32 %v3750_v32, %v1349_v17 }
 0x6ae   :  { %v1326_v23 = vmul.f32 %v2890_v49, %v1325_v3  ;;  %v1332_v20 = vmul.f32 %v2892_v4, %v1290_v5  ;;  %vm1338_vm10 = vweird.f32 %v2892_v4 }
 0x6af   :  { %2630 = vmatmul.msk.f32.gmra.mxu0 %vm138_vm1, %v1355_v7  ;;  %vm1339_vm12 = vmor %vm1337_vm11, %vm1338_vm10 }
 0x6b0   :  { %v1330_v10 = vsel %vm1329_vm9, %v2890_v49, %v1326_v23  ;;  %v1333_v11 = vmul.f32 %v2892_v4, %v1332_v20 }
 0x6b1   :  { %v1344_v37 = vmul.f32 %v1330_v10, %v3716_v13  ;;  %v1556_v13 = vld [vmem:[%s4208_s1 + $0x260] sm:$0xff] }
 0x6b2   :  { %v1334_v15 = vmul.f32 0.5, %v1333_v11  ;;  %1557 = vmatpush.msra.mxu2 %v1556_v13 }
 0x6b3   :  { %v1350_v48 = vmul.f32 %v3745_v58, %v1344_v37 }
 0x6b4   :  { %v1335_v16 = vsub.f32 1.5, %v1334_v15  ;;  %1558 = vmatpush.msra.mxu2 %v1555_v39 }
 0x6b5   :  { %v1356_v18 = vadd.f32 %v3750_v32, %v1350_v48 }
 0x6b6   :  { %v1336_v14 = vmul.f32 %v2892_v4, %v1335_v16 }
 0x6b7   :  { %2631 = vmatmul.msk.f32.gmra.mxu0 %vm138_vm1, %v1356_v18 }
 0x6b8   :  { %v1340_v21 = vsel %vm1339_vm12, %v2892_v4, %v1336_v14 }
 0x6b9   :  { %v1345_v57 = vmul.f32 %v1340_v21, %v3723_v1  ;;  %v1554_v1 = vld [vmem:[%s4208_s1 + $0x250] sm:$0xff] }
 0x6ba   :  { %1559 = vmatpush.msra.mxu2 %v1554_v1 }
 0x6bb   :  { %v1351_v28 = vmul.f32 %v3745_v58, %v1345_v57  ;;  %v1551_v58 = vld [vmem:[%s4208_s1 + $0x238] sm:$0xff] }
 0x6bc   :  { %1560 = vmatpush.msra.mxu2 %v1553_v30 }
 0x6bd   :  { %v1357_v26 = vadd.f32 %v3750_v32, %v1351_v28  ;;  %v1548_v32 = vld [vmem:[%s4208_s1 + $0x220] sm:$0xff] }
 0x6be   :  { %1561 = vmatpush.msra.mxu2 %v1552_v53 }
 0x6bf   :  { %2632 = vmatmul.msk.f32.gmra.mxu0 %vm138_vm1, %v1357_v26 }
 0x6c0   :  { %1562 = vmatpush.msra.mxu2 %v1551_v58 }
 0x6c2   :  { %1563 = vmatpush.msra.mxu2 %v1550_v47 }
 0x6c4   :  { %1564 = vmatpush.msra.mxu2 %v1549_v52 }
 0x6c6   :  { %1565 = vmatpush.msra.mxu2 %v1548_v32 }
 0x6c8   :  { %1566 = vmatpush.msra.mxu2 %v1547_v22 }
 0x6ca   :  { %1567 = vmatpush.msra.mxu2 %v1546_v36 }
 0x6cc   :  { %1568 = vmatpush.msra.mxu2 %v1545_v50 }
 0x6ce   :  { %1569 = vmatpush.msra.mxu2 %v1544_v42 }
 0x6d0   :  { %1570 = vmatpush.msra.mxu2 %v1543_v0 }
 0x6d2   :  { %1571 = vmatpush.msra.mxu2 %v1542_v12 }
 0x6d4   :  { %1572 = vmatpush.msra.mxu2 %v1541_v9 }
 0x6fa   :  { %v1396_v44 = vpop.f32.mrf.mxu0 }
 0x6fb   :  { %v1397_v35 = vadd.f32 %v3798_v31, %v1396_v44 }
 0x6fd   :  { %v1416_v29 = vmul.f32 0.70710677, %v1397_v35  ;;  %v1411_v30 = vmul.f32 0.5, %v1397_v35 }
 0x6ff   :  { %v1421_v38 = vand.u32 2147483647, %v1416_v29  ;;  %vm1516_vm13 = vcmp.lt.f32.partialorder %v1416_v29, 0.0 }
 0x701   :  { %v1426_v46 = vmul.f32 0.3275911, %v1421_v38  ;;  %v1486_v24 = vsub.f32 0.0, %v1421_v38 }
 0x702   :  { %v1399_v41 = vpop.f32.mrf.mxu0 }
 0x703   :  { %v1431_v51 = vadd.f32 1.0, %v1426_v46  ;;  %v1400_v56 = vadd.f32 %v3798_v31, %v1399_v41  ;;  %v1491_v5 = vmul.f32 %v1486_v24, %v1421_v38 }
 0x705   :  { %2893 = vrcp.f32 %v1431_v51  ;;  %v1417_v45 = vmul.f32 0.70710677, %v1400_v56  ;;  %v1496_v63 = vmul.f32 1.442695, %v1491_v5  ;;  %v1412_v36 = vmul.f32 0.5, %v1400_v56 }
 0x707   :  { %v1422_v60 = vand.u32 2147483647, %v1417_v45  ;;  %vm1517_vm14 = vcmp.lt.f32.partialorder %v1417_v45, 0.0 }
 0x709   :  { %v1427_v43 = vmul.f32 0.3275911, %v1422_v60  ;;  %v1487_v8 = vsub.f32 0.0, %v1422_v60 }
 0x70b   :  { %v2894_v62 = vpop.eup %2893  ;;  %v1432_v27 = vadd.f32 1.0, %v1427_v43  ;;  %v1492_v7 = vmul.f32 %v1487_v8, %v1422_v60 }
 0x70c   :  { %v1441_v19 = vmul.f32 1.0614054, %v2894_v62 }
 0x70d   :  { %2895 = vrcp.f32 %v1432_v27  ;;  %v1498_v37 = vmul.f32 1.442695, %v1492_v7 }
 0x70e   :  { %v2633_v49 = vadd.f32 -1.4531521, %v1441_v19  ;;  %2897 = vpow2.f32 %v1496_v63 }
 0x70f   :  { %2899 = vpow2.f32 %v1498_v37 }
 0x710   :  { %v1451_v54 = vmul.f32 %v2894_v62, %v2633_v49 }
 0x712   :  { %v1456_v2 = vadd.f32 1.4214138, %v1451_v54 }
 0x713   :  { %v2896_v59 = vpop.eup %2895 }
 0x714   :  { %v1461_v61 = vmul.f32 %v2894_v62, %v1456_v2  ;;  %v1442_v17 = vmul.f32 1.0614054, %v2896_v59  ;;  %v2898_v16 = vpop.eup %2897 }
 0x715   :  { %v2900_v1 = vpop.eup %2899 }
 0x716   :  { %v2638_v3 = vadd.f32 -0.28449672, %v1461_v61  ;;  %v2634_v4 = vadd.f32 -1.4531521, %v1442_v17 }
 0x718   :  { %v1471_v23 = vmul.f32 %v2894_v62, %v2638_v3  ;;  %v1452_v20 = vmul.f32 %v2896_v59, %v2634_v4 }
 0x71a   :  { %v1476_v10 = vadd.f32 0.2548296, %v1471_v23  ;;  %v1457_v11 = vadd.f32 1.4214138, %v1452_v20 }
 0x71c   :  { %v1481_v15 = vmul.f32 %v2894_v62, %v1476_v10  ;;  %v1462_v48 = vmul.f32 %v2896_v59, %v1457_v11 }
 0x71e   :  { %v1506_v18 = vmul.f32 %v2898_v16, %v1481_v15  ;;  %v2639_v14 = vadd.f32 -0.28449672, %v1462_v48 }
 0x720   :  { %v1511_v21 = vsub.f32 1.0, %v1506_v18  ;;  %v1472_v57 = vmul.f32 %v2896_v59, %v2639_v14 }
 0x722   :  { %v1521_v28 = vsub.f32 0.0, %v1511_v21  ;;  %v1477_v26 = vadd.f32 0.2548296, %v1472_v57 }
 0x724   :  { %v1526_v13 = vsel %vm1516_vm13, %v1521_v28, %v1511_v21  ;;  %v1482_v39 = vmul.f32 %v2896_v59, %v1477_v26 }
 0x725   :  { %v1531_v53 = vadd.f32 1.0, %v1526_v13 }
 0x726   :  { %v1507_v58 = vmul.f32 %v2900_v1, %v1482_v39 }
 0x727   :  { %v1536_v47 = vmul.f32 %v1531_v53, %v1411_v30 }
 0x728   :  { %v1512_v52 = vsub.f32 1.0, %v1507_v58 }
 0x729   :  { %1573 = vmatmul.f32.vlgmr.msra.gmra.mxu2 %v1536_v47 }
 0x72a   :  { %v1522_v32 = vsub.f32 0.0, %v1512_v52 }
 0x72c   :  { %v1402_v44 = vpop.f32.mrf.mxu0  ;;  %v1527_v22 = vsel %vm1517_vm14, %v1522_v32, %v1512_v52 }
 0x72d   :  { %v3830_v38 = vadd.f32 %v3798_v31, %v1402_v44  ;;  %v1532_v50 = vadd.f32 1.0, %v1527_v22 }
 0x72f   :  { %v3833_v29 = vmul.f32 0.70710677, %v3830_v38  ;;  %v1537_v46 = vmul.f32 %v1532_v50, %v1412_v36 }
 0x731   :  { %v1423_v35 = vand.u32 2147483647, %v3833_v29  ;;  %1576 = vmatmul.f32.gmra.mxu2 %v1537_v46  ;;  %vm1518_vm15 = vcmp.lt.f32.partialorder %v3833_v29, 0.0 }
 0x733   :  { %v1428_v42 = vmul.f32 0.3275911, %v1423_v35  ;;  %v1488_v43 = vsub.f32 0.0, %v1423_v35 }
 0x734   :  { %v1405_v41 = vpop.f32.mrf.mxu0 }
 0x735   :  { %v1433_v51 = vadd.f32 1.0, %v1428_v42  ;;  %v3837_v0 = vadd.f32 %v3798_v31, %v1405_v41  ;;  %v1493_v5 = vmul.f32 %v1488_v43, %v1423_v35  ;;  %v1413_v35 = vmul.f32 0.5, %v3830_v38 }
 0x737   :  { %2901 = vrcp.f32 %v1433_v51  ;;  %v3840_v56 = vmul.f32 0.70710677, %v3837_v0  ;;  %v1500_v61 = vmul.f32 1.442695, %v1493_v5 }
 0x739   :  { %v1424_v45 = vand.u32 2147483647, %v3840_v56  ;;  %vm1519_vm0 = vcmp.lt.f32.partialorder %v3840_v56, 0.0 }
 0x73b   :  { %v1429_v12 = vmul.f32 0.3275911, %v1424_v45  ;;  %v1489_v17 = vsub.f32 0.0, %v1424_v45 }
 0x73c   :  { %v1408_v60 = vpop.f32.mrf.mxu0 }
 0x73d   :  { %v2902_v9 = vpop.eup %2901  ;;  %v1434_v62 = vadd.f32 1.0, %v1429_v12  ;;  %v3844_v24 = vadd.f32 %v3798_v31, %v1408_v60  ;;  %v1494_v20 = vmul.f32 %v1489_v17, %v1424_v45 }
 0x73e   :  { %v1443_v27 = vmul.f32 1.0614054, %v2902_v9 }
 0x73f   :  { %2903 = vrcp.f32 %v1434_v62  ;;  %v3847_v19 = vmul.f32 0.70710677, %v3844_v24  ;;  %v1502_v16 = vmul.f32 1.442695, %v1494_v20 }
 0x740   :  { %v2635_v49 = vadd.f32 -1.4531521, %v1443_v27 }
 0x741   :  { %v1425_v54 = vand.u32 2147483647, %v3847_v19  ;;  %vm1520_vm3 = vcmp.lt.f32.partialorder %v3847_v19, 0.0 }
 0x742   :  { %v1453_v2 = vmul.f32 %v2902_v9, %v2635_v49  ;;  %v1414_v49 = vmul.f32 0.5, %v3837_v0  ;;  %v2798_v0 = vld [vmem:[%s4208_s1 + $0x268] ss:$0 sm:$0xff] }
 0x743   :  { %v1430_v59 = vmul.f32 0.3275911, %v1425_v54  ;;  %v1490_v18 = vsub.f32 0.0, %v1425_v54 }
 0x744   :  { %v1458_v63 = vadd.f32 1.4214138, %v1453_v2 }
 0x745   :  { %v2904_v8 = vpop.eup %2903  ;;  %v1435_v3 = vadd.f32 1.0, %v1430_v59  ;;  %v1495_v1 = vmul.f32 %v1490_v18, %v1425_v54 }
 0x746   :  { %v1463_v4 = vmul.f32 %v2902_v9, %v1458_v63  ;;  %v1444_v7 = vmul.f32 1.0614054, %v2904_v8 }
 0x747   :  { %2905 = vrcp.f32 %v1435_v3  ;;  %v1504_v44 = vmul.f32 1.442695, %v1495_v1 }
 0x748   :  { %v2640_v31 = vadd.f32 -0.28449672, %v1463_v4  ;;  %v2636_v23 = vadd.f32 -1.4531521, %v1444_v7  ;;  %2907 = vpow2.f32 %v1500_v61 }
 0x749   :  { %2909 = vpow2.f32 %v1502_v16 }
 0x74a   :  { %v1473_v10 = vmul.f32 %v2902_v9, %v2640_v31  ;;  %v1454_v11 = vmul.f32 %v2904_v8, %v2636_v23  ;;  %2911 = vpow2.f32 %v1504_v44 }
 0x74c   :  { %v1478_v37 = vadd.f32 0.2548296, %v1473_v10  ;;  %v1459_v15 = vadd.f32 1.4214138, %v1454_v11 }
 0x74d   :  { %v2906_v48 = vpop.eup %2905 }
 0x74e   :  { %v1483_v14 = vmul.f32 %v2902_v9, %v1478_v37  ;;  %v1464_v21 = vmul.f32 %v2904_v8, %v1459_v15  ;;  %v1445_v57 = vmul.f32 1.0614054, %v2906_v48  ;;  %v2908_v28 = vpop.eup %2907 }
 0x74f   :  { %v2910_v46 = vpop.eup %2909 }
 0x750   :  { %v1508_v26 = vmul.f32 %v2908_v28, %v1483_v14  ;;  %v2641_v13 = vadd.f32 -0.28449672, %v1464_v21  ;;  %v2637_v39 = vadd.f32 -1.4531521, %v1445_v57  ;;  %v2912_v27 = vpop.eup %2911 }
 0x752   :  { %v1513_v30 = vsub.f32 1.0, %v1508_v26  ;;  %v1474_v53 = vmul.f32 %v2904_v8, %v2641_v13  ;;  %v1455_v58 = vmul.f32 %v2906_v48, %v2637_v39 }
 0x754   :  { %v1523_v47 = vsub.f32 0.0, %v1513_v30  ;;  %v1479_v52 = vadd.f32 0.2548296, %v1474_v53  ;;  %v1460_v32 = vadd.f32 1.4214138, %v1455_v58 }
 0x756   :  { %v1528_v22 = vsel %vm1518_vm15, %v1523_v47, %v1513_v30  ;;  %v1484_v36 = vmul.f32 %v2904_v8, %v1479_v52  ;;  %v1465_v50 = vmul.f32 %v2906_v48, %v1460_v32  ;;  %v1415_v8 = vmul.f32 0.5, %v3844_v24 }
 0x757   :  { %v1533_v42 = vadd.f32 1.0, %v1528_v22 }
 0x758   :  { %v1509_v41 = vmul.f32 %v2910_v46, %v1484_v36  ;;  %v2642_v51 = vadd.f32 -0.28449672, %v1465_v50 }
 0x759   :  { %v1538_v45 = vmul.f32 %v1533_v42, %v1413_v35 }
 0x75a   :  { %v1514_v12 = vsub.f32 1.0, %v1509_v41  ;;  %v1475_v60 = vmul.f32 %v2906_v48, %v2642_v51 }
 0x75b   :  { %1579 = vmatmul.f32.gmra.mxu2 %v1538_v45 }
 0x75c   :  { %v1524_v9 = vsub.f32 0.0, %v1514_v12  ;;  %v1480_v43 = vadd.f32 0.2548296, %v1475_v60 }
 0x75e   :  { %v1529_v29 = vsel %vm1519_vm0, %v1524_v9, %v1514_v12  ;;  %v1485_v62 = vmul.f32 %v2906_v48, %v1480_v43  ;;  %v1728_v43 = vld [vmem:[%s4208_s1 + $0x2c0] sm:$0xff] }
 0x75f   :  { %v1534_v5 = vadd.f32 1.0, %v1529_v29  ;;  %1758 = vmatpush.msra.mxu3 %v1728_v43 }
 0x760   :  { %v1510_v54 = vmul.f32 %v2912_v27, %v1485_v62  ;;  %v1727_v62 = vld [vmem:[%s4208_s1 + $0x2b8] sm:$0xff] }
 0x761   :  { %v1539_v38 = vmul.f32 %v1534_v5, %v1414_v49  ;;  %1759 = vmatpush.msra.mxu3 %v1727_v62  ;;  %v1726_v49 = vld [vmem:[%s4208_s1 + $0x2b0] sm:$0xff] }
 0x762   :  { %v1515_v2 = vsub.f32 1.0, %v1510_v54  ;;  %v1725_v54 = vld [vmem:[%s4208_s1 + $0x2a8] sm:$0xff] }
 0x763   :  { %1582 = vmatmul.f32.gmra.mxu2 %v1539_v38  ;;  %1760 = vmatpush.msra.mxu3 %v1726_v49  ;;  %v1806_v49 = vld [vmem:[%s4208_s1 + $0x290] sm:$0xff] }
 0x764   :  { %v1525_v59 = vsub.f32 0.0, %v1515_v2 }
 0x765   :  { %1761 = vmatpush.msra.mxu3 %v1725_v54 }
 0x766   :  { %v1530_v63 = vsel %vm1520_vm3, %v1525_v59, %v1515_v2 }
 0x767   :  { %v1535_v61 = vadd.f32 1.0, %v1530_v63 }
 0x769   :  { %v1540_v17 = vmul.f32 %v1535_v61, %v1415_v8 }
 0x76b   :  { %1585 = vmatmul.f32.gmra.mxu2 %v1540_v17 }
 0x7ac   :  { %v1574_v56 = vpop.f32.mrf.mxu2 }
 0x7ad   :  { %v1589_v10 = vadd.f32 %v1574_v56, %v3673_v33 }
 0x7af   :  { %v1596_v15 = vadd.f32 %v2798_v0, %v1589_v10 }
 0x7b1   :  { %v1603_v18 = vsel %vm138_vm1, %v1596_v15, 0.0 }
 0x7b4   :  { %v1577_v3 = vpop.f32.mrf.mxu2 }
 0x7b5   :  { %v1590_v16 = vadd.f32 %v1577_v3, %v3678_v34 }
 0x7de   :  { %v1580_v4 = vpop.f32.mrf.mxu2 }
 0x7df   :  { %v1591_v7 = vadd.f32 %v1580_v4, %v3683_v40 }
 0x7e1   :  { %v1598_v31 = vadd.f32 %v2798_v0, %v1591_v7 }
 0x7e3   :  { %v1609_v23 = vsel %vm138_vm1, %v1598_v31, 0.0 }
 0x7e4   :  { %1610 = vadd.xlane.f32.xlu1 %v1609_v23 }
 0x7e6   :  { %v1583_v19 = vpop.f32.mrf.mxu2 }
 0x7e7   :  { %v1592_v20 = vadd.f32 %v1583_v19, %v3688_v55  ;;  %v1597_v55 = vadd.f32 %v2798_v0, %v1590_v16 }
 0x7e9   :  { %v1599_v24 = vadd.f32 %v2798_v0, %v1592_v20  ;;  %v1606_v21 = vsel %vm138_vm1, %v1597_v55, 0.0 }
 0x7eb   :  { %v1612_v11 = vsel %vm138_vm1, %v1599_v24, 0.0 }
 0x7ec   :  { %1613 = vadd.xlane.f32.xlu2 %v1612_v11 }
 0x7ee   :  { %v1586_v37 = vpop.f32.mrf.mxu2 }
 0x7ef   :  { %v1593_v40 = vadd.f32 %v1586_v37, %v3693_v25 }
 0x7f1   :  { %v1600_v48 = vadd.f32 %v2798_v0, %v1593_v40 }
 0x7f3   :  { %v1615_v14 = vsel %vm151_vm2, %v1600_v48, 0.0 }
 0x7f4   :  { %1604 = vadd.xlane.f32.xlu2 %v1603_v18  ;;  %1616 = vadd.xlane.f32.xlu0 %v1615_v14 }
 0x7fc   :  { %1607 = vadd.xlane.f32.xlu0 %v1606_v21 }
 0x857   :  { %v1611_v33 = vpop.xlane.xlu1 %1610 }
 0x858   :  { %v1620_v57 = vmul.f32 %v1611_v33, %v3116_v6 }
 0x85a   :  { %v3870_v28 = vsub.f32 %v1598_v31, %v1620_v57 }
 0x85c   :  { %v1630_v25 = vmul.f32 %v3870_v28, %v3870_v28 }
 0x85e   :  { %v1639_v34 = vsel %vm138_vm1, %v1630_v25, 0.0 }
 0x85f   :  { %1640 = vadd.xlane.f32.xlu2 %v1639_v34  ;;  %v1614_v26 = vpop.xlane.xlu2 %1613 }
 0x860   :  { %v1621_v13 = vmul.f32 %v1614_v26, %v3116_v6 }
 0x862   :  { %v3876_v39 = vsub.f32 %v1599_v24, %v1621_v13 }
 0x864   :  { %v1631_v1 = vmul.f32 %v3876_v39, %v3876_v39 }
 0x866   :  { %v1642_v30 = vsel %vm138_vm1, %v1631_v1, 0.0 }
 0x867   :  { %v1605_v53 = vpop.xlane.xlu2 %1604  ;;  %1643 = vadd.xlane.f32.xlu0 %v1642_v30  ;;  %v1617_v58 = vpop.xlane.xlu0 %1616 }
 0x868   :  { %v1618_v47 = vmul.f32 %v1605_v53, %v3116_v6  ;;  %v1622_v52 = vmul.f32 %v1617_v58, %v3116_v6 }
 0x86a   :  { %v3883_v32 = vsub.f32 %v1596_v15, %v1618_v47  ;;  %v3885_v44 = vsub.f32 %v1600_v48, %v1622_v52 }
 0x86c   :  { %v1628_v22 = vmul.f32 %v3883_v32, %v3883_v32  ;;  %v1632_v36 = vmul.f32 %v3885_v44, %v3885_v44 }
 0x86e   :  { %v1633_v50 = vsel %vm138_vm1, %v1628_v22, 0.0  ;;  %v1645_v46 = vsel %vm151_vm2, %v1632_v36, 0.0  ;;  %v2799_v36 = vld [vmem:[%s4208_s1 + $0x270] ss:$0 sm:$0xff] }
 0x86f   :  { %1634 = vadd.xlane.f32.xlu0 %v1633_v50  ;;  %1646 = vadd.xlane.f32.xlu1 %v1645_v46  ;;  %v1608_v35 = vpop.xlane.xlu0 %1607 }
 0x870   :  { %v1619_v42 = vmul.f32 %v1608_v35, %v3116_v6 }
 0x872   :  { %v3894_v41 = vsub.f32 %v1597_v55, %v1619_v42 }
 0x874   :  { %v1629_v51 = vmul.f32 %v3894_v41, %v3894_v41 }
 0x876   :  { %v1636_v45 = vsel %vm138_vm1, %v1629_v51, 0.0 }
 0x877   :  { %1637 = vadd.xlane.f32.xlu1 %v1636_v45 }
 0x8d2   :  { %v1641_v12 = vpop.xlane.xlu2 %1640 }
 0x8d3   :  { %v1650_v60 = vmul.f32 %v1641_v12, %v3116_v6 }
 0x8d5   :  { %v1655_v9 = vadd.f32 1e-06, %v1650_v60 }
 0x8d7   :  { %2913 = vrsqrt.f32 %v1655_v9  ;;  %vm1684_vm10 = vweird.f32 %v1655_v9 }
 0x8da   :  { %v1644_v29 = vpop.xlane.xlu0 %1643 }
 0x8db   :  { %v1651_v27 = vmul.f32 %v1644_v29, %v3116_v6 }
 0x8dd   :  { %v1656_v5 = vadd.f32 1e-06, %v1651_v27  ;;  %v2914_v38 = vpop.eup %2913  ;;  %v1807_v27 = vld [vmem:[%s4208_s1 + $0x298] sm:$0xff] }
 0x8de   :  { %v1679_v2 = vmul.f32 %v2914_v38, %v1655_v9  ;;  %vm1685_vm4 = vweird.f32 %v2914_v38  ;;  %1825 = vmatpush.msra.mxu1 %v1807_v27 }
 0x8df   :  { %2915 = vrsqrt.f32 %v1656_v5  ;;  %vm1694_vm8 = vweird.f32 %v1656_v5  ;;  %vm3922_vm12 = vmor %vm1684_vm10, %vm1685_vm4 }
 0x8e0   :  { %v1680_v4 = vmul.f32 %v2914_v38, %v1679_v2  ;;  %1826 = vmatpush.msra.mxu1 %v1806_v49 }
 0x8e2   :  { %v1647_v59 = vpop.xlane.xlu1 %1646  ;;  %v1635_v63 = vpop.xlane.xlu0 %1634  ;;  %v1681_v31 = vmul.f32 0.5, %v1680_v4 }
 0x8e3   :  { %v1652_v8 = vmul.f32 %v1647_v59, %v3116_v6  ;;  %v1648_v61 = vmul.f32 %v1635_v63, %v3116_v6  ;;  %v1778_v63 = vld [vmem:[%s4211_s3 + $0x88] sm:$0xff] }
 0x8e4   :  { %v1682_v40 = vsub.f32 1.5, %v1681_v31 }
 0x8e5   :  { %v2916_v17 = vpop.eup %2915  ;;  %v1657_v56 = vadd.f32 1e-06, %v1652_v8  ;;  %v1653_v3 = vadd.f32 1e-06, %v1648_v61 }
 0x8e6   :  { %v1689_v7 = vmul.f32 %v2916_v17, %v1656_v5  ;;  %vm1695_vm2 = vweird.f32 %v2916_v17  ;;  %v1683_v55 = vmul.f32 %v2914_v38, %v1682_v40 }
 0x8e7   :  { %2917 = vrsqrt.f32 %v1657_v56  ;;  %vm3916_vm9 = vmor %vm1694_vm8, %vm1695_vm2  ;;  %vm1704_vm14 = vweird.f32 %v1657_v56  ;;  %vm1664_vm0 = vweird.f32 %v1653_v3 }
 0x8e8   :  { %v1690_v0 = vmul.f32 %v2916_v17, %v1689_v7  ;;  %2919 = vrsqrt.f32 %v1653_v3  ;;  %v1687_v1 = vsel %vm3922_vm12, %v2914_v38, %v1683_v55  ;;  %v1805_v38 = vld [vmem:[%s4208_s1 + $0x288] sm:$0xff] }
 0x8e9   :  { %v1710_v35 = vmul.f32 %v1687_v1, %v3870_v28  ;;  %1827 = vmatpush.msra.mxu1 %v1805_v38 }
 0x8ea   :  { %v1691_v23 = vmul.f32 0.5, %v1690_v0  ;;  %v1638_v19 = vpop.xlane.xlu1 %1637 }
 0x8eb   :  { %v1649_v20 = vmul.f32 %v1638_v19, %v3116_v6  ;;  %v1716_v29 = vmul.f32 %v2799_v36, %v1710_v35  ;;  %v2942_v35 = vmov 11  }
 0x8ec   :  { %v1692_v24 = vsub.f32 1.5, %v1691_v23 }
 0x8ed   :  { %v2918_v10 = vpop.eup %2917  ;;  %v1654_v11 = vadd.f32 1e-06, %v1649_v20 }
 0x8ee   :  { %v2920_v37 = vpop.eup %2919  ;;  %v1699_v15 = vmul.f32 %v2918_v10, %v1657_v56  ;;  %v1693_v16 = vmul.f32 %v2916_v17, %v1692_v24  ;;  %vm1705_vm11 = vweird.f32 %v2918_v10  ;;  %v3965_v56 = vld [vmem:[%s4208_s1 + $0x2c8] ss:$0 sm:$0xff] }
 0x8ef   :  { %v1659_v48 = vmul.f32 %v2920_v37, %v1653_v3  ;;  %2921 = vrsqrt.f32 %v1654_v11  ;;  %vm1665_vm13 = vweird.f32 %v2920_v37  ;;  %vm1706_vm15 = vmor %vm1704_vm14, %vm1705_vm11  ;;  %vm1674_vm4 = vweird.f32 %v1654_v11 }
 0x8f0   :  { %v1700_v18 = vmul.f32 %v2918_v10, %v1699_v15  ;;  %v1697_v57 = vsel %vm3916_vm9, %v2916_v17, %v1693_v16  ;;  %vm1666_vm3 = vmor %vm1664_vm0, %vm1665_vm13 }
 0x8f1   :  { %v1660_v14 = vmul.f32 %v2920_v37, %v1659_v48  ;;  %v1711_v47 = vmul.f32 %v1697_v57, %v3876_v39  ;;  %v2800_v39 = vld [vmem:[%s4208_s1 + $0x278] ss:$0 sm:$0xff]  ;;  %v2802_v48 = vld [vmem:[%s4208_s1 + $0x2a0] ss:$0 sm:$0xff]  ;;  %v2931_v57 = vmov 2  }
 0x8f2   :  { %v1701_v21 = vmul.f32 0.5, %v1700_v18  ;;  %v1722_v5 = vadd.f32 %v2800_v39, %v1716_v29  ;;  %v1833_v18 = vld [vmem:[%s4208_s1 + $0x2d0] sm:$0xff]  ;;  %2759 = vset.pattern.permute.xlu2 %v2931_v57 }
 0x8f3   :  { %v1661_v6 = vmul.f32 0.5, %v1660_v14  ;;  %v1717_v12 = vmul.f32 %v2799_v36, %v1711_v47  ;;  %v2936_v47 = vmov 3  }
 0x8f4   :  { %v1702_v25 = vsub.f32 1.5, %v1701_v21 }
 0x8f5   :  { %v2922_v34 = vpop.eup %2921  ;;  %v1662_v13 = vsub.f32 1.5, %v1661_v6  ;;  %v1723_v28 = vadd.f32 %v2800_v39, %v1717_v12 }
 0x8f6   :  { %v1703_v30 = vmul.f32 %v2918_v10, %v1702_v25  ;;  %v1669_v53 = vmul.f32 %v2922_v34, %v1654_v11  ;;  %vm1675_vm2 = vweird.f32 %v2922_v34  ;;  %v2932_v25 = vmov 1  }
 0x8f7   :  { %v1663_v58 = vmul.f32 %v2920_v37, %v1662_v13  ;;  %vm1676_vm8 = vmor %vm1674_vm4, %vm1675_vm2  ;;  %2758 = vset.pattern.permute.xlu0 %v2932_v25 }
 0x8f8   :  { %v1707_v52 = vsel %vm1706_vm15, %v2918_v10, %v1703_v30  ;;  %v1670_v22 = vmul.f32 %v2922_v34, %v1669_v53  ;;  %v2934_v53 = vmov 4  }
 0x8f9   :  { %v1712_v50 = vmul.f32 %v1707_v52, %v3885_v44  ;;  %v1667_v46 = vsel %vm1666_vm3, %v2920_v37, %v1663_v58  ;;  %v2935_v58 = vmov 7   ;;  %v2937_v52 = vmov 6  }
 0x8fa   :  { %v1708_v42 = vmul.f32 %v1667_v46, %v3883_v32  ;;  %v1671_v51 = vmul.f32 0.5, %v1670_v22  ;;  %v2938_v22 = vmov 12   ;;  %v2941_v46 = vmov 8  }
 0x8fb   :  { %v1718_v45 = vmul.f32 %v2799_v36, %v1712_v50  ;;  %v2940_v50 = vmov 9  }
 0x8fc   :  { %v1714_v60 = vmul.f32 %v2799_v36, %v1708_v42  ;;  %v1672_v9 = vsub.f32 1.5, %v1671_v51  ;;  %v2943_v42 = vmov 10   ;;  %v2944_v51 = vmov 14  }
 0x8fd   :  { %v1724_v43 = vadd.f32 %v2800_v39, %v1718_v45  ;;  %v2945_v45 = vmov 13  }
 0x8fe   :  { %v1673_v62 = vmul.f32 %v2922_v34, %v1672_v9  ;;  %v1720_v44 = vadd.f32 %v2800_v39, %v1714_v60 }
 0x8ff   :  { %2648 = vmatpush.msk.msra.mxu0 %vm465_vm5, %v1724_v43  ;;  %vm1848_vm5 = vcmask 1046528  }
 0x900   :  { %v1677_v32 = vsel %vm1676_vm8, %v2922_v34, %v1673_v62  ;;  %2643 = vmatmul.msk.f32.vlgmr.msra.gmra.mxu3 %vm138_vm1, %v1720_v44  ;;  %v2933_v34 = vmov 0  }
 0x901   :  { %1796 = vmatpush.msra.mxu0 %v1723_v28  ;;  %v1709_v54 = vmul.f32 %v1677_v32, %v3894_v41  ;;  %v1804_v41 = vld [vmem:[%s4208_s1 + $0x280] sm:$0xff]  ;;  %2757 = vset.pattern.permute.xlu1 %v2933_v34 }
 0x902   :  { %1828 = vmatpush.msra.mxu1 %v1804_v41 }
 0x903   :  { %1797 = vmatpush.msra.mxu0 %v1722_v5  ;;  %v1715_v2 = vmul.f32 %v2799_v36, %v1709_v54  ;;  %v2939_v36 = vmov 5  }
 0x905   :  { %v1721_v59 = vadd.f32 %v2800_v39, %v1715_v2  ;;  %v2946_v39 = vmov 15  }
 0x907   :  { %1798 = vmatpush.msra.mxu0 %v1721_v59 }
 0x908   :  { %2644 = vmatmul.msk.f32.gmra.mxu3 %vm138_vm1, %v1721_v59 }
 0x909   :  { %1799 = vmatpush.msra.mxu0 %v1720_v44 }
 0x90a   :  { %2649 = vmatmul.msk.f32.vlgmr.msra.gmra.mxu0 %vm413_vm6, %v1778_v63  ;;  %vm1882_vm6 = vcmask 125952  }
 0x910   :  { %2645 = vmatmul.msk.f32.gmra.mxu3 %vm138_vm1, %v1722_v5 }
 0x918   :  { %2646 = vmatmul.msk.f32.gmra.mxu3 %vm138_vm1, %v1723_v28 }
 0x920   :  { %2647 = vmatmul.msk.f32.gmra.mxu3 %vm138_vm1, %v1724_v43 }
 0x983   :  { %v1763_v8 = vpop.f32.mrf.mxu3 }
 0x984   :  { %v1764_v0 = vadd.f32 %v3965_v56, %v1763_v8 }
 0x986   :  { %v1849_v20 = vrot.slane %v1764_v0, 1 }
 0x987   :  { %v1801_v61 = vpop.f32.mrf.mxu0 }
 0x988   :  { %2650 = vmatmul.msk.f32.vlgmr.msra.gmra.mxu1 %vm138_vm1, %v1801_v61 }
 0x98b   :  { %v1766_v17 = vpop.f32.mrf.mxu3 }
 0x98c   :  { %v1767_v3 = vadd.f32 %v3965_v56, %v1766_v17 }
 0x98e   :  { %v1850_v31 = vrot.slane %v1767_v3, 1 }
 0x990   :  { %v1851_v11 = vsel %vm1848_vm5, %v1849_v20, %v1850_v31 }
 0x993   :  { %v1769_v4 = vpop.f32.mrf.mxu3 }
 0x994   :  { %v1770_v7 = vadd.f32 %v3965_v56, %v1769_v4 }
 0x996   :  { %v1852_v23 = vrot.slane %v1770_v7, 1  ;;  %v2198_v37 = vrot.slane %v1770_v7, 2 }
 0x998   :  { %v1853_v19 = vsel %vm1848_vm5, %v1850_v31, %v1852_v23 }
 0x999   :  { %2651 = vmatpush.xpose.msk.msrb.mxu0 %vm138_vm1, %v1853_v19 }
 0x99b   :  { %v1772_v24 = vpop.f32.mrf.mxu3 }
 0x99c   :  { %v3972_v10 = vadd.f32 %v3965_v56, %v1772_v24 }
 0x99d   :  { %2652 = vmatpush.xpose.msk.msrb.mxu0 %vm138_vm1, %v1851_v11 }
 0x99e   :  { %v2199_v40 = vrot.slane %v3972_v10, 2 }
 0x9a0   :  { %v3979_v15 = vsel %vm948_vm7, %v2198_v37, %v2199_v40 }
 0xa05   :  { %v1830_v16 = vpop.f32.mrf.mxu1 }
 0xa06   :  { %v1831_v14 = vadd.f32 %v2802_v48, %v1830_v16 }
 0xa08   :  { %v3987_v55 = vmul.f32 %v1833_v18, %v1831_v14 }
 0xa0a   :  { %2653 = vmatmul.msk.f32.vlgmr.msrb.gmra.mxu0 %vm138_vm1, %v3987_v55 }
 0xa87   :  { %v1878_v21 = vpop.f32.mrf.mxu0 }
 0xa88   :  { %v1881_v33 = vmul.f32 0.35355338, %v1878_v21 }
 0xa8a   :  { %v1883_v6 = vsel %vm1882_vm6, %v1881_v33, -inf }
 0xa8b   :  { %1884 = vmax.xlane.f32.xlu2 %v1883_v6 }
 0xafe   :  { %v1885_v26 = vpop.xlane.xlu2 %1884 }
 0xaff   :  { %v1886_v13 = vsub.f32 %v1881_v33, %v1885_v26 }
 0xb01   :  { %v1887_v1 = vmul.f32 1.442695, %v1886_v13 }
 0xb03   :  { %2923 = vpow2.f32 %v1887_v1 }
 0xb09   :  { %v3994_v30 = vpop.eup %2923 }
 0xb0a   :  { %1905 = vperm.xlu2 %2759, %v3994_v30   ;;  %1898 = vperm.xlu0 %2758, %v3994_v30   ;;  %v2002_v12 = vsel %vm1882_vm6, %v3994_v30, 0.0 }
 0xb0b   :  { %1891 = vperm.xlu1 %2757, %v3994_v30  }
 0xb12   :  { %2761 = vset.pattern.permute.xlu2 %v2934_v53  ;;  %2764 = vset.pattern.permute.xlu0 %v2935_v58 }
 0xb13   :  { %2760 = vset.pattern.permute.xlu1 %v2936_v47  ;;  %1919 = vperm.xlu2 %2761, %v3994_v30  }
 0xb14   :  { %1940 = vperm.xlu0 %2764, %v3994_v30   ;;  %1912 = vperm.xlu1 %2760, %v3994_v30  }
 0xb1b   :  { %2763 = vset.pattern.permute.xlu2 %v2937_v52 }
 0xb1c   :  { %2769 = vset.pattern.permute.xlu0 %v2938_v22  ;;  %2762 = vset.pattern.permute.xlu1 %v2939_v36 }
 0xb1d   :  { %1933 = vperm.xlu2 %2763, %v3994_v30   ;;  %1975 = vperm.xlu0 %2769, %v3994_v30  }
 0xb1e   :  { %1926 = vperm.xlu1 %2762, %v3994_v30  }
 0xb25   :  { %2766 = vset.pattern.permute.xlu2 %v2940_v50  ;;  %2780 = vset.pattern.permute.xlu0 %v2935_v58 }
 0xb26   :  { %2765 = vset.pattern.permute.xlu1 %v2941_v46  ;;  %1954 = vperm.xlu2 %2766, %v3994_v30  }
 0xb27   :  { %1947 = vperm.xlu1 %2765, %v3994_v30  }
 0xb2e   :  { %2768 = vset.pattern.permute.xlu2 %v2942_v35 }
 0xb2f   :  { %2767 = vset.pattern.permute.xlu1 %v2943_v42  ;;  %1968 = vperm.xlu2 %2768, %v3994_v30  }
 0xb30   :  { %1961 = vperm.xlu1 %2767, %v3994_v30  }
 0xb37   :  { %2771 = vset.pattern.permute.xlu2 %v2944_v51 }
 0xb38   :  { %2770 = vset.pattern.permute.xlu1 %v2945_v45  ;;  %1989 = vperm.xlu2 %2771, %v3994_v30  }
 0xb39   :  { %1982 = vperm.xlu1 %2770, %v3994_v30  }
 0xb40   :  { %2778 = vset.pattern.permute.xlu2 %v2939_v36 }
 0xb41   :  { %2772 = vset.pattern.permute.xlu1 %v2946_v39 }
 0xb42   :  { %1996 = vperm.xlu1 %2772, %v3994_v30  }
 0xb4a   :  { %2773 = vset.pattern.permute.xlu1 %v2933_v34 }
 0xb61   :  { %2003 = vadd.xlane.f32.xlu2 %v2002_v12 }
 0xb64   :  { %v1906_v9 = vpop.permute.xlu2 %1905 }
 0xb65   :  { %vm1908_vm11 = vcmp.le.f32.partialorder %v1906_v9, %v3994_v30 }
 0xb66   :  { %v1909_v49 = vsel %vm1908_vm11, %v1906_v9, 0.0 }
 0xb6d   :  { %v1920_v62 = vpop.permute.xlu2 %1919 }
 0xb6e   :  { %vm1922_vm13 = vcmp.le.f32.partialorder %v1920_v62, %v3994_v30 }
 0xb6f   :  { %v1923_v63 = vsel %vm1922_vm13, %v1920_v62, 0.0  ;;  %v2947_v62 = vmov 0.0  }
 0xb77   :  { %v1934_v38 = vpop.permute.xlu2 %1933 }
 0xb78   :  { %vm1936_vm15 = vcmp.le.f32.partialorder %v1934_v38, %v3994_v30 }
 0xb79   :  { %v1937_v3 = vsel %vm1936_vm15, %v1934_v38, 0.0 }
 0xb7c   :  { %v1899_v29 = vpop.permute.xlu0 %1898 }
 0xb7d   :  { %v1892_v60 = vpop.permute.xlu1 %1891  ;;  %vm1901_vm9 = vcmp.le.f32.partialorder %v1899_v29, %v3994_v30 }
 0xb7e   :  { %vm1894_vm10 = vcmp.le.f32.partialorder %v1892_v60, %v3994_v30  ;;  %v1902_v28 = vsel %vm1901_vm9, %v1899_v29, 0.0 }
 0xb7f   :  { %v1895_v32 = vsel %vm1894_vm10, %v1892_v60, 0.0 }
 0xb80   :  { %v1903_v27 = vadd.f32 %v1902_v28, %v1895_v32  ;;  %v1955_v4 = vpop.permute.xlu2 %1954 }
 0xb81   :  { %vm1957_vm2 = vcmp.le.f32.partialorder %v1955_v4, %v3994_v30 }
 0xb82   :  { %v1910_v54 = vadd.f32 %v1909_v49, %v1903_v27  ;;  %v1958_v24 = vsel %vm1957_vm2, %v1955_v4, 0.0 }
 0xb86   :  { %v1913_v43 = vpop.permute.xlu1 %1912  ;;  %v1941_v17 = vpop.permute.xlu0 %1940 }
 0xb87   :  { %vm1915_vm12 = vcmp.le.f32.partialorder %v1913_v43, %v3994_v30  ;;  %vm1943_vm0 = vcmp.le.f32.partialorder %v1941_v17, %v3994_v30 }
 0xb88   :  { %v1916_v5 = vsel %vm1915_vm12, %v1913_v43, 0.0  ;;  %v1944_v31 = vsel %vm1943_vm0, %v1941_v17, 0.0 }
 0xb89   :  { %v1917_v59 = vadd.f32 %v1916_v5, %v1910_v54  ;;  %v1969_v11 = vpop.permute.xlu2 %1968 }
 0xb8a   :  { %vm1971_vm8 = vcmp.le.f32.partialorder %v1969_v11, %v3994_v30 }
 0xb8b   :  { %v1924_v8 = vadd.f32 %v1923_v63, %v1917_v59  ;;  %v1972_v21 = vsel %vm1971_vm8, %v1969_v11, 0.0  ;;  %v4052_v59 = vld [vmem:[%s4208_s1 + $0x2d8] sm:$0xff] }
 0xb8f   :  { %v1976_v14 = vpop.permute.xlu0 %1975 }
 0xb90   :  { %v1927_v44 = vpop.permute.xlu1 %1926  ;;  %vm1978_vm5 = vcmp.le.f32.partialorder %v1976_v14, %v3994_v30 }
 0xb91   :  { %vm1929_vm14 = vcmp.le.f32.partialorder %v1927_v44, %v3994_v30  ;;  %v1979_v6 = vsel %vm1978_vm5, %v1976_v14, 0.0 }
 0xb92   :  { %v1930_v41 = vsel %vm1929_vm14, %v1927_v44, 0.0  ;;  %v1990_v34 = vpop.permute.xlu2 %1989  ;;  %vm2021_vm14 = vcmask 130048  }
 0xb93   :  { %v1931_v61 = vadd.f32 %v1930_v41, %v1924_v8  ;;  %vm1992_vm10 = vcmp.le.f32.partialorder %v1990_v34, %v3994_v30 }
 0xb94   :  { %v1993_v36 = vsel %vm1992_vm10, %v1990_v34, 0.0 }
 0xb95   :  { %v1938_v0 = vadd.f32 %v1937_v3, %v1931_v61  ;;  %v1775_v61 = vpop.f32.mrf.mxu3 }
 0xb96   :  { %v1776_v17 = vadd.f32 %v3965_v56, %v1775_v61 }
 0xb97   :  { %v1945_v19 = vadd.f32 %v1944_v31, %v1938_v0 }
 0xb98   :  { %v2201_v4 = vrot.slane %v1776_v17, 2 }
 0xb99   :  { %v1948_v2 = vpop.permute.xlu1 %1947 }
 0xb9a   :  { %vm1950_vm3 = vcmp.le.f32.partialorder %v1948_v2, %v3994_v30  ;;  %v2202_v31 = vsel %vm948_vm7, %v2199_v40, %v2201_v4 }
 0xb9b   :  { %v1951_v23 = vsel %vm1950_vm3, %v1948_v2, 0.0 }
 0xb9c   :  { %v1952_v20 = vadd.f32 %v1951_v23, %v1945_v19  ;;  %v2195_v23 = vrot.slane %v3987_v55, 4 }
 0xb9e   :  { %v1959_v16 = vadd.f32 %v1958_v24, %v1952_v20 }
 0xba2   :  { %v1962_v7 = vpop.permute.xlu1 %1961 }
 0xba3   :  { %vm1964_vm4 = vcmp.le.f32.partialorder %v1962_v7, %v3994_v30 }
 0xba4   :  { %v1965_v37 = vsel %vm1964_vm4, %v1962_v7, 0.0  ;;  %v2948_v7 = vmov 1.0  }
 0xba5   :  { %v1966_v18 = vadd.f32 %v1965_v37, %v1959_v16 }
 0xba7   :  { %v1973_v33 = vadd.f32 %v1972_v21, %v1966_v18 }
 0xba9   :  { %v1980_v1 = vadd.f32 %v1979_v6, %v1973_v33 }
 0xbab   :  { %v1983_v48 = vpop.permute.xlu1 %1982 }
 0xbac   :  { %vm1985_vm9 = vcmp.le.f32.partialorder %v1983_v48, %v3994_v30 }
 0xbad   :  { %v1986_v26 = vsel %vm1985_vm9, %v1983_v48, 0.0 }
 0xbae   :  { %v1987_v58 = vadd.f32 %v1986_v26, %v1980_v1 }
 0xbb0   :  { %v1994_v60 = vadd.f32 %v1993_v36, %v1987_v58 }
 0xbb4   :  { %v1997_v13 = vpop.permute.xlu1 %1996 }
 0xbb5   :  { %vm1999_vm11 = vcmp.le.f32.partialorder %v1997_v13, %v3994_v30  ;;  %v4046_v30 = vld [vmem:[%s4208_s1 + $0x2e0] sm:$0xff] }
 0xbb6   :  { %v2000_v12 = vsel %vm1999_vm11, %v1997_v13, 0.0 }
 0xbb7   :  { %v2001_v43 = vadd.f32 %v2000_v12, %v1994_v60 }
 0xbd4   :  { %v2004_v9 = vpop.xlane.xlu2 %2003 }
 0xbd5   :  { %v2005_v29 = vmul.f32 0.8, %v2004_v9 }
 0xbd7   :  { %vm2006_vm12 = vcmp.gt.f32.partialorder %v2001_v43, %v2005_v29 }
 0xbd8   :  { %v2654_v44 = vsel %vm2006_vm12, 1.0, %v2947_v62 }
 0xbd9   :  { %v2009_v28 = vsel %vm1882_vm6, %v2654_v44, 0.0 }
 0xbda   :  { %v2010_v32 = vrot.slane %v2009_v28, 4 }
 0xbdc   :  { %v2011_v27 = vadd.f32 %v2010_v32, %v2009_v28 }
 0xbde   :  { %v2012_v49 = vrot.slane %v2011_v27, 2 }
 0xbe0   :  { %v2013_v5 = vadd.f32 %v2012_v49, %v2011_v27 }
 0xbe2   :  { %v2014_v54 = vrot.slane %v2013_v5, 1 }
 0xbe4   :  { %v2015_v38 = vadd.f32 %v2014_v54, %v2013_v5 }
 0xbe6   :  { %vm2016_vm13 = vcmp.gt.f32.partialorder %v2015_v38, 0.0 }
 0xbe7   :  { %v2655_v2 = vsel %vm2016_vm13, 1.0, %v2947_v62 }
 0xbe8   :  { %v2020_v63 = vmul.f32 %v2655_v2, %v4046_v30  ;;  %v2019_v41 = vmul.f32 %v2655_v2, %v4052_v59 }
 0xbea   :  { %2042 = vmatpush.msrb.mxu1 %v2020_v63 }
 0xbec   :  { %2043 = vmatpush.msrb.mxu1 %v2019_v41 }
 0xbed   :  { %2656 = vmatmul.msk.f32.vlgmr.msrb.gmra.mxu1 %vm2021_vm14, %v2019_v41 }
 0xbf5   :  { %2657 = vmatmul.msk.f32.gmra.mxu1 %vm2021_vm14, %v2020_v63 }
 0xc6a   :  { %v2045_v8 = vpop.f32.mrf.mxu1 }
 0xc6b   :  { %vm2051_vm15 = vcmp.gt.f32.partialorder %v2045_v8, 0.5 }
 0xc6c   :  { %v2658_v0 = vsel %vm2051_vm15, 1.0, %v2947_v62 }
 0xc72   :  { %v2048_v3 = vpop.f32.mrf.mxu1 }
 0xc73   :  { %vm2052_vm0 = vcmp.gt.f32.partialorder %v2048_v3, 0.5 }
 0xc74   :  { %2660 = vmatpush.msk.msra.mxu0 %vm2052_vm0, %v2948_v7  ;;  %v2659_v56 = vsel %vm2052_vm0, 1.0, %v2947_v62 }
 0xc76   :  { %2661 = vmatpush.msk.msra.mxu0 %vm2051_vm15, %v2948_v7 }
 0xc77   :  { %2662 = vmatmul.msk.f32.vlgmr.msra.gmra.mxu0 %vm2021_vm14, %v2658_v0 }
 0xc78   :  { %2678 = vmatpush.xpose.msk.msrb.mxu0 %vm138_vm1, %v2202_v31 }
 0xc7c   :  { %2679 = vmatpush.xpose.msk.msrb.mxu0 %vm138_vm1, %v3979_v15 }
 0xc7f   :  { %2663 = vmatmul.msk.f32.gmra.mxu0 %vm2021_vm14, %v2659_v56 }
 0xc87   :  { %2680 = vmatmul.msk.f32.vlgmr.msrb.gmra.mxu0 %vm138_vm1, %v2195_v23 }
 0xcf4   :  { %v2080_v19 = vpop.f32.mrf.mxu0 }
 0xcf5   :  { %vm2086_vm3 = vcmp.gt.f32.partialorder %v2080_v19, 0.5 }
 0xcf6   :  { %v2664_v10 = vsel %vm2086_vm3, 1.0, %v2947_v62 }
 0xcfc   :  { %v2083_v20 = vpop.f32.mrf.mxu0 }
 0xcfd   :  { %vm2087_vm2 = vcmp.gt.f32.partialorder %v2083_v20, 0.5 }
 0xcfe   :  { %2666 = vmatpush.msk.msrb.mxu2 %vm2087_vm2, %v2948_v7  ;;  %v2665_v55 = vsel %vm2087_vm2, 1.0, %v2947_v62 }
 0xd00   :  { %2667 = vmatpush.msk.msrb.mxu2 %vm2086_vm3, %v2948_v7 }
 0xd01   :  { %2668 = vmatmul.msk.f32.vlgmr.msrb.gmra.mxu2 %vm2021_vm14, %v2664_v10 }
 0xd04   :  { %v2226_v40 = vpop.f32.mrf.mxu0 }
 0xd05   :  { %v2229_v15 = vmul.f32 0.35355338, %v2226_v40 }
 0xd07   :  { %v2230_v24 = vsel %vm1882_vm6, %v2229_v15, -inf }
 0xd08   :  { %2231 = vmax.xlane.f32.xlu0 %v2230_v24 }
 0xd09   :  { %2669 = vmatmul.msk.f32.gmra.mxu2 %vm2021_vm14, %v2665_v55 }
 0xd7b   :  { %v2232_v11 = vpop.xlane.xlu0 %2231 }
 0xd7c   :  { %v2233_v37 = vsub.f32 %v2229_v15, %v2232_v11 }
 0xd7e   :  { %v2234_v48 = vmul.f32 1.442695, %v2233_v37 }
 0xd80   :  { %2925 = vpow2.f32 %v2234_v48 }
 0xd84   :  { %v2115_v16 = vpop.f32.mrf.mxu2 }
 0xd85   :  { %vm2121_vm7 = vcmp.gt.f32.partialorder %v2115_v16, 0.5 }
 0xd86   :  { %v4080_v18 = vpop.eup %2925  ;;  %v2670_v21 = vsel %vm2121_vm7, 1.0, %v2947_v62 }
 0xd87   :  { %2287 = vperm.xlu0 %2780, %v4080_v18   ;;  %2273 = vperm.xlu2 %2778, %v4080_v18  }
 0xd88   :  { %2238 = vperm.xlu1 %2773, %v4080_v18  }
 0xd8c   :  { %v2118_v14 = vpop.f32.mrf.mxu2 }
 0xd8d   :  { %vm2122_vm1 = vcmp.gt.f32.partialorder %v2118_v14, 0.5 }
 0xd8e   :  { %2672 = vmatpush.msk.msra.mxu1 %vm2122_vm1, %v2948_v7  ;;  %v2671_v33 = vsel %vm2122_vm1, 1.0, %v2947_v62 }
 0xd8f   :  { %2783 = vset.pattern.permute.xlu2 %v2943_v42  ;;  %2789 = vset.pattern.permute.xlu0 %v2946_v39 }
 0xd90   :  { %2774 = vset.pattern.permute.xlu1 %v2932_v25  ;;  %2308 = vperm.xlu2 %2783, %v4080_v18  }
 0xd91   :  { %2245 = vperm.xlu1 %2774, %v4080_v18   ;;  %2673 = vmatpush.msk.msra.mxu1 %vm2121_vm7, %v2948_v7 }
 0xd92   :  { %2674 = vmatmul.msk.f32.vlgmr.msra.gmra.mxu1 %vm2021_vm14, %v2670_v21 }
 0xd98   :  { %2785 = vset.pattern.permute.xlu2 %v2938_v22 }
 0xd99   :  { %2775 = vset.pattern.permute.xlu1 %v2931_v57  ;;  %2322 = vperm.xlu2 %2785, %v4080_v18   ;;  %v2349_v57 = vsel %vm1882_vm6, %v4080_v18, 0.0 }
 0xd9a   :  { %2252 = vperm.xlu1 %2775, %v4080_v18   ;;  %2675 = vmatmul.msk.f32.gmra.mxu1 %vm2021_vm14, %v2671_v33 }
 0xda1   :  { %2787 = vset.pattern.permute.xlu2 %v2944_v51 }
 0xda2   :  { %2776 = vset.pattern.permute.xlu1 %v2936_v47  ;;  %2336 = vperm.xlu2 %2787, %v4080_v18   ;;  %v1837_v47 = vlaneseq }
 0xda3   :  { %2259 = vperm.xlu1 %2776, %v4080_v18  }
 0xdab   :  { %2777 = vset.pattern.permute.xlu1 %v2934_v53 }
 0xdac   :  { %2266 = vperm.xlu1 %2777, %v4080_v18  }
 0xdb1   :  { %2350 = vadd.xlane.f32.xlu0 %v2349_v57 }
 0xdb4   :  { %2779 = vset.pattern.permute.xlu1 %v2937_v52  ;;  %v1838_v52 = vand.u32 127, %v1837_v47 }
 0xdb5   :  { %2280 = vperm.xlu1 %2779, %v4080_v18  }
 0xdbd   :  { %2781 = vset.pattern.permute.xlu1 %v2941_v46  ;;  %v4121_v46 = vcvt.s32.f32 %v1838_v52 }
 0xdbe   :  { %2294 = vperm.xlu1 %2781, %v4080_v18  }
 0xdc6   :  { %2782 = vset.pattern.permute.xlu1 %v2940_v50 }
 0xdc7   :  { %2301 = vperm.xlu1 %2782, %v4080_v18  }
 0xdcf   :  { %2784 = vset.pattern.permute.xlu1 %v2942_v35 }
 0xdd0   :  { %2315 = vperm.xlu1 %2784, %v4080_v18  }
 0xdd8   :  { %2786 = vset.pattern.permute.xlu1 %v2945_v45 }
 0xdd9   :  { %2329 = vperm.xlu1 %2786, %v4080_v18  }
 0xde1   :  { %2788 = vset.pattern.permute.xlu1 %v2946_v39  ;;  %v2274_v60 = vpop.permute.xlu2 %2273 }
 0xde2   :  { %2343 = vperm.xlu1 %2788, %v4080_v18   ;;  %vm2276_vm0 = vcmp.le.f32.partialorder %v2274_v60, %v4080_v18 }
 0xde3   :  { %v2277_v38 = vsel %vm2276_vm0, %v2274_v60, 0.0 }
 0xdea   :  { %v2309_v2 = vpop.permute.xlu2 %2308 }
 0xdf3   :  { %v2323_v23 = vpop.permute.xlu2 %2322 }
 0xdf9   :  { %v2288_v63 = vpop.permute.xlu0 %2287 }
 0xdfa   :  { %v2239_v25 = vpop.permute.xlu1 %2238  ;;  %vm2290_vm2 = vcmp.le.f32.partialorder %v2288_v63, %v4080_v18 }
 0xdfb   :  { %vm2241_vm11 = vcmp.le.f32.partialorder %v2239_v25, %v4080_v18  ;;  %v2291_v17 = vsel %vm2290_vm2, %v2288_v63, 0.0 }
 0xdfc   :  { %v2242_v9 = vsel %vm2241_vm11, %v2239_v25, 0.0  ;;  %v2337_v11 = vpop.permute.xlu2 %2336 }
 0xe03   :  { %v2246_v53 = vpop.permute.xlu1 %2245 }
 0xe04   :  { %vm2248_vm10 = vcmp.le.f32.partialorder %v2246_v53, %v4080_v18 }
 0xe05   :  { %v2249_v12 = vsel %vm2248_vm10, %v2246_v53, 0.0  ;;  %vm2339_vm10 = vcmp.le.f32.partialorder %v2337_v11, %v4080_v18 }
 0xe06   :  { %v2250_v44 = vadd.f32 %v2249_v12, %v2242_v9  ;;  %v2340_v14 = vsel %vm2339_vm10, %v2337_v11, 0.0 }
 0xe0c   :  { %v2253_v22 = vpop.permute.xlu1 %2252 }
 0xe0d   :  { %vm2255_vm12 = vcmp.le.f32.partialorder %v2253_v22, %v4080_v18 }
 0xe0e   :  { %v2256_v43 = vsel %vm2255_vm12, %v2253_v22, 0.0 }
 0xe0f   :  { %v2150_v50 = vpop.f32.mrf.mxu1  ;;  %v2257_v32 = vadd.f32 %v2256_v43, %v2250_v44 }
 0xe10   :  { %vm2156_vm4 = vcmp.gt.f32.partialorder %v2150_v50, 0.5 }
 0xe11   :  { %v2676_v35 = vsel %vm2156_vm4, 1.0, %v2947_v62  ;;  %vm2311_vm4 = vcmp.le.f32.partialorder %v2309_v2, %v4080_v18 }
 0xe12   :  { %v2172_v42 = vsel %vm2021_vm14, %v2676_v35, 0.0  ;;  %vm2162_vm8 = vcmp.gt.f32.partialorder %v2676_v35, 0.5  ;;  %v2312_v20 = vsel %vm2311_vm4, %v2309_v2, 0.0 }
 0xe13   :  { %2173 = vadd.xlane.f32.xlu0 %v2172_v42  ;;  %v2164_v51 = vsel %vm2162_vm8, %v4121_v46, 16.0 }
 0xe14   :  { %v2166_v45 = vsel %vm2021_vm14, %v2164_v51, inf }
 0xe15   :  { %v2260_v39 = vpop.permute.xlu1 %2259  ;;  %2167 = vmin.xlane.f32.xlu2 %v2166_v45 }
 0xe16   :  { %vm2262_vm13 = vcmp.le.f32.partialorder %v2260_v39, %v4080_v18 }
 0xe17   :  { %v2153_v6 = vpop.f32.mrf.mxu1  ;;  %v2263_v28 = vsel %vm2262_vm13, %v2260_v39, 0.0 }
 0xe18   :  { %vm2157_vm5 = vcmp.gt.f32.partialorder %v2153_v6, 0.5  ;;  %v2264_v49 = vadd.f32 %v2263_v28, %v2257_v32 }
 0xe19   :  { %v2677_v34 = vsel %vm2157_vm5, 1.0, %v2947_v62  ;;  %vm2325_vm5 = vcmp.le.f32.partialorder %v2323_v23, %v4080_v18 }
 0xe1a   :  { %vm2163_vm9 = vcmp.gt.f32.partialorder %v2677_v34, 0.5  ;;  %v2175_v13 = vsel %vm2021_vm14, %v2677_v34, 0.0  ;;  %v2326_v55 = vsel %vm2325_vm5, %v2323_v23, 0.0 }
 0xe1b   :  { %v2165_v26 = vsel %vm2163_vm9, %v4121_v46, 16.0 }
 0xe1c   :  { %v2169_v1 = vsel %vm2021_vm14, %v2165_v26, inf }
 0xe1d   :  { %2176 = vadd.xlane.f32.xlu2 %v2175_v13  ;;  %2170 = vmin.xlane.f32.xlu1 %v2169_v1  ;;  %v4155_v13 = vshrl.u32 %v1837_v47, 7 }
 0xe1e   :  { %v2267_v58 = vpop.permute.xlu1 %2266 }
 0xe1f   :  { %vm2269_vm15 = vcmp.le.f32.partialorder %v2267_v58, %v4080_v18 }
 0xe20   :  { %v2270_v27 = vsel %vm2269_vm15, %v2267_v58, 0.0  ;;  %v1843_v58 = vcvt.s32.f32 %v4155_v13 }
 0xe21   :  { %v2271_v5 = vadd.f32 %v2270_v27, %v2264_v49 }
 0xe23   :  { %v2278_v8 = vadd.f32 %v2277_v38, %v2271_v5 }
 0xe24   :  { %v2351_v21 = vpop.xlane.xlu0 %2350 }
 0xe25   :  { %v2352_v53 = vmul.f32 0.8, %v2351_v21 }
 0xe27   :  { %v2281_v36 = vpop.permute.xlu1 %2280 }
 0xe28   :  { %vm2283_vm3 = vcmp.le.f32.partialorder %v2281_v36, %v4080_v18 }
 0xe29   :  { %v2284_v41 = vsel %vm2283_vm3, %v2281_v36, 0.0  ;;  %v4159_v36 = vadd.s32 8, %v4155_v13 }
 0xe2a   :  { %v2285_v61 = vadd.f32 %v2284_v41, %v2278_v8 }
 0xe2c   :  { %v2292_v4 = vadd.f32 %v2291_v17, %v2285_v61 }
 0xe30   :  { %v2295_v29 = vpop.permute.xlu1 %2294 }
 0xe31   :  { %vm2297_vm1 = vcmp.le.f32.partialorder %v2295_v29, %v4080_v18 }
 0xe32   :  { %v2298_v3 = vsel %vm2297_vm1, %v2295_v29, 0.0 }
 0xe33   :  { %v2299_v56 = vadd.f32 %v2298_v3, %v2292_v4 }
 0xe39   :  { %v2302_v54 = vpop.permute.xlu1 %2301 }
 0xe3a   :  { %vm2304_vm7 = vcmp.le.f32.partialorder %v2302_v54, %v4080_v18 }
 0xe3b   :  { %v2305_v0 = vsel %vm2304_vm7, %v2302_v54, 0.0  ;;  %vm2193_vm7 = vcmask 0  }
 0xe3c   :  { %v2306_v19 = vadd.f32 %v2305_v0, %v2299_v56 }
 0xe3e   :  { %v2313_v40 = vadd.f32 %v2312_v20, %v2306_v19 }
 0xe42   :  { %v2316_v31 = vpop.permute.xlu1 %2315 }
 0xe43   :  { %vm2318_vm8 = vcmp.le.f32.partialorder %v2316_v31, %v4080_v18 }
 0xe44   :  { %v2319_v10 = vsel %vm2318_vm8, %v2316_v31, 0.0 }
 0xe45   :  { %v2320_v15 = vadd.f32 %v2319_v10, %v2313_v40 }
 0xe47   :  { %v2327_v48 = vadd.f32 %v2326_v55, %v2320_v15 }
 0xe4b   :  { %v2330_v24 = vpop.permute.xlu1 %2329 }
 0xe4c   :  { %vm2332_vm9 = vcmp.le.f32.partialorder %v2330_v24, %v4080_v18 }
 0xe4d   :  { %v2333_v37 = vsel %vm2332_vm9, %v2330_v24, 0.0 }
 0xe4e   :  { %v2334_v16 = vadd.f32 %v2333_v37, %v2327_v48 }
 0xe50   :  { %v2341_v57 = vadd.f32 %v2340_v14, %v2334_v16 }
 0xe54   :  { %v2344_v33 = vpop.permute.xlu1 %2343 }
 0xe55   :  { %vm2346_vm11 = vcmp.le.f32.partialorder %v2344_v33, %v4080_v18 }
 0xe56   :  { %v2347_v25 = vsel %vm2346_vm11, %v2344_v33, 0.0 }
 0xe57   :  { %v2348_v52 = vadd.f32 %v2347_v25, %v2341_v57 }
 0xe59   :  { %vm2353_vm12 = vcmp.gt.f32.partialorder %v2348_v52, %v2352_v53 }
 0xe5a   :  { %v2681_v22 = vsel %vm2353_vm12, 1.0, %v2947_v62 }
 0xe5b   :  { %v2356_v50 = vsel %vm1882_vm6, %v2681_v22, 0.0 }
 0xe5c   :  { %v2357_v35 = vrot.slane %v2356_v50, 4 }
 0xe5e   :  { %v2358_v42 = vadd.f32 %v2357_v35, %v2356_v50 }
 0xe60   :  { %v2359_v51 = vrot.slane %v2358_v42, 2 }
 0xe62   :  { %v2360_v45 = vadd.f32 %v2359_v51, %v2358_v42 }
 0xe64   :  { %v2361_v39 = vrot.slane %v2360_v45, 1 }
 0xe66   :  { %v2362_v6 = vadd.f32 %v2361_v39, %v2360_v45 }
 0xe68   :  { %vm2363_vm13 = vcmp.gt.f32.partialorder %v2362_v6, 0.0 }
 0xe69   :  { %v2682_v34 = vsel %vm2363_vm13, 1.0, %v2947_v62 }
 0xe6a   :  { %v2367_v26 = vmul.f32 %v2682_v34, %v4046_v30  ;;  %v2366_v18 = vmul.f32 %v2682_v34, %v4052_v59  ;;  %v1844_v30 = vcvt.s32.f32 %v4159_v36 }
 0xe6c   :  { %2388 = vmatpush.msra.mxu2 %v2367_v26 }
 0xe6e   :  { %2389 = vmatpush.msra.mxu2 %v2366_v18 }
 0xe6f   :  { %2683 = vmatmul.msk.f32.vlgmr.msra.gmra.mxu2 %vm2021_vm14, %v2366_v18 }
 0xe77   :  { %2684 = vmatmul.msk.f32.gmra.mxu2 %vm2021_vm14, %v2367_v26 }
 0xe86   :  { %v2174_v12 = vpop.xlane.xlu0 %2173 }
 0xe87   :  { %vm2180_vm15 = vcmp.gt.f32.partialorder %v2174_v12, 0.0 }
 0xe88   :  { %v2168_v1 = vpop.xlane.xlu2 %2167 }
 0xe89   :  { %vm2178_vm6 = vcmp.eq.f32.partialorder %v2168_v1, %v1843_v58 }
 0xe8a   :  { %vm2182_vm0 = vmand %vm2178_vm6, %vm2180_vm15 }
 0xe8b   :  { %v2184_v47 = vsel %vm2182_vm0, 1.0, %v2947_v62 }
 0xe90   :  { %v2177_v59 = vpop.xlane.xlu2 %2176  ;;  %v2171_v60 = vpop.xlane.xlu1 %2170 }
 0xe91   :  { %vm2181_vm3 = vcmp.gt.f32.partialorder %v2177_v59, 0.0  ;;  %vm2179_vm2 = vcmp.eq.f32.partialorder %v2171_v60, %v1844_v30 }
 0xe92   :  { %vm2183_vm1 = vmand %vm2179_vm2, %vm2181_vm3 }
 0xe93   :  { %v2185_v9 = vsel %vm2183_vm1, 1.0, %v2947_v62 }
 0xe94   :  { %v2186_v43 = vadd.f32 %v2185_v9, %v2184_v47 }
 0xe96   :  { %v2187_v29 = vrot.slane %v2186_v43, 4 }
 0xe98   :  { %v2188_v44 = vadd.f32 %v2187_v29, %v2186_v43 }
 0xe9a   :  { %v2189_v28 = vrot.slane %v2188_v44, 2 }
 0xe9c   :  { %v2190_v32 = vadd.f32 %v2189_v28, %v2188_v44 }
 0xe9e   :  { %v2191_v27 = vrot.slane %v2190_v32, 1 }
 0xea0   :  { %v2192_v49 = vadd.f32 %v2191_v27, %v2190_v32 }
 0xea2   :  { %2194 = vst.msk [vmem:[%s4212_s4] sm:$0x1] %vm2193_vm7, %v2192_v49 }
 0xef2   :  { %v2391_v5 = vpop.f32.mrf.mxu2 }
 0xef3   :  { %vm2397_vm4 = vcmp.gt.f32.partialorder %v2391_v5, 0.5 }
 0xef4   :  { %v2685_v38 = vsel %vm2397_vm4, 1.0, %v2947_v62 }
 0xefa   :  { %v2394_v54 = vpop.f32.mrf.mxu2 }
 0xefb   :  { %vm2398_vm8 = vcmp.gt.f32.partialorder %v2394_v54, 0.5 }
 0xefc   :  { %2687 = vmatpush.msk.msrb.mxu3 %vm2398_vm8, %v2948_v7  ;;  %v2686_v2 = vsel %vm2398_vm8, 1.0, %v2947_v62 }
 0xefe   :  { %2688 = vmatpush.msk.msrb.mxu3 %vm2397_vm4, %v2948_v7 }
 0xeff   :  { %2689 = vmatmul.msk.f32.vlgmr.msrb.gmra.mxu3 %vm2021_vm14, %v2685_v38 }
 0xf07   :  { %2690 = vmatmul.msk.f32.gmra.mxu3 %vm2021_vm14, %v2686_v2 }
 0xf82   :  { %v2426_v63 = vpop.f32.mrf.mxu3 }
 0xf83   :  { %vm2432_vm5 = vcmp.gt.f32.partialorder %v2426_v63, 0.5 }
 0xf84   :  { %v2691_v8 = vsel %vm2432_vm5, 1.0, %v2947_v62 }
 0xf8a   :  { %v2429_v41 = vpop.f32.mrf.mxu3 }
 0xf8b   :  { %vm2433_vm9 = vcmp.gt.f32.partialorder %v2429_v41, 0.5 }
 0xf8c   :  { %2693 = vmatpush.msk.msra.mxu0 %vm2433_vm9, %v2948_v7  ;;  %v2692_v61 = vsel %vm2433_vm9, 1.0, %v2947_v62 }
 0xf8e   :  { %2694 = vmatpush.msk.msra.mxu0 %vm2432_vm5, %v2948_v7 }
 0xf8f   :  { %2695 = vmatmul.msk.f32.vlgmr.msra.gmra.mxu0 %vm2021_vm14, %v2691_v8 }
 0xf97   :  { %2696 = vmatmul.msk.f32.gmra.mxu0 %vm2021_vm14, %v2692_v61 }
0x100c   :  { %v2461_v17 = vpop.f32.mrf.mxu0 }
0x100d   :  { %vm2467_vm10 = vcmp.gt.f32.partialorder %v2461_v17, 0.5 }
0x100e   :  { %v2697_v4 = vsel %vm2467_vm10, 1.0, %v2947_v62 }
0x1014   :  { %v2464_v3 = vpop.f32.mrf.mxu0 }
0x1015   :  { %vm2468_vm11 = vcmp.gt.f32.partialorder %v2464_v3, 0.5 }
0x1016   :  { %2699 = vmatpush.msk.msrb.mxu1 %vm2468_vm11, %v2948_v7  ;;  %v2698_v0 = vsel %vm2468_vm11, 1.0, %v2947_v62 }
0x1018   :  { %2700 = vmatpush.msk.msrb.mxu1 %vm2467_vm10, %v2948_v7 }
0x1019   :  { %2701 = vmatmul.msk.f32.vlgmr.msrb.gmra.mxu1 %vm2021_vm14, %v2697_v4 }
0x1021   :  { %2702 = vmatmul.msk.f32.gmra.mxu1 %vm2021_vm14, %v2698_v0 }
0x1096   :  { %v2496_v31 = vpop.f32.mrf.mxu1 }
0x1097   :  { %vm2502_vm12 = vcmp.gt.f32.partialorder %v2496_v31, 0.5 }
0x1098   :  { %v2703_v56 = vsel %vm2502_vm12, 1.0, %v2947_v62 }
0x1099   :  { %v2518_v23 = vsel %vm2021_vm14, %v2703_v56, 0.0  ;;  %vm2508_vm13 = vcmp.gt.f32.partialorder %v2703_v56, 0.5 }
0x109a   :  { %2519 = vadd.xlane.f32.xlu2 %v2518_v23  ;;  %v2510_v19 = vsel %vm2508_vm13, %v4121_v46, 16.0 }
0x109b   :  { %v2512_v20 = vsel %vm2021_vm14, %v2510_v19, inf }
0x109c   :  { %2513 = vmin.xlane.f32.xlu1 %v2512_v20 }
0x109e   :  { %v2499_v7 = vpop.f32.mrf.mxu1 }
0x109f   :  { %vm2503_vm6 = vcmp.gt.f32.partialorder %v2499_v7, 0.5 }
0x10a0   :  { %v2704_v10 = vsel %vm2503_vm6, 1.0, %v2947_v62 }
0x10a1   :  { %vm2509_vm15 = vcmp.gt.f32.partialorder %v2704_v10, 0.5  ;;  %v2521_v24 = vsel %vm2021_vm14, %v2704_v10, 0.0 }
0x10a2   :  { %v2511_v40 = vsel %vm2509_vm15, %v4121_v46, 16.0 }
0x10a3   :  { %v2515_v15 = vsel %vm2021_vm14, %v2511_v40, inf }
0x10a4   :  { %2516 = vmin.xlane.f32.xlu0 %v2515_v15  ;;  %2522 = vadd.xlane.f32.xlu1 %v2521_v24 }
0x110d   :  { %v2520_v11 = vpop.xlane.xlu2 %2519 }
0x110e   :  { %vm2526_vm3 = vcmp.gt.f32.partialorder %v2520_v11, 0.0 }
0x110f   :  { %v2514_v55 = vpop.xlane.xlu1 %2513 }
0x1110   :  { %vm2524_vm0 = vcmp.eq.f32.partialorder %v2514_v55, %v1843_v58 }
0x1111   :  { %vm2528_vm2 = vmand %vm2524_vm0, %vm2526_vm3 }
0x1112   :  { %v2530_v46 = vsel %vm2528_vm2, 1.0, %v2947_v62 }
0x1117   :  { %v2517_v37 = vpop.xlane.xlu0 %2516  ;;  %v2523_v48 = vpop.xlane.xlu1 %2522 }
0x1118   :  { %vm2525_vm1 = vcmp.eq.f32.partialorder %v2517_v37, %v1844_v30  ;;  %vm2527_vm4 = vcmp.gt.f32.partialorder %v2523_v48, 0.0 }
0x1119   :  { %vm2529_vm8 = vmand %vm2525_vm1, %vm2527_vm4 }
0x111a   :  { %v2531_v16 = vsel %vm2529_vm8, 1.0, %v2947_v62 }
0x111b   :  { %v2532_v14 = vadd.f32 %v2531_v16, %v2530_v46 }
0x111d   :  { %v2533_v21 = vrot.slane %v2532_v14, 4 }
0x111f   :  { %v2534_v33 = vadd.f32 %v2533_v21, %v2532_v14 }
0x1121   :  { %v2535_v57 = vrot.slane %v2534_v33, 2 }
0x1123   :  { %v2536_v25 = vadd.f32 %v2535_v57, %v2534_v33 }
0x1125   :  { %v2537_v53 = vrot.slane %v2536_v25, 1 }
0x1127   :  { %v2538_v52 = vadd.f32 %v2537_v53, %v2536_v25 }
0x1129   :  { %2539 = vst.msk [vmem:[%s4212_s4 + $0x1] sm:$0x1] %vm2193_vm7, %v2538_v52 }

</bundles_post_ra>
